<compile_context>
chip_gen: v7x
topology: tpu7x:2x2x1
jax: 0.10.0
libtpu: 0.0.40
codegen_flags: <defaults>
</compile_context>

<pallas_src>
import functools
import math

import jax
import jax.numpy as jnp
from jax.experimental import pallas as pl
from jax.experimental.pallas import tpu as pltpu

BN_EPS = 1e-5
BN_SCALE = 1.0 / math.sqrt(1.0 + BN_EPS)       # eval-mode BN with default stats

VOLUME_SIZE = 24                               # Voxel2D.volume_size ('even')
FEAT_H, FEAT_W = 32, 48                        # 1/4-res feature map (smallest
                                               # legal for 24 shifts + UNet)
MAX_TM = 2048


def _ru(x, m):
    return (x + m - 1) // m * m


def _ones(n):
    return jnp.ones((n,), jnp.float32)


def _zeros(n):
    return jnp.zeros((n,), jnp.float32)


def _bn_scale(n):
    return jnp.full((n,), BN_SCALE, jnp.float32)


# ----------------------------------------------------------------------------
# Tile selection
# ----------------------------------------------------------------------------
def _pick_tm(M):
    """Largest M-tile with <=12.5% padding waste; tiny tile for GEMV-like M."""
    for t in (2048, 1024, 512, 256, 128):
        if t <= MAX_TM and M >= t and (_ru(M, t) - M) <= M // 8:
            return t
    return max(8, _ru(M, 8))


def _pick_tile(p128):
    """p128 is a multiple of 128. Returns (tile, padded) with low waste."""
    if p128 <= 1024:
        return p128, p128
    best = None
    for t in (1024, 512, 384, 256, 128):
        pad = _ru(p128, t)
        waste = pad - p128
        if waste <= max(64, p128 // 16):
            return t, pad
        if best is None or pad < best[1]:
            best = (t, pad)
    return best


def _gemm_kp(K):
    return _pick_tile(_ru(K, 128))[1]


# ----------------------------------------------------------------------------
# Fused Pallas matmul kernel:  y = rowmask * act((A @ W) * scale + bias)
# ----------------------------------------------------------------------------
def _mm_kernel(a_ref, w_ref, s_ref, b_ref, m_ref, o_ref, acc_ref, *, act):
    @pl.when(pl.program_id(2) == 0)
    def _():
        acc_ref[...] = jnp.zeros_like(acc_ref)

    acc_ref[...] += jnp.dot(a_ref[...], w_ref[...],
                            preferred_element_type=jnp.float32)

    @pl.when(pl.program_id(2) == pl.num_programs(2) - 1)
    def _():
        y = acc_ref[...] * s_ref[...] + b_ref[...]
        if act == "relu":
            y = jnp.maximum(y, 0.0)
        elif act == "sigmoid":
            y = jax.nn.sigmoid(y)
        y = y * m_ref[...]            # folded valid-column / active-site mask
        o_ref[...] = y.astype(o_ref.dtype)


@functools.partial(jax.jit,
                   static_argnames=("act", "tm", "tk", "tn", "out_dtype"))
def _mm_call(a_p, w_p, s_p, b_p, m_p, *, act, tm, tk, tn, out_dtype):
    Mp, Kp = a_p.shape
    _, Np = w_p.shape
    grid = (Mp // tm, Np // tn, Kp // tk)
    return pl.pallas_call(
        functools.partial(_mm_kernel, act=act),
        out_shape=jax.ShapeDtypeStruct((Mp, Np), out_dtype),
        grid_spec=pltpu.PrefetchScalarGridSpec(
            num_scalar_prefetch=0,
            grid=grid,
            in_specs=[
                pl.BlockSpec((tm, tk), lambda i, j, k: (i, k)),
                pl.BlockSpec((tk, tn), lambda i, j, k: (k, j)),
                pl.BlockSpec((1, tn), lambda i, j, k: (0, j)),
                pl.BlockSpec((1, tn), lambda i, j, k: (0, j)),
                pl.BlockSpec((tm, 1), lambda i, j, k: (i, 0)),
            ],
            out_specs=pl.BlockSpec((tm, tn), lambda i, j, k: (i, j)),
            scratch_shapes=[pltpu.VMEM((tm, tn), jnp.float32)],
        ),
        compiler_params=pltpu.CompilerParams(
            dimension_semantics=("parallel", "parallel", "arbitrary"),
            vmem_limit_bytes=64 * 1024 * 1024),
    )(a_p, w_p, s_p, b_p, m_p)


def gemm(a, w, scale, bias, act="none", rowmask=None, out_dtype=jnp.bfloat16):
    """a:(M,Ka) (Ka may already be K-padded), w:(K,N), scale/bias:(N,),
    rowmask:(M,) optional -> rowmask*act((a@w)*scale+bias), shape (M,N)."""
    M, Ka = a.shape
    Kw, N = w.shape
    assert Ka >= Kw
    tm = _pick_tm(M)
    Mp = _ru(M, tm)
    tk, Kp = _pick_tile(_ru(Ka, 128))
    tn, Np = _pick_tile(_ru(N, 128))

    a_p = a.astype(jnp.bfloat16)
    if (Mp, Kp) != (M, Ka):
        a_p = jnp.pad(a_p, ((0, Mp - M), (0, Kp - Ka)))
    w_p = w.astype(jnp.bfloat16)
    if (Kp, Np) != (Kw, N):
        w_p = jnp.pad(w_p, ((0, Kp - Kw), (0, Np - N)))
    s_p = scale.astype(jnp.float32).reshape(1, N)
    b_p = bias.astype(jnp.float32).reshape(1, N)
    if Np != N:
        s_p = jnp.pad(s_p, ((0, 0), (0, Np - N)))
        b_p = jnp.pad(b_p, ((0, 0), (0, Np - N)))
    if rowmask is None:
        m_p = jnp.ones((Mp, 1), jnp.float32)
    else:
        m_p = jnp.asarray(rowmask, jnp.float32).reshape(-1)
        assert m_p.shape[0] == M
        m_p = m_p.reshape(M, 1)
        if Mp != M:
            m_p = jnp.pad(m_p, ((0, Mp - M), (0, 0)))

    out = _mm_call(a_p, w_p, s_p, b_p, m_p,
                   act=act, tm=tm, tk=tk, tn=tn, out_dtype=out_dtype)
    if (Mp, Np) != (M, N):
        out = out[:M, :N]
    return out


# ----------------------------------------------------------------------------
# im2col conv helpers (slicing glue; all FLOPs go through the Pallas kernel)
# ----------------------------------------------------------------------------
def conv2d(x, w_mat, scale, bias, act, kernel, stride, pad,
           out_dtype=jnp.bfloat16):
    kh, kw = kernel
    sh, sw = stride
    ph, pw = pad
    x = x.astype(jnp.bfloat16)
    N, H, W, C = x.shape
    xp = jnp.pad(x, ((0, 0), (ph, ph), (pw, pw), (0, 0)))
    Ho = (H + 2 * ph - kh) // sh + 1
    Wo = (W + 2 * pw - kw) // sw + 1
    cols = []
    for a in range(kh):
        for b in range(kw):
            cols.append(jax.lax.slice(
                xp, (0, a, b, 0),
                (N, a + (Ho - 1) * sh + 1, b + (Wo - 1) * sw + 1, C),
                (1, sh, sw, 1)))
    K = kh * kw * C
    Kp = _gemm_kp(K)
    if Kp > K:       # emit patch matrix already K-padded (one materialization)
        cols.append(jnp.zeros((N, Ho, Wo, Kp - K), x.dtype))
    patches = jnp.concatenate(cols, axis=-1).reshape(N * Ho * Wo, Kp)
    y = gemm(patches, w_mat, scale, bias, act, out_dtype=out_dtype)
    return y.reshape(N, Ho, Wo, -1)


def conv3d(x, w_mat, scale, bias, act, kernel, stride, pad,
           rowmask=None, out_dtype=jnp.bfloat16):
    kd, kh, kw = kernel
    sd, sh, sw = stride
    pd, ph, pw = pad
    x = x.astype(jnp.bfloat16)
    N, D, H, W, C = x.shape
    xp = jnp.pad(x, ((0, 0), (pd, pd), (ph, ph), (pw, pw), (0, 0)))
    Do = (D + 2 * pd - kd) // sd + 1
    Ho = (H + 2 * ph - kh) // sh + 1
    Wo = (W + 2 * pw - kw) // sw + 1
    cols = []
    for a in range(kd):
        for b in range(kh):
            for c in range(kw):
                cols.append(jax.lax.slice(
                    xp, (0, a, b, c, 0),
                    (N, a + (Do - 1) * sd + 1, b + (Ho - 1) * sh + 1,
                     c + (Wo - 1) * sw + 1, C),
                    (1, sd, sh, sw, 1)))
    K = kd * kh * kw * C
    Kp = _gemm_kp(K)
    if Kp > K:
        cols.append(jnp.zeros((N, Do, Ho, Wo, Kp - K), x.dtype))
    patches = jnp.concatenate(cols, axis=-1).reshape(N * Do * Ho * Wo, Kp)
    y = gemm(patches, w_mat, scale, bias, act, rowmask=rowmask,
             out_dtype=out_dtype)
    return y.reshape(N, Do, Ho, Wo, -1)


def dilate3d(x, s):
    if s == 1:
        return x
    B, D, H, W, C = x.shape
    out = jnp.zeros((B, (D - 1) * s + 1, (H - 1) * s + 1, (W - 1) * s + 1, C),
                    x.dtype)
    return out.at[:, ::s, ::s, ::s, :].set(x)


def conv_transpose3d_dense(x, w_mat, scale, bias, act, k, s, p,
                           out_dtype=jnp.bfloat16):
    # TODO(synk): assumes w_mat is already in spatially-flipped (K,Cout) matmul
    # layout; loading real ConvTranspose3d checkpoints would need reordering.
    xd = dilate3d(x, s)
    return conv3d(xd, w_mat, scale, bias, act, (k, k, k), (1, 1, 1),
                  (k - 1 - p,) * 3, out_dtype=out_dtype)


def deconv_k6s2p2(x, w_phase, scale, bias, act, cout, rowmask=None,
                  out_dtype=jnp.bfloat16):
    """(Sparse)ConvTranspose3d(k=6, s=2, p=2), dense emulation.

    Phase decomposition: every one of the 8 output phases is the SAME
    3x3x3/stride-1 conv over the input (only the weight taps differ), so all
    phases run as ONE matmul with N = 8*cout, then get interleaved to 2x size.
    """
    B, D, H, W, _ = x.shape
    y = conv3d(x, w_phase, jnp.tile(scale, 8), jnp.tile(bias, 8), act,
               (3, 3, 3), (1, 1, 1), (1, 1, 1),
               rowmask=rowmask, out_dtype=out_dtype)
    y = y.reshape(B, D, H, W, 2, 2, 2, cout)
    y = jnp.transpose(y, (0, 1, 4, 2, 5, 3, 6, 7))
    return y.reshape(B, 2 * D, 2 * H, 2 * W, cout)


def pool_active(active):
    """3x3x3 'SAME' max-pool of a boolean (B,D,H,W) active-site map."""
    a = active.astype(jnp.float32)
    a = jax.lax.reduce_window(a, 0.0, jax.lax.max,
                              (1, 3, 3, 3), (1, 1, 1, 1), "SAME")
    return a > 0


def upsample_active(active):
    """Active-output set of SparseConvTranspose3d(k=6, s=2, p=2)."""
    p_ = pool_active(active)
    B, D, H, W = p_.shape
    p_ = jnp.broadcast_to(p_[:, :, None, :, None, :, None],
                          (B, D, 2, H, 2, W, 2))
    return p_.reshape(B, 2 * D, 2 * H, 2 * W)


# ----------------------------------------------------------------------------
# Parameters (deterministic synthetic init, mirroring Voxel2D.__init__ scales)
# ----------------------------------------------------------------------------
def init_params(key):
    keys = iter(jax.random.split(key, 40))

    def rnd(shape, scale):
        return jax.random.normal(next(keys), shape, jnp.float32) * scale

    def w2(cin, cout, kh, kw):
        return rnd((kh * kw * cin, cout), math.sqrt(2.0 / (kh * kw * cout)))

    def w3(cin, cout, kd, kh, kw):
        return rnd((kd * kh * kw * cin, cout),
                   math.sqrt(2.0 / (kd * kh * kw * cout)))

    def wt6(cin, cout):
        # phase-decomposed k=6 s=2 p=2 transpose conv weight, (27*cin, 8*cout):
        # rows ordered (tap_d, tap_h, tap_w, cin); cols ordered (phase, cout).
        # TODO(synk): real ConvTranspose3d weights need reordering into this.
        return rnd((27 * cin, 8 * cout), math.sqrt(2.0 / (216 * cout)))

    def lin(cin, cout):
        bound = 1.0 / math.sqrt(cin)
        return jax.random.uniform(next(keys), (cin, cout), jnp.float32,
                                  -bound, bound)

    # UNet encoder geometry drives the first Linear fan-in.
    u1h = (FEAT_H + 2 * 2 - 6) // 2 + 1
    u1w = (FEAT_W + 2 * 10 - 6) // 2 + 1
    u2h, u2w = (u1h - 4) // 4 + 1, (u1w - 4) // 4 + 1
    u3h, u3w = (u2h - 4) // 4 + 1, (u2w - 4) // 4 + 1
    lin_in = 256 * u3h * u3w
    # TODO(synk): reference hard-codes Linear(256*3*7) (a 96x208 cost volume);
    # here the Linear fan-in is sized to the actual flattened conv3 output so
    # the small test resolution runs.

    p = {}
    # TODO(synk): feature_extraction backbone source is not provided; stand-in
    # is a single 4x4/stride-4 conv (3->160) + ReLU giving 1/4-res features.
    p["feat_w"] = w2(3, 160, 4, 4)
    p["feat_b"] = _zeros(160)
    # preconv11
    p["pre_w1"] = w2(160, 128, 1, 1)
    p["pre_w2"] = w2(128, 64, 1, 1)
    p["pre_w3"] = w2(64, 32, 1, 1)
    p["pre_b3"] = _zeros(32)
    # conv3d stack + volume11
    p["c3d_w1"] = w3(1, 8, 8, 3, 3)
    p["c3d_w2"] = w3(8, 16, 4, 3, 3)
    p["c3d_w3"] = w3(16, 8, 2, 3, 3)
    p["vol_w"] = w2(8, 1, 1, 1)
    # UNet encoder
    p["u_c1_w"] = w2(24, 64, 6, 6);   p["u_c1_b"] = _zeros(64)
    p["u_c2_w"] = w2(64, 128, 4, 4);  p["u_c2_b"] = _zeros(128)
    p["u_c3_w"] = w2(128, 256, 4, 4); p["u_c3_b"] = _zeros(256)
    p["u_l1_w"] = lin(lin_in, 512);   p["u_l1_b"] = _zeros(512)
    p["u_l2_w"] = lin(512, 512);      p["u_l2_b"] = _zeros(512)
    p["u_l3_w"] = lin(512, 128);      p["u_l3_b"] = _zeros(128)
    # deconv1: ConvTranspose3d(128,64,5,2,0) on a 1x1x1 latent == Linear to
    # (5,5,5,64); rows = cin, cols ordered (kd,kh,kw,cout).
    p["d1_ct_w"] = rnd((128, 5 * 5 * 5 * 64), math.sqrt(2.0 / (125 * 64)))
    p["d1_c_w"] = w3(64, 64, 2, 2, 2)
    # deconv2
    p["d2_ct_w"] = w3(64, 32, 5, 5, 5)
    p["d2_c_w"] = w3(32, 32, 2, 2, 2)
    p["d2o_w"] = w3(32, 1, 1, 1, 1)
    # sparse stages (dense emulation)
    p["d3_ct_w"] = wt6(32, 16)
    p["d3_sm_w"] = w3(16, 16, 3, 3, 3)
    p["d3o_w"] = w3(16, 1, 1, 1, 1)
    p["d4_ct_w"] = wt6(16, 8)
    p["d4_sm_w"] = w3(8, 8, 3, 3, 3)
    p["d4o_w"] = w3(8, 1, 1, 1, 1)
    p["d5_ct_w"] = wt6(8, 1)
    p["d5_ct_b"] = jax.random.uniform(next(keys), (1,), jnp.float32, -0.1, 0.1)
    return p


# ----------------------------------------------------------------------------
# Model forward
# ----------------------------------------------------------------------------
def feature_extraction(p, img):
    # TODO(synk): stand-in for the (unavailable) MSNet feature_extraction.
    return conv2d(img, p["feat_w"], _ones(160), p["feat_b"], "relu",
                  (4, 4), (4, 4), (0, 0))


def preconv11(p, f):
    B, H, W, C = f.shape
    x = f.reshape(B * H * W, C)
    x = gemm(x, p["pre_w1"], _bn_scale(128), _zeros(128), "relu")
    x = gemm(x, p["pre_w2"], _bn_scale(64), _zeros(64), "relu")
    x = gemm(x, p["pre_w3"], _ones(32), p["pre_b3"], "none")
    return x.reshape(B, H, W, 32)


def build_cost_volume(p, featL, featR, volume_size):
    B, H, W, C = featL.shape                  # C == 32
    D = 2 * C                                 # interleaved L/R -> depth 64
    xs = []
    for i in range(volume_size):
        j = 2 * i if i > 0 else 0
        Wi = W - j
        fl = featL[:, :, j:, :]
        fr = featR[:, :, :Wi, :]
        x = jnp.stack([fl, fr], axis=-1).reshape(B, H, Wi, D)   # L0,R0,L1,R1..
        x = jnp.pad(x, ((0, 0), (0, 0), (0, W - Wi), (0, 0)))   # zero right pad
        xs.append(jnp.transpose(x, (0, 3, 1, 2)))               # (B, D, H, W)
    # batch all 24 disparity shifts along M -> one matmul per conv3d layer
    x = jnp.stack(xs, 0).reshape(volume_size * B, D, H, W)[..., None]

    # per-shift valid-column masks, folded into the matmul epilogues so the
    # zero-padded columns stay exactly zero after each (bias-free) BN+ReLU conv
    valid = (jnp.arange(W)[None, :] <
             (W - 2 * jnp.arange(volume_size))[:, None]).astype(jnp.float32)

    def row_mask(dout):
        m = jnp.broadcast_to(valid[:, None, None, None, :],
                             (volume_size, B, dout, H, W))
        return m.reshape(-1)

    y = conv3d(x, p["c3d_w1"], _bn_scale(8), _zeros(8), "relu",
               (8, 3, 3), (8, 1, 1), (0, 1, 1), rowmask=row_mask(8))
    y = conv3d(y, p["c3d_w2"], _bn_scale(16), _zeros(16), "relu",
               (4, 3, 3), (4, 1, 1), (0, 1, 1), rowmask=row_mask(2))
    y = conv3d(y, p["c3d_w3"], _bn_scale(8), _zeros(8), "relu",
               (2, 3, 3), (2, 1, 1), (0, 1, 1))
    # volume11: convbn(8,1) + ReLU
    v = gemm(y.reshape(volume_size * B * H * W, 8), p["vol_w"],
             _bn_scale(1), _zeros(1), "relu", out_dtype=jnp.float32)
    v = v.reshape(volume_size, B, H, W)

    vol = jnp.zeros((B, H, W, volume_size), jnp.float32)
    for i in range(volume_size):
        j = 2 * i if i > 0 else 0
        Wi = W - j
        vol = vol.at[:, :, j:, i].set(v[i, :, :, :Wi])
    return vol                                 # torch layout: (B, 24, H, W)


def unet_forward(p, volume):
    B = volume.shape[0]
    c1 = conv2d(volume, p["u_c1_w"], _ones(64), p["u_c1_b"], "relu",
                (6, 6), (2, 2), (2, 10))
    c2 = conv2d(c1, p["u_c2_w"], _ones(128), p["u_c2_b"], "relu",
                (4, 4), (4, 4), (0, 0))
    c3 = conv2d(c2, p["u_c3_w"], _ones(256), p["u_c3_b"], "relu",
                (4, 4), (4, 4), (0, 0))
    flat = jnp.transpose(c3, (0, 3, 1, 2)).reshape(B, -1)   # NCHW flatten order
    l1 = gemm(flat, p["u_l1_w"], _ones(512), p["u_l1_b"], "relu")
    l2 = gemm(l1, p["u_l2_w"], _ones(512), p["u_l2_b"], "relu")
    l3 = gemm(l2, p["u_l3_w"], _ones(128), p["u_l3_b"], "relu")

    # deconv1: ConvTranspose3d(128,64,5,2,0) on the 1x1x1 latent == Linear
    d1 = gemm(l3, p["d1_ct_w"], _bn_scale(5 * 5 * 5 * 64),
              _zeros(5 * 5 * 5 * 64), "relu")
    d1 = d1.reshape(B, 5, 5, 5, 64)
    d1 = conv3d(d1, p["d1_c_w"], _bn_scale(64), _zeros(64), "relu",
                (2, 2, 2), (1, 1, 1), (0, 0, 0))
    # deconv2
    d2 = conv_transpose3d_dense(d1, p["d2_ct_w"], _bn_scale(32), _zeros(32),
                                "relu", 5, 2, 1)
    d2 = conv3d(d2, p["d2_c_w"], _bn_scale(32), _zeros(32), "relu",
                (2, 2, 2), (1, 1, 1), (0, 0, 0))
    o2 = gemm(d2.reshape(-1, 32), p["d2o_w"], _ones(1), _zeros(1), "sigmoid",
              out_dtype=jnp.float32)
    out_2 = o2.reshape(B, 8, 8, 8)

    mask_2 = (out_2 >= 0.5).astype(d2.dtype)
    d2m = d2 * mask_2[..., None]
    active2 = jnp.any(d2m != 0, axis=-1)          # create_sparse_tensor sites

    # --- level 3 (sparse stage emulated densely, exact active-site masks) ---
    active3 = upsample_active(active2)            # (B,16,16,16)
    a3_rows = active3.astype(jnp.float32).reshape(-1)
    d3 = deconv_k6s2p2(d2m, p["d3_ct_w"], _bn_scale(16), _zeros(16), "relu", 16)
    d3 = conv3d(d3, p["d3_sm_w"], _bn_scale(16), _zeros(16), "relu",
                (3, 3, 3), (1, 1, 1), (1, 1, 1), rowmask=a3_rows)  # SubMConv3d
    o3 = gemm(d3.reshape(-1, 16), p["d3o_w"], _ones(1), _zeros(1), "sigmoid",
              rowmask=a3_rows, out_dtype=jnp.float32)              # .dense()
    out_3 = o3.reshape(B, 16, 16, 16)

    mask_3 = (out_3 >= 0.5).astype(d3.dtype)
    mask_3 = jnp.where(jnp.sum(mask_3.astype(jnp.float32)) == 0,
                       mask_3 + 1e-6, mask_3)
    d3m = d3 * mask_3[..., None]
    active3b = jnp.any(d3m != 0, axis=-1)

    # --- level 4 ---
    active4 = upsample_active(active3b)           # (B,32,32,32)
    a4_rows = active4.astype(jnp.float32).reshape(-1)
    d4 = deconv_k6s2p2(d3m, p["d4_ct_w"], _bn_scale(8), _zeros(8), "relu", 8)
    d4 = conv3d(d4, p["d4_sm_w"], _bn_scale(8), _zeros(8), "relu",
                (3, 3, 3), (1, 1, 1), (1, 1, 1), rowmask=a4_rows)
    o4 = gemm(d4.reshape(-1, 8), p["d4o_w"], _ones(1), _zeros(1), "sigmoid",
              rowmask=a4_rows, out_dtype=jnp.float32)
    out_4 = o4.reshape(B, 32, 32, 32)

    mask_4 = (out_4 >= 0.5).astype(d4.dtype)
    mask_4 = jnp.where(jnp.sum(mask_4.astype(jnp.float32)) == 0,
                       mask_4 + 1e-6, mask_4)
    d4m = d4 * mask_4[..., None]
    active4b = jnp.any(d4m != 0, axis=-1)

    # --- level 5: SparseConvTranspose3d(8,1,6,2,2,bias=True) + Sigmoid.
    # The .dense() active mask is phase-independent, so it folds into the
    # matmul epilogue as a per-row mask at 32^3 (pre-interleave) resolution.
    a5_rows = pool_active(active4b).astype(jnp.float32).reshape(-1)
    o5 = deconv_k6s2p2(d4m, p["d5_ct_w"], _ones(1), p["d5_ct_b"], "sigmoid", 1,
                       rowmask=a5_rows, out_dtype=jnp.float32)
    out_5 = o5[..., 0]

    return [out_2, out_3, out_4, out_5]


def voxel2d_forward(p, L, R):
    """L, R: (B, 3, H, W) NCHW images, like the PyTorch module."""
    Ln = jnp.transpose(L, (0, 2, 3, 1)).astype(jnp.bfloat16)
    Rn = jnp.transpose(R, (0, 2, 3, 1)).astype(jnp.bfloat16)
    B = Ln.shape[0]
    # Batch L and R through the (shared-weight) feature path: half the launches.
    imgs = jnp.concatenate([Ln, Rn], axis=0)
    feats = preconv11(p, feature_extraction(p, imgs))
    featL, featR = feats[:B], feats[B:]
    volume = build_cost_volume(p, featL, featR, VOLUME_SIZE)
    out = unet_forward(p, volume)
    return [out]


if __name__ == "__main__":
    assert FEAT_W > 2 * (VOLUME_SIZE - 1)

    key = jax.random.PRNGKey(0)
    pkey, lkey, rkey = jax.random.split(key, 3)
    params = init_params(pkey)

    B = 1
    H_IMG, W_IMG = 4 * FEAT_H, 4 * FEAT_W          # 128 x 192 input images
    L = jax.random.normal(lkey, (B, 3, H_IMG, W_IMG), jnp.float32)
    R = jax.random.normal(rkey, (B, 3, H_IMG, W_IMG), jnp.float32)

    fwd = jax.jit(voxel2d_forward)                 # single compile of the whole net
    outs = fwd(params, L, R)
    outs = jax.block_until_ready(outs)

    out_2, out_3, out_4, out_5 = outs[0]
    assert out_2.shape == (B, 8, 8, 8)
    assert out_3.shape == (B, 16, 16, 16)
    assert out_4.shape == (B, 32, 32, 32)
    assert out_5.shape == (B, 64, 64, 64)
    assert all(bool(jnp.all(jnp.isfinite(o))) for o in outs[0])
    print("KERNEL_OK")
</pallas_src>

<mosaic_0001>
module attributes {stable_mosaic.version = 11 : i64} {
  func.func @_mm_kernel(%arg0: i32, %arg1: i32, %arg2: i32, %arg3: memref<1024x128xbf16, #tpu.memory_space<vmem>>, %arg4: memref<128x256xbf16, #tpu.memory_space<vmem>>, %arg5: memref<1x256xf32, #tpu.memory_space<vmem>>, %arg6: memref<1x256xf32, #tpu.memory_space<vmem>>, %arg7: memref<1024x1xf32, #tpu.memory_space<vmem>>, %arg8: memref<1024x256xbf16, #tpu.memory_space<vmem>>, %arg9: memref<1024x256xf32, #tpu.memory_space<vmem>>) attributes {dimension_semantics = [#tpu.dimension_semantics<parallel>, #tpu.dimension_semantics<parallel>, #tpu.dimension_semantics<arbitrary>], iteration_bounds = array<i64: 3, 1, 1>, scalar_prefetch = 0 : i64, scratch_operands = 1 : i64, tpu.core_type = #tpu.core_type<tc>, window_params = [{transform_indices = @transform_0, window_bounds = array<i64: 1024, 128>}, {transform_indices = @transform_1, window_bounds = array<i64: 128, 256>}, {transform_indices = @transform_2, window_bounds = array<i64: 1, 256>}, {transform_indices = @transform_3, window_bounds = array<i64: 1, 256>}, {transform_indices = @transform_4, window_bounds = array<i64: 1024, 1>}, {transform_indices = @transform_5, window_bounds = array<i64: 1024, 256>}]} {
    %c0_i32 = arith.constant 0 : i32
    %0 = arith.cmpi eq, %arg2, %c0_i32 : i32
    %1 = arith.extui %0 : i1 to i32
    %c0_i32_0 = arith.constant 0 : i32
    %2 = arith.cmpi ne, %1, %c0_i32_0 : i32
    scf.if %2 {
      %cst_10 = arith.constant 0.000000e+00 : f32
      %12 = vector.broadcast %cst_10 : f32 to vector<1024x256xf32>
      %c0_11 = arith.constant 0 : index
      %c0_12 = arith.constant 0 : index
      %13 = vector.load %arg9[%c0_11, %c0_12] : memref<1024x256xf32, #tpu.memory_space<vmem>>, vector<1024x256xf32>
      tpu.vector_store %arg9[%c0_11, %c0_12], %12 {strides = array<i32>} : memref<1024x256xf32, #tpu.memory_space<vmem>>, vector<1024x256xf32>,
    } else {
    }
    %c0 = arith.constant 0 : index
    %c0_1 = arith.constant 0 : index
    %3 = vector.load %arg9[%c0, %c0_1] : memref<1024x256xf32, #tpu.memory_space<vmem>>, vector<1024x256xf32>
    %c0_2 = arith.constant 0 : index
    %c0_3 = arith.constant 0 : index
    %4 = vector.load %arg3[%c0_2, %c0_3] : memref<1024x128xbf16, #tpu.memory_space<vmem>>, vector<1024x128xbf16>
    %c0_4 = arith.constant 0 : index
    %c0_5 = arith.constant 0 : index
    %5 = vector.load %arg4[%c0_4, %c0_5] : memref<128x256xbf16, #tpu.memory_space<vmem>>, vector<128x256xbf16>
    %cst = arith.constant dense<0.000000e+00> : vector<1024x256xf32>
    %6 = tpu.matmul %4, %5, %cst {dimension_numbers = #tpu.dot_dimension_numbers<[1], [0], [0], [1], [0, 0, 1, 1], [], []>} : vector<1024x128xbf16>, vector<128x256xbf16>, vector<1024x256xf32> -> vector<1024x256xf32>
    %7 = arith.addf %3, %6 : vector<1024x256xf32>
    %c0_6 = arith.constant 0 : index
    %c0_7 = arith.constant 0 : index
    %8 = vector.load %arg9[%c0_6, %c0_7] : memref<1024x256xf32, #tpu.memory_space<vmem>>, vector<1024x256xf32>
    tpu.vector_store %arg9[%c0_6, %c0_7], %7 {strides = array<i32>} : memref<1024x256xf32, #tpu.memory_space<vmem>>, vector<1024x256xf32>,
    %c0_i32_8 = arith.constant 0 : i32
    %9 = arith.cmpi eq, %arg2, %c0_i32_8 : i32
    %10 = arith.extui %9 : i1 to i32
    %c0_i32_9 = arith.constant 0 : i32
    %11 = arith.cmpi ne, %10, %c0_i32_9 : i32
    scf.if %11 {
      %c0_10 = arith.constant 0 : index
      %c0_11 = arith.constant 0 : index
      %12 = vector.load %arg9[%c0_10, %c0_11] : memref<1024x256xf32, #tpu.memory_space<vmem>>, vector<1024x256xf32>
      %c0_12 = arith.constant 0 : index
      %c0_13 = arith.constant 0 : index
      %13 = vector.load %arg5[%c0_12, %c0_13] : memref<1x256xf32, #tpu.memory_space<vmem>>, vector<1x256xf32>
      %14 = vector.broadcast %13 : vector<1x256xf32> to vector<1024x256xf32>
      %15 = arith.mulf %12, %14 : vector<1024x256xf32>
      %c0_14 = arith.constant 0 : index
      %c0_15 = arith.constant 0 : index
      %16 = vector.load %arg6[%c0_14, %c0_15] : memref<1x256xf32, #tpu.memory_space<vmem>>, vector<1x256xf32>
      %17 = vector.broadcast %16 : vector<1x256xf32> to vector<1024x256xf32>
      %18 = arith.addf %15, %17 : vector<1024x256xf32>
      %cst_16 = arith.constant 0.000000e+00 : f32
      %19 = vector.broadcast %cst_16 : f32 to vector<1024x256xf32>
      %20 = arith.maximumf %18, %19 : vector<1024x256xf32>
      %c0_17 = arith.constant 0 : index
      %c0_18 = arith.constant 0 : index
      %21 = vector.load %arg7[%c0_17, %c0_18] : memref<1024x1xf32, #tpu.memory_space<vmem>>, vector<1024x1xf32>
      %22 = vector.broadcast %21 : vector<1024x1xf32> to vector<1024x256xf32>
      %23 = arith.mulf %20, %22 : vector<1024x256xf32>
      %24 = arith.truncf %23 : vector<1024x256xf32> to vector<1024x256xbf16>
      %c0_19 = arith.constant 0 : index
      %c0_20 = arith.constant 0 : index
      %25 = vector.load %arg8[%c0_19, %c0_20] : memref<1024x256xbf16, #tpu.memory_space<vmem>>, vector<1024x256xbf16>
      tpu.vector_store %arg8[%c0_19, %c0_20], %24 {strides = array<i32>} : memref<1024x256xbf16, #tpu.memory_space<vmem>>, vector<1024x256xbf16>,
    } else {
    }
    return
  }
  func.func @transform_0(%arg0: i32, %arg1: i32, %arg2: i32) -> (i32, i32) {
    %c0_i32 = arith.constant 0 : i32
    return %arg0, %arg2 : i32, i32
  }
  func.func @transform_1(%arg0: i32, %arg1: i32, %arg2: i32) -> (i32, i32) {
    %c0_i32 = arith.constant 0 : i32
    return %arg2, %arg1 : i32, i32
  }
  func.func @transform_2(%arg0: i32, %arg1: i32, %arg2: i32) -> (i32, i32) {
    %c0_i32 = arith.constant 0 : i32
    %c0_i32_0 = arith.constant 0 : i32
    return %c0_i32, %arg1 : i32, i32
  }
  func.func @transform_3(%arg0: i32, %arg1: i32, %arg2: i32) -> (i32, i32) {
    %c0_i32 = arith.constant 0 : i32
    %c0_i32_0 = arith.constant 0 : i32
    return %c0_i32, %arg1 : i32, i32
  }
  func.func @transform_4(%arg0: i32, %arg1: i32, %arg2: i32) -> (i32, i32) {
    %c0_i32 = arith.constant 0 : i32
    %c0_i32_0 = arith.constant 0 : i32
    return %arg0, %c0_i32 : i32, i32
  }
  func.func @transform_5(%arg0: i32, %arg1: i32, %arg2: i32) -> (i32, i32) {
    %c0_i32 = arith.constant 0 : i32
    return %arg0, %arg1 : i32, i32
  }
}

</mosaic_0001>

<bundles_post_ra>
// kernel: _mm_call.1
= control target key start
LH: loop header
LB: loop body
LE: loop exit
PB: predicated region body
PF: predicated region fallthrough
CT: control target
= control target key end

     0   :  { %s8690_s0 = inlined_call_operand.hbm [shape: bf16[3072,128], index: 0, kind: input, shape index: {}]   ;;  %s8691_s1 = inlined_call_operand.hbm [shape: bf16[128,256], index: 1, kind: input, shape index: {}]   ;;  %s8692_s2 = inlined_call_operand.hbm [shape: f32[1,256], index: 2, kind: input, shape index: {}]   ;;  %s8693_s3 = inlined_call_operand.hbm [shape: f32[1,256], index: 3, kind: input, shape index: {}]   ;;  %s8694_s4 = inlined_call_operand.hbm [shape: f32[3072,1], index: 4, kind: input, shape index: {}]   ;;  %s8695_s5 = inlined_call_operand.hbm [shape: bf16[3072,256], index: 5, kind: output, shape index: {}]  }
   0x1   :  { %8748 = sst [smem:[#allocation56_spill]] %s8690_s0 }
   0x2   :  { %8749 = sst [smem:[#allocation57_spill]] %s8691_s1 }
   0x3   :  { %8750 = sst [smem:[#allocation58_spill]] %s8695_s5 }
   0x4   :  { %10 = vsyncpa [#allocation4], 0 }
   0x5   :  { %12 = vsyncpa [#allocation4 + $0x1], 0 }
   0x6   :  { %13 = vsyncpa [#allocation7], 0 }
   0x7   :  { %14 = vsyncpa [#allocation10], 0 }
   0x8   :  { %15 = vsyncpa [#allocation5], 0 }
   0x9   :  { %17 = vsyncpa [#allocation5 + $0x1], 0  ;;  %s6686_s18 = smov 0   ;;  %s6688_s19 = smov 0  }
   0xa   :  { %s6690_s20 = smov 0   ;;  %s6692_s21 = smov 0  }
   0xb   :  { %s6694_s22 = smov 0   ;;  %s6696_s23 = smov 0  }
   0xc LB: > { %8751 = sst [smem:[#allocation18_spill]] %s6621_s18  ;;  %s6717_s24 = sadd.s32 4294967295, %s6641_s23   ;;  %s6641_s23 = sphi %s6696_s23, %s23_s23   ;;  %s6637_s22 = sphi %s6694_s22, %s8858_s22   ;;  %s6633_s21 = sphi %s6692_s21, %s8857_s21   ;;  %s6629_s20 = sphi %s6690_s20, %s8856_s20   ;;  %s6625_s19 = sphi %s6688_s19, %s8855_s19   ;;  %s6621_s18 = sphi %s6686_s18, %s8854_s18  }
   0xd   : > { %8752 = sst [smem:[#allocation19_spill]] %s6641_s23  ;;  %s5827_s25 = sadd.s32 4294967294, %s6641_s23  }
   0xe   : > { %p64_p0 = scmp.ne.s32.totalorder %s6625_s19, %s6621_s18  ;;  %p8696_p1 = scmp.eq.s32.totalorder %s6717_s24, 0 }
   0xf   : > { %p202_p3 = scmp.eq.s32.totalorder %s5827_s25, 2  ;;  %p5828_p5 = scmp.ge.s32.totalorder %s6641_s23, 1 }
  0x10   : > { %p6726_p4 = por %p8696_p1, %p64_p0  ;;  %p209_p7 = scmp.lt.s32.totalorder %s6641_s23, 4 }
  0x11   : > { %p6731_p6 = por %p202_p3, %p64_p0  ;;  %s6643_s29 = smov [#allocation6]  }
  0x12   : > { %s8753_s26 = scalar_select %p6726_p4, 1, 0 }
  0x13   : > { %s8754_s27 = scalar_select %p6731_p6, 1, 0 }
  0x14   : > { %p6736_p8 = pnand %p5828_p5, %p209_p7  ;;  %s227_s30 = sshll.u32 %s6643_s29, 4  ;;  %s228_s30 = int_to_ptr.vmem [resolvable:$true] %s227_s30 }
  0x15   : > { %8755 = sst [smem:[#allocation20_spill]] %s8754_s27  ;;  %s42_s7 = sadd.s32 1, %s6637_s22 }
  0x16   : > { %s8756_s28 = scalar_select %p6736_p8, 1, 0 }
  0x17   : > { %p6226_p9 = pneg %p6736_p8  ;;  %s8758_s1 = sld [smem:[#allocation57_spill]] }
  0x19   : > { %p6744_p10 = pnand %p6226_p9, %p8696_p1 }
  0x1b   : > { %s8757_s6 = scalar_select %p6744_p10, 1, 0 }
  0x1c   : > { %p6757_p12 = pneg %p6744_p10 }
  0x1d   : > { %s6403_s10 = scalar_lea.hbm %s8758_s1, 2048 }
  0x1e   : > { %p6404_p11 = scmp.ne.s32.totalorder %s8758_s1, %s6403_s10  ;;  %p6410_p3 = scmp.lt.u32.totalorder %s6403_s10, %s8758_s1 }
  0x20   : > { %p6406_p13 = pnand %p6757_p12, %p6404_p11 }
  0x22   : > { %p6407_p0 = pneg %p6406_p13 }
  0x24   : > { %p6412_p5 = pnand %p6410_p3, %p6407_p0 }
  0x26   : > { %6415 = shalt.err (!%p6412_p5)
}
  0x27   : > { %s6416_s16 = scalar_lea.vmem %s228_s30, 2048  ;;  %p6424_p2 = scmp.lt.s32.totalorder %s228_s30, %s228_s30 }
  0x28   : > { %p6417_p7 = scmp.ne.s32.totalorder %s228_s30, %s6416_s16  ;;  %p6425_p6 = scmp.lt.s32.totalorder %s6416_s16, %s6416_s16 }
  0x2a   : > { %p6419_p9 = pnand %p6417_p7, %p6757_p12  ;;  %p6426_p4 = por %p6425_p6, %p6424_p2 }
  0x2c   : > { %p6420_p1 = pneg %p6419_p9 }
  0x2e   : > { %p6427_p8 = pnand %p6426_p4, %p6420_p1 }
  0x30   : > { %6430 = shalt.err (!%p6427_p8)
}
  0x31   : > { %s8699_s17 = smov 128   ;;  %s8700_s25 = smov 8  }
  0x32   : > { %6229 = dma.hbm_to_vmem [thread:$0]  (!%p6744_p10), %s8758_s1, 2048, %s228_s30, [#allocation7], %s8699_s17, %s8699_s17, %s8700_s25  }
  0x33   : > { %p44_p1 = scmp.ge.s32.totalorder %s42_s7, 3  ;;  %s51_s9 = sadd.s32 1, %s6629_s20 }
  0x34   : > { %p58_p2 = scmp.ne.s32.totalorder %s6629_s20, %s6625_s19  ;;  %p59_p4 = scmp.eq.s32.totalorder %s6641_s23, 0 }
  0x35   : > { %s8860_s7 = smov (%p44_p1, %s42_s7), 0  ;;  %p8762_p8 = scmp.eq.s32.totalorder %s6717_s24, 2 }
  0x36   : > { %8760 = sst [smem:[#allocation21_spill]] %s8860_s7  ;;  %p6782_p6 = por %p59_p4, %p58_p2 }
  0x37   : > { %p6788_p11 = por %p8762_p8, %p58_p2  ;;  %s46_s12 = ssub.s32 %s6637_s22, %s8860_s7 }
  0x38   : > { %p6250_p13 = scmp.lt.s32.totalorder %s6641_s23, 3  ;;  %p49_p0 = scmp.eq.s32.totalorder %s46_s12, 0 }
  0x39   : > { %s8763_s11 = scalar_select %p6788_p11, 1, 0 }
  0x3a   : > { %s269_s30 = sand.u32 1, %s6641_s23   ;;  %s271_s14 = sand.u32 1, %s6629_s20  }
  0x3b   : > { %s6798_s15 = scalar_select %p49_p0, %s6629_s20, %s51_s9  }
  0x3c   : > { %s5833_s16 = sshll.u32 %s271_s14, 9  ;;  %s6060_s29 = sshll.u32 %s6637_s22, 13 }
  0x3d   : > { %8764 = sst [smem:[#allocation22_spill]] %s6798_s15  ;;  %s8765_s0 = sld [smem:[#allocation56_spill]] }
  0x3e   : > { %s273_s1 = scalar_lea.vmem [#allocation3], %s5833_s16  ;;  %p6810_p3 = pnand %p6250_p13, %p6782_p6 }
  0x3f   : > { %s281_s7 = sshll.u32 %s273_s1, 4  ;;  %s6816_s9 = scalar_lea.sflag [#allocation4], %s269_s30  ;;  %s6814_s7 = int_to_ptr.vmem [resolvable:$true] %s281_s7 }
  0x40   : > { %s8766_s12 = scalar_select %p6810_p3, 1, 0 }
  0x41   : > { %p8710_p7 = pneg %p6810_p3 }
  0x43   : > { %s6806_s25 = scalar_lea.hbm %s8765_s0, %s6060_s29  ;;  %s6436_s16 = scalar_lea.hbm %s8765_s0, 24576 }
  0x44   : > { %s6431_s17 = scalar_lea.hbm %s6806_s25, 8192  ;;  %p6437_p2 = scmp.lt.u32.totalorder %s6806_s25, %s8765_s0 }
  0x45   : > { %p6432_p5 = scmp.ne.s32.totalorder %s6806_s25, %s6431_s17  ;;  %p6438_p4 = scmp.lt.u32.totalorder %s6436_s16, %s6431_s17 }
  0x46   : > { %p6440_p8 = scmp.lt.u32.totalorder %s6431_s17, %s6806_s25 }
  0x47   : > { %p6434_p9 = pnand %p8710_p7, %p6432_p5  ;;  %p6439_p6 = por %p6438_p4, %p6437_p2 }
  0x49   : > { %p6435_p1 = pneg %p6434_p9  ;;  %p6441_p13 = por %p6440_p8, %p6439_p6 }
  0x4b   : > { %p6442_p0 = pnand %p6441_p13, %p6435_p1 }
  0x4d   : > { %6445 = shalt.err (!%p6442_p0)
}
  0x4e   : > { %s6446_s30 = scalar_lea.vmem %s6814_s7, 8192  ;;  %s6646_s1 = smov [#allocation3]  }
  0x4f   : > { %p6447_p5 = scmp.ne.s32.totalorder %s6814_s7, %s6446_s30  ;;  %s6451_s10 = sshll.u32 %s6646_s1, 4  ;;  %s6452_s10 = int_to_ptr.vmem [resolvable:$false] %s6451_s10 }
  0x50   : > { %s6453_s29 = scalar_lea.vmem %s6452_s10, 16384  ;;  %p6454_p10 = scmp.lt.s32.totalorder %s6814_s7, %s6452_s10 }
  0x51   : > { %p6449_p9 = pnand %p6447_p5, %p8710_p7  ;;  %p6455_p2 = scmp.lt.s32.totalorder %s6453_s29, %s6446_s30 }
  0x53   : > { %p6450_p11 = pneg %p6449_p9  ;;  %p6456_p4 = por %p6455_p2, %p6454_p10 }
  0x55   : > { %p6457_p6 = pnand %p6456_p4, %p6450_p11 }
  0x57   : > { %6460 = shalt.err (!%p6457_p6)
}
  0x58   : > { %s6647_s17 = smov 64   ;;  %s6648_s16 = smov 4  }
  0x59   : > { %6239 = dma.hbm_to_vmem [thread:$0]  (!%p6810_p3), %s6806_s25, 8192, %s6814_s7, %s6816_s9, %s6647_s17, %s6647_s17, %s6648_s16  }
  0x5a   : > { %s5836_s8 = sshll.u32 %s271_s14, 10  ;;  %s6649_s1 = smov [#allocation8]  }
  0x5b   : > { %s244_s0 = sshll.u32 %s6649_s1, 4  ;;  %s295_s15 = scalar_lea.vmem [#allocation11], %s5836_s8  ;;  %s245_s0 = int_to_ptr.vmem [resolvable:$true] %s244_s0 }
  0x5c   : > { %s302_s10 = sshll.u32 %s295_s15, 4  ;;  %s6461_s27 = scalar_lea.hbm %s8692_s2, 32  ;;  %s6870_s10 = int_to_ptr.vmem [resolvable:$true] %s302_s10 }
  0x5d   : > { %p6462_p10 = scmp.ne.s32.totalorder %s8692_s2, %s6461_s27  ;;  %p6468_p8 = scmp.lt.u32.totalorder %s6461_s27, %s8692_s2 }
  0x5f   : > { %p6464_p11 = pnand %p6462_p10, %p6757_p12 }
  0x61   : > { %p6465_p1 = pneg %p6464_p11 }
  0x63   : > { %p6470_p13 = pnand %p6468_p8, %p6465_p1 }
  0x65   : > { %6473 = shalt.err (!%p6470_p13)
}
  0x66   : > { %s6474_s25 = scalar_lea.vmem %s245_s0, 32  ;;  %p6482_p2 = scmp.lt.s32.totalorder %s245_s0, %s245_s0 }
  0x67   : > { %p6475_p0 = scmp.ne.s32.totalorder %s245_s0, %s6474_s25  ;;  %p6483_p4 = scmp.lt.s32.totalorder %s6474_s25, %s6474_s25 }
  0x69   : > { %p6477_p5 = pnand %p6475_p0, %p6757_p12  ;;  %p6484_p6 = por %p6483_p4, %p6482_p2 }
  0x6b   : > { %p6478_p9 = pneg %p6477_p5 }
  0x6d   : > { %p6485_p7 = pnand %p6484_p6, %p6478_p9 }
  0x6f   : > { %6488 = shalt.err (!%p6485_p7)
}
  0x70   : > { %p8767_p10 = scmp.ne.s32.totalorder %s8757_s6, 0  ;;  %s6061_s5 = sshll.u32 %s6637_s22, 14 }
  0x71   : > { %s6650_s27 = smov [#allocation9]   ;;  %s6868_s16 = scalar_lea.hbm %s8694_s4, %s6061_s5 }
  0x72   : > { %6232 = dma.hbm_to_vmem [thread:$0]  (!%p8767_p10), %s8692_s2, 32, %s245_s0, [#allocation7]  }
  0x73   : > { %s258_s14 = sshll.u32 %s6650_s27, 4  ;;  %s6489_s30 = scalar_lea.hbm %s8693_s3, 32  ;;  %s259_s14 = int_to_ptr.vmem [resolvable:$true] %s258_s14 }
  0x74   : > { %p6490_p7 = scmp.ne.s32.totalorder %s8693_s3, %s6489_s30  ;;  %p6496_p8 = scmp.lt.u32.totalorder %s6489_s30, %s8693_s3 }
  0x76   : > { %p6492_p11 = pnand %p6490_p7, %p6757_p12 }
  0x78   : > { %p6493_p1 = pneg %p6492_p11 }
  0x7a   : > { %p6498_p13 = pnand %p6496_p8, %p6493_p1 }
  0x7c   : > { %6501 = shalt.err (!%p6498_p13)
}
  0x7d   : > { %s6502_s18 = scalar_lea.vmem %s259_s14, 32  ;;  %p6510_p2 = scmp.lt.s32.totalorder %s259_s14, %s259_s14 }
  0x7e   : > { %p6503_p0 = scmp.ne.s32.totalorder %s259_s14, %s6502_s18  ;;  %p6511_p4 = scmp.lt.s32.totalorder %s6502_s18, %s6502_s18 }
  0x80   : > { %p6505_p5 = pnand %p6503_p0, %p6757_p12  ;;  %p6512_p6 = por %p6511_p4, %p6510_p2 }
  0x82   : > { %p6506_p9 = pneg %p6505_p5 }
  0x84   : > { %p6513_p3 = pnand %p6512_p6, %p6506_p9 }
  0x86   : > { %6516 = shalt.err (!%p6513_p3)
}
  0x87   : > { %6235 = dma.hbm_to_vmem [thread:$0]  (!%p8767_p10), %s8693_s3, 32, %s259_s14, [#allocation10]  }
  0x88   : > { %s6517_s27 = scalar_lea.hbm %s6868_s16, 16384  ;;  %p8768_p12 = scmp.ne.s32.totalorder %s8766_s12, 0 }
  0x89   : > { %p6518_p7 = scmp.ne.s32.totalorder %s6868_s16, %s6517_s27  ;;  %s6522_s17 = scalar_lea.hbm %s8694_s4, 49152 }
  0x8a   : > { %p8769_p11 = pneg %p8768_p12  ;;  %p6523_p3 = scmp.lt.u32.totalorder %s6868_s16, %s8694_s4 }
  0x8b   : > { %p6524_p13 = scmp.lt.u32.totalorder %s6522_s17, %s6517_s27  ;;  %p6526_p5 = scmp.lt.u32.totalorder %s6517_s27, %s6868_s16 }
  0x8c   : > { %p6520_p1 = pnand %p6518_p7, %p8769_p11 }
  0x8d   : > { %p6525_p0 = por %p6524_p13, %p6523_p3 }
  0x8e   : > { %p6521_p8 = pneg %p6520_p1 }
  0x8f   : > { %p6527_p9 = por %p6526_p5, %p6525_p0 }
  0x91   : > { %p6528_p2 = pnand %p6527_p9, %p6521_p8 }
  0x93   : > { %6531 = shalt.err (!%p6528_p2)
}
  0x94   : > { %s6532_s14 = scalar_lea.vmem %s6870_s10, 16384  ;;  %p8770_p4 = pmov %p8769_p11 }
  0x95   : > { %p6533_p10 = scmp.ne.s32.totalorder %s6870_s10, %s6532_s14  ;;  %s6651_s1 = smov [#allocation11]  }
  0x96   : > { %s6537_s30 = sshll.u32 %s6651_s1, 4  ;;  %s6538_s30 = int_to_ptr.vmem [resolvable:$false] %s6537_s30 }
  0x97   : > { %p6535_p6 = pnand %p6533_p10, %p8770_p4  ;;  %s6539_s29 = scalar_lea.vmem %s6538_s30, 32768 }
  0x98   : > { %p6540_p11 = scmp.lt.s32.totalorder %s6870_s10, %s6538_s30  ;;  %p6541_p1 = scmp.lt.s32.totalorder %s6539_s29, %s6532_s14 }
  0x99   : > { %p6536_p7 = pneg %p6535_p6 }
  0x9a   : > { %p6542_p3 = por %p6541_p1, %p6540_p11 }
  0x9c   : > { %p6543_p13 = pnand %p6542_p3, %p6536_p7 }
  0x9e   : > { %6546 = shalt.err (!%p6543_p13)
}
  0x9f   : > { %s8771_s7 = smov 8   ;;  %s8772_s0 = smov 128  }
  0xa0   : > { %6242 = dma.hbm_to_vmem [thread:$0]  (!%p8768_p12), %s6868_s16, 16384, %s6870_s10, %s6816_s9, %s8772_s0, %s8772_s0, %s8771_s7  }
  0xa1   : > { %p8773_p8 = scmp.ne.s32.totalorder %s8756_s28, 0 }
  0xa3   : > { %314 = sbr.rel (%p8773_p8) target bundleno = 744 (0x2e8), region = 40 }
  0xaa   : > { %s316_s25 = sand.u32 1, %s6717_s24   ;;  %s6921_s18 = sand.u32 1, %s6625_s19  }
  0xab   : > { %s5840_s23 = sshll.u32 %s6921_s18, 9  ;;  %s317_s5 = scalar_lea.sflag [#allocation4], %s316_s25 }
  0xac   : > { %s6924_s12 = scalar_lea.vmem [#allocation3], %s5840_s23  ;;  %p8774_p0 = scmp.ne.s32.totalorder %s8753_s26, 0 }
  0xae   : > { %6600 = dma.done.wait (%p8774_p0), %s317_s5, 8192  }
  0xaf   : > { %6602 = vsyncadd (%p8774_p0), %s317_s5, 4294959104  ;;  %p8775_p12 = scmp.eq.s32.totalorder %s6717_s24, 0 }
  0xb1   : > { %6604 = dma.done.wait (%p8775_p12), [#allocation7], 2080   ;;  %p8776_p5 = pmov %p8775_p12 }
  0xb3   : > { %6606 = vsyncadd (%p8776_p5), [#allocation7], 4294965216  ;;  %p8777_p9 = pmov %p8776_p5 }
  0xb4   : > { %p8778_p2 = pmov %p8776_p5 }
  0xb5   : > { %6608 = dma.done.wait (%p8777_p9), [#allocation10], 32  }
  0xb6   : > { %6610 = vsyncadd (%p8778_p2), [#allocation10], 4294967264  ;;  %s5844_s28 = sshll.u32 %s6921_s18, 10 }
  0xb7   : > { %s6941_s9 = scalar_lea.vmem [#allocation11], %s5844_s28 }
  0xb8   : > { %6612 = dma.done.wait (%p8774_p0), %s317_s5, 16384  }
  0xb9   : > { %6614 = vsyncadd (%p8774_p0), %s317_s5, 4294950912  ;;  %v8713_v0 = vmov 0   ;;  %v3744_v1 = vld [vmem:[%s6941_s9 + $0x10] sm:$0xff]  ;;  %v3742_v2 = vld [vmem:[%s6941_s9] sm:$0xff]  ;;  %s7363_s24 = scalar_lea.vmem [#allocation12], %s5844_s28  ;;  %s6191_s26 = sshll.u32 %s6633_s21, 14 }
  0xba   : > { %6314 = vset.pattern.permute.xlu1 %v8713_v0  ;;  %6313 = vset.pattern.permute.xlu0 %v8713_v0  ;;  %v6315_v3 = vld [vmem:[#allocation6 + $0x4] ss:$8 sps:$4 sm:$0xff]   ;;  %v6317_v4 = vld [vmem:[#allocation6] ss:$8 sps:$4 sm:$0xff]   ;;  %v6318_v7 = vld [vmem:[#allocation6 + $0x14] ss:$8 sps:$4 sm:$0xff]  }
  0xbb   : > { %1538 = vmatprep.mubr.bf16.mxu0 %v8713_v0  ;;  %1858 = vmatprep.mubr.bf16.mxu1 %v8713_v0  ;;  %v3745_v5 = vld [vmem:[%s6941_s9 + $0x18] sm:$0xff]  ;;  %v3743_v6 = vld [vmem:[%s6941_s9 + $0x8] sm:$0xff]  ;;  %v3746_v10 = vld [vmem:[%s6941_s9 + $0x20] sm:$0xff]  ;;  %s5679_s10 = sshll.u32 %s7363_s24, 4  ;;  %s8846_s13 = sld [smem:[#allocation58_spill]]  ;;  %s8640_s10 = int_to_ptr.vmem [resolvable:$true] %s5679_s10 }
  0xbc   : > { %3882 = vperm.xlu1 %6314, %v3744_v1   ;;  %3872 = vperm.xlu0 %6313, %v3742_v2   ;;  %v6320_v8 = vld [vmem:[#allocation6 + $0x10] ss:$8 sps:$4 sm:$0xff]   ;;  %v6321_v11 = vld [vmem:[#allocation6 + $0x24] ss:$8 sps:$4 sm:$0xff]   ;;  %v6323_v12 = vld [vmem:[#allocation6 + $0x20] ss:$8 sps:$4 sm:$0xff]  }
  0xbd   : > { %1506 = vmatprep.subr.bf16.mxu0 %v6315_v3  ;;  %6192 = vmatprep.subr.bf16.mxu1 %v6315_v3  ;;  %v3747_v9 = vld [vmem:[%s6941_s9 + $0x28] sm:$0xff]  ;;  %v3749_v13 = vld [vmem:[%s6941_s9 + $0x38] sm:$0xff]  ;;  %v3748_v14 = vld [vmem:[%s6941_s9 + $0x30] sm:$0xff]  ;;  %s5663_s21 = scalar_lea.sflag [#allocation5], %s6921_s18  ;;  %s6547_s17 = scalar_lea.vmem %s8640_s10, 16384 }
  0xbe   : > { %1507 = vmatpush1.bf16.msra.mxu0 %v6317_v4  ;;  %6200 = vmatpush1.bf16.msra.mxu1 %v6317_v4  ;;  %v6324_v15 = vld [vmem:[#allocation6 + $0x34] ss:$8 sps:$4 sm:$0xff]   ;;  %v6326_v16 = vld [vmem:[#allocation6 + $0x30] ss:$8 sps:$4 sm:$0xff]   ;;  %v3750_v18 = vld [vmem:[%s6941_s9 + $0x40] sm:$0xff]  ;;  %p6548_p10 = scmp.ne.s32.totalorder %s8640_s10, %s6547_s17  ;;  %p8847_p4 = scmp.ne.s32.totalorder %s8763_s11, 0 }
  0xbf   : > { %1508 = vmatprep.subr.bf16.mxu0 %v6318_v7  ;;  %6193 = vmatprep.subr.bf16.mxu1 %v6318_v7  ;;  %v3751_v17 = vld [vmem:[%s6941_s9 + $0x48] sm:$0xff]  ;;  %v6329_v20 = vld [vmem:[#allocation6 + $0x40] ss:$8 sps:$4 sm:$0xff]   ;;  %v3752_v22 = vld [vmem:[%s6941_s9 + $0x50] sm:$0xff]  ;;  %s6653_s6 = smov [#allocation12]  }
  0xc0   : > { %3887 = vperm.xlu1 %6314, %v3745_v5   ;;  %3877 = vperm.xlu0 %6313, %v3743_v6   ;;  %v6327_v19 = vld [vmem:[#allocation6 + $0x44] ss:$8 sps:$4 sm:$0xff]   ;;  %v3753_v21 = vld [vmem:[%s6941_s9 + $0x58] sm:$0xff]  ;;  %v6332_v24 = vld [vmem:[#allocation6 + $0x50] ss:$8 sps:$4 sm:$0xff]   ;;  %p6549_p6 = pnand %p6548_p10, %p8847_p4  ;;  %s6551_s8 = sshll.u32 %s6653_s6, 4  ;;  %s6552_s8 = int_to_ptr.vmem [resolvable:$false] %s6551_s8 }
  0xc1   : > { %v6330_v23 = vld [vmem:[#allocation6 + $0x54] ss:$8 sps:$4 sm:$0xff]   ;;  %v3755_v25 = vld [vmem:[%s6941_s9 + $0x68] sm:$0xff]  ;;  %v3754_v26 = vld [vmem:[%s6941_s9 + $0x60] sm:$0xff]  ;;  %s8638_s15 = scalar_lea.hbm %s8846_s13, %s6191_s26  ;;  %s6553_s14 = scalar_lea.vmem %s6552_s8, 32768 }
  0xc2   : > { %1509 = vmatpush1.bf16.msra.mxu0 %v6320_v8  ;;  %6201 = vmatpush1.bf16.msra.mxu1 %v6320_v8  ;;  %v6333_v27 = vld [vmem:[#allocation6 + $0x64] ss:$8 sps:$4 sm:$0xff]   ;;  %v6335_v28 = vld [vmem:[#allocation6 + $0x60] ss:$8 sps:$4 sm:$0xff]   ;;  %v3756_v30 = vld [vmem:[%s6941_s9 + $0x70] sm:$0xff]  ;;  %p6550_p7 = pneg %p6549_p6  ;;  %p6554_p11 = scmp.lt.s32.totalorder %s8640_s10, %s6552_s8 }
  0xc3   : > { %1510 = vmatprep.subr.bf16.mxu0 %v6321_v11  ;;  %6194 = vmatprep.subr.bf16.mxu1 %v6321_v11  ;;  %v3757_v29 = vld [vmem:[%s6941_s9 + $0x78] sm:$0xff]  ;;  %v6338_v32 = vld [vmem:[#allocation6 + $0x70] ss:$8 sps:$4 sm:$0xff]   ;;  %v3758_v34 = vld [vmem:[%s6941_s9 + $0x80] sm:$0xff]  ;;  %p6555_p1 = scmp.lt.s32.totalorder %s6553_s14, %s6547_s17 }
  0xc4   : > { %3897 = vperm.xlu1 %6314, %v3747_v9   ;;  %3892 = vperm.xlu0 %6313, %v3746_v10   ;;  %v6336_v31 = vld [vmem:[#allocation6 + $0x74] ss:$8 sps:$4 sm:$0xff]   ;;  %v3759_v33 = vld [vmem:[%s6941_s9 + $0x88] sm:$0xff]  ;;  %v6339_v35 = vld [vmem:[%s6924_s12] sm:$0xff]  }
  0xc5   : > { %v6340_v36 = vld [vmem:[%s6924_s12 + $0x100] sm:$0xff]   ;;  %v3760_v38 = vld [vmem:[%s6941_s9 + $0x90] sm:$0xff]  ;;  %v3763_v39 = vld [vmem:[%s6941_s9 + $0xa8] sm:$0xff]  ;;  %p6556_p3 = por %p6555_p1, %p6554_p11 }
  0xc6   : > { %1511 = vmatpush1.bf16.msra.mxu0 %v6323_v12  ;;  %6202 = vmatpush1.bf16.msra.mxu1 %v6323_v12  ;;  %v3761_v37 = vld [vmem:[%s6941_s9 + $0x98] sm:$0xff]  ;;  %v3762_v40 = vld [vmem:[%s6941_s9 + $0xa0] sm:$0xff]  ;;  %v3764_v44 = vld [vmem:[%s6941_s9 + $0xb0] sm:$0xff] }
  0xc7   : > { %1512 = vmatprep.subr.bf16.mxu0 %v6324_v15  ;;  %6195 = vmatprep.subr.bf16.mxu1 %v6324_v15  ;;  %v6341_v41 = vld [vmem:[%s6924_s12 + $0x8] sm:$0xff]   ;;  %v3765_v43 = vld [vmem:[%s6941_s9 + $0xb8] sm:$0xff]  ;;  %v6343_v47 = vld [vmem:[%s6924_s12 + $0x10] sm:$0xff]   ;;  %p6557_p13 = pnand %p6556_p3, %p6550_p7 }
  0xc8   : > { %3907 = vperm.xlu1 %6314, %v3749_v13   ;;  %3902 = vperm.xlu0 %6313, %v3748_v14   ;;  %v6342_v42 = vld [vmem:[%s6924_s12 + $0x108] sm:$0xff]   ;;  %v6344_v48 = vld [vmem:[%s6924_s12 + $0x110] sm:$0xff]   ;;  %v3769_v49 = vld [vmem:[%s6941_s9 + $0xd8] sm:$0xff] }
  0xc9   : > { %v3767_v45 = vld [vmem:[%s6941_s9 + $0xc8] sm:$0xff]  ;;  %v3766_v46 = vld [vmem:[%s6941_s9 + $0xc0] sm:$0xff]  ;;  %v3768_v50 = vld [vmem:[%s6941_s9 + $0xd0] sm:$0xff] }
  0xca   : > { %1513 = vmatpush1.bf16.msra.mxu0 %v6326_v16  ;;  %6203 = vmatpush1.bf16.msra.mxu1 %v6326_v16  ;;  %v3771_v51 = vld [vmem:[%s6941_s9 + $0xe8] sm:$0xff]  ;;  %v3770_v52 = vld [vmem:[%s6941_s9 + $0xe0] sm:$0xff]  ;;  %v6345_v53 = vld [vmem:[%s6924_s12 + $0x18] sm:$0xff]  }
  0xcb   : > { %1514 = vmatprep.subr.bf16.mxu0 %v6327_v19  ;;  %6196 = vmatprep.subr.bf16.mxu1 %v6327_v19  ;;  %v6346_v54 = vld [vmem:[%s6924_s12 + $0x118] sm:$0xff]   ;;  %v3775_v57 = vld [vmem:[%s6941_s9 + $0x108] sm:$0xff]  ;;  %v3774_v58 = vld [vmem:[%s6941_s9 + $0x100] sm:$0xff] }
  0xcc   : > { %3917 = vperm.xlu1 %6314, %v3751_v17   ;;  %3912 = vperm.xlu0 %6313, %v3750_v18   ;;  %v3773_v55 = vld [vmem:[%s6941_s9 + $0xf8] sm:$0xff]  ;;  %v3772_v56 = vld [vmem:[%s6941_s9 + $0xf0] sm:$0xff]  ;;  %v3779_v63 = vld [vmem:[%s6941_s9 + $0x128] sm:$0xff] }
  0xcd   : > { %v6347_v59 = vld [vmem:[%s6924_s12 + $0x20] sm:$0xff]   ;;  %v3776_v62 = vld [vmem:[%s6941_s9 + $0x110] sm:$0xff]  ;;  %v6349_v2 = vld [vmem:[%s6924_s12 + $0x28] sm:$0xff]  }
  0xce   : > { %1515 = vmatpush1.bf16.msra.mxu0 %v6329_v20  ;;  %6204 = vmatpush1.bf16.msra.mxu1 %v6329_v20  ;;  %v6348_v60 = vld [vmem:[%s6924_s12 + $0x120] sm:$0xff]   ;;  %v6350_v3 = vld [vmem:[%s6924_s12 + $0x128] sm:$0xff]   ;;  %v3780_v5 = vld [vmem:[%s6941_s9 + $0x130] sm:$0xff] }
  0xcf   : > { %1516 = vmatprep.subr.bf16.mxu0 %v6330_v23  ;;  %6197 = vmatprep.subr.bf16.mxu1 %v6330_v23  ;;  %v3777_v61 = vld [vmem:[%s6941_s9 + $0x118] sm:$0xff]  ;;  %v3778_v1 = vld [vmem:[%s6941_s9 + $0x120] sm:$0xff]  ;;  %v3783_v6 = vld [vmem:[%s6941_s9 + $0x148] sm:$0xff] }
  0xd0   : > { %3927 = vperm.xlu1 %6314, %v3753_v21   ;;  %3922 = vperm.xlu0 %6313, %v3752_v22   ;;  %v3781_v4 = vld [vmem:[%s6941_s9 + $0x138] sm:$0xff]  ;;  %v3782_v7 = vld [vmem:[%s6941_s9 + $0x140] sm:$0xff]  ;;  %v6351_v8 = vld [vmem:[%s6924_s12 + $0x30] sm:$0xff]  }
  0xd1   : > { %v6352_v9 = vld [vmem:[%s6924_s12 + $0x130] sm:$0xff]   ;;  %v3785_v10 = vld [vmem:[%s6941_s9 + $0x158] sm:$0xff]  ;;  %v3786_v13 = vld [vmem:[%s6941_s9 + $0x160] sm:$0xff] }
  0xd2   : > { %1517 = vmatpush1.bf16.msra.mxu0 %v6332_v24  ;;  %6205 = vmatpush1.bf16.msra.mxu1 %v6332_v24  ;;  %v3784_v11 = vld [vmem:[%s6941_s9 + $0x150] sm:$0xff]  ;;  %v3787_v12 = vld [vmem:[%s6941_s9 + $0x168] sm:$0xff]  ;;  %v3789_v16 = vld [vmem:[%s6941_s9 + $0x178] sm:$0xff] }
  0xd3   : > { %1518 = vmatprep.subr.bf16.mxu0 %v6333_v27  ;;  %6198 = vmatprep.subr.bf16.mxu1 %v6333_v27  ;;  %v6353_v14 = vld [vmem:[%s6924_s12 + $0x38] sm:$0xff]   ;;  %v3791_v18 = vld [vmem:[%s6941_s9 + $0x188] sm:$0xff]  ;;  %v3790_v19 = vld [vmem:[%s6941_s9 + $0x180] sm:$0xff] }
  0xd4   : > { %3937 = vperm.xlu1 %6314, %v3755_v25   ;;  %3932 = vperm.xlu0 %6313, %v3754_v26   ;;  %v6354_v15 = vld [vmem:[%s6924_s12 + $0x138] sm:$0xff]   ;;  %v6355_v20 = vld [vmem:[%s6924_s12 + $0x40] sm:$0xff]   ;;  %v3795_v24 = vld [vmem:[%s6941_s9 + $0x1a8] sm:$0xff] }
  0xd5   : > { %v3788_v17 = vld [vmem:[%s6941_s9 + $0x170] sm:$0xff]  ;;  %v6356_v21 = vld [vmem:[%s6924_s12 + $0x140] sm:$0xff]   ;;  %v6357_v26 = vld [vmem:[%s6924_s12 + $0x48] sm:$0xff]  }
  0xd6   : > { %1519 = vmatpush1.bf16.msra.mxu0 %v6335_v28  ;;  %6206 = vmatpush1.bf16.msra.mxu1 %v6335_v28  ;;  %v3793_v22 = vld [vmem:[%s6941_s9 + $0x198] sm:$0xff]  ;;  %v3792_v23 = vld [vmem:[%s6941_s9 + $0x190] sm:$0xff]  ;;  %v3794_v25 = vld [vmem:[%s6941_s9 + $0x1a0] sm:$0xff] }
  0xd7   : > { %1520 = vmatprep.subr.bf16.mxu0 %v6336_v31  ;;  %6199 = vmatprep.subr.bf16.mxu1 %v6336_v31  ;;  %v6358_v27 = vld [vmem:[%s6924_s12 + $0x148] sm:$0xff]   ;;  %v3797_v28 = vld [vmem:[%s6941_s9 + $0x1b8] sm:$0xff] }
  0xd8   : > { %3947 = vperm.xlu1 %6314, %v3757_v29   ;;  %3942 = vperm.xlu0 %6313, %v3756_v30   ;;  %v3796_v29 = vld [vmem:[%s6941_s9 + $0x1b0] sm:$0xff]  ;;  %v3799_v30 = vld [vmem:[%s6941_s9 + $0x1c8] sm:$0xff]  ;;  %v3798_v31 = vld [vmem:[%s6941_s9 + $0x1c0] sm:$0xff] }
  0xda   : > { %1521 = vmatpush1.bf16.msra.mxu0 %v6338_v32  ;;  %6207 = vmatpush1.bf16.msra.mxu1 %v6338_v32  ;;  %v6359_v32 = vld [vmem:[%s6924_s12 + $0x50] sm:$0xff]  }
  0xdc   : > { %3957 = vperm.xlu1 %6314, %v3759_v33   ;;  %3952 = vperm.xlu0 %6313, %v3758_v34   ;;  %v6360_v33 = vld [vmem:[%s6924_s12 + $0x150] sm:$0xff]   ;;  %v3801_v34 = vld [vmem:[%s6941_s9 + $0x1d8] sm:$0xff] }
  0xdd   : > { %1539 = vmatmul.mubr.bf16.vlgmr.msra.gmra.mrb[0].mxu0 %v6339_v35  ;;  %1859 = vmatmul.mubr.bf16.vlgmr.msra.gmra.mrb[0].mxu1 %v6340_v36  ;;  %v3800_v35 = vld [vmem:[%s6941_s9 + $0x1d0] sm:$0xff]  ;;  %v3803_v36 = vld [vmem:[%s6941_s9 + $0x1e8] sm:$0xff] }
  0xde   : > { %1548 = vmatprep.mubr.bf16.mxu0 %v8713_v0  ;;  %1868 = vmatprep.mubr.bf16.mxu1 %v8713_v0 }
  0xe0   : > { %3967 = vperm.xlu1 %6314, %v3761_v37   ;;  %3962 = vperm.xlu0 %6313, %v3760_v38   ;;  %v3802_v37 = vld [vmem:[%s6941_s9 + $0x1e0] sm:$0xff]  ;;  %v6361_v38 = vld [vmem:[%s6924_s12 + $0x58] sm:$0xff]  }
  0xe4   : > { %3977 = vperm.xlu1 %6314, %v3763_v39   ;;  %3972 = vperm.xlu0 %6313, %v3762_v40   ;;  %v6362_v39 = vld [vmem:[%s6924_s12 + $0x158] sm:$0xff]  }
  0xe5   : > { %1549 = vmatmul.mubr.bf16.gmra.mrb[4].mxu0 %v6341_v41  ;;  %1869 = vmatmul.mubr.bf16.gmra.mrb[4].mxu1 %v6342_v42  ;;  %v3805_v40 = vld [vmem:[%s6941_s9 + $0x1f8] sm:$0xff]  ;;  %v3804_v41 = vld [vmem:[%s6941_s9 + $0x1f0] sm:$0xff]  ;;  %v3807_v42 = vld [vmem:[%s6941_s9 + $0x208] sm:$0xff] }
  0xe6   : > { %1558 = vmatprep.mubr.bf16.mxu0 %v8713_v0  ;;  %1878 = vmatprep.mubr.bf16.mxu1 %v8713_v0 }
  0xe8   : > { %3987 = vperm.xlu1 %6314, %v3765_v43   ;;  %3982 = vperm.xlu0 %6313, %v3764_v44   ;;  %v3806_v43 = vld [vmem:[%s6941_s9 + $0x200] sm:$0xff] }
  0xe9   : > { %v6363_v44 = vld [vmem:[%s6924_s12 + $0x60] sm:$0xff]  }
  0xec   : > { %3997 = vperm.xlu1 %6314, %v3767_v45   ;;  %3992 = vperm.xlu0 %6313, %v3766_v46   ;;  %v6364_v45 = vld [vmem:[%s6924_s12 + $0x160] sm:$0xff]  }
  0xed   : > { %1559 = vmatmul.mubr.bf16.gmra.mrb[8].mxu0 %v6343_v47  ;;  %1879 = vmatmul.mubr.bf16.gmra.mrb[8].mxu1 %v6344_v48  ;;  %v3809_v48 = vld [vmem:[%s6941_s9 + $0x218] sm:$0xff] }
  0xee   : > { %1568 = vmatprep.mubr.bf16.mxu0 %v8713_v0  ;;  %1888 = vmatprep.mubr.bf16.mxu1 %v8713_v0 }
  0xf0   : > { %4007 = vperm.xlu1 %6314, %v3769_v49   ;;  %4002 = vperm.xlu0 %6313, %v3768_v50   ;;  %v3808_v49 = vld [vmem:[%s6941_s9 + $0x210] sm:$0xff] }
  0xf4   : > { %4017 = vperm.xlu1 %6314, %v3771_v51   ;;  %4012 = vperm.xlu0 %6313, %v3770_v52   ;;  %v3811_v52 = vld [vmem:[%s6941_s9 + $0x228] sm:$0xff] }
  0xf5   : > { %1569 = vmatmul.mubr.bf16.gmra.mrb[12].mxu0 %v6345_v53  ;;  %1889 = vmatmul.mubr.bf16.gmra.mrb[12].mxu1 %v6346_v54  ;;  %v3810_v53 = vld [vmem:[%s6941_s9 + $0x220] sm:$0xff] }
  0xf6   : > { %1578 = vmatprep.mubr.bf16.mxu0 %v8713_v0  ;;  %1898 = vmatprep.mubr.bf16.mxu1 %v8713_v0  ;;  %v6365_v54 = vld [vmem:[%s6924_s12 + $0x68] sm:$0xff]  }
  0xf8   : > { %4027 = vperm.xlu1 %6314, %v3773_v55   ;;  %4022 = vperm.xlu0 %6313, %v3772_v56   ;;  %v6366_v55 = vld [vmem:[%s6924_s12 + $0x168] sm:$0xff]  }
  0xfc   : > { %4037 = vperm.xlu1 %6314, %v3775_v57   ;;  %4032 = vperm.xlu0 %6313, %v3774_v58   ;;  %v3813_v58 = vld [vmem:[%s6941_s9 + $0x238] sm:$0xff] }
  0xfd   : > { %1579 = vmatmul.mubr.bf16.gmra.mrb[16].mxu0 %v6347_v59  ;;  %1899 = vmatmul.mubr.bf16.gmra.mrb[16].mxu1 %v6348_v60  ;;  %v3812_v59 = vld [vmem:[%s6941_s9 + $0x230] sm:$0xff] }
  0xfe   : > { %1588 = vmatprep.mubr.bf16.mxu0 %v8713_v0  ;;  %1908 = vmatprep.mubr.bf16.mxu1 %v8713_v0 }
 0x100   : > { %4047 = vperm.xlu1 %6314, %v3777_v61   ;;  %4042 = vperm.xlu0 %6313, %v3776_v62   ;;  %v3815_v62 = vld [vmem:[%s6941_s9 + $0x248] sm:$0xff] }
 0x104   : > { %4057 = vperm.xlu1 %6314, %v3779_v63   ;;  %4052 = vperm.xlu0 %6313, %v3778_v1   ;;  %v3814_v63 = vld [vmem:[%s6941_s9 + $0x240] sm:$0xff]  ;;  %v6367_v1 = vld [vmem:[%s6924_s12 + $0x70] sm:$0xff]  }
 0x105   : > { %1589 = vmatmul.mubr.bf16.gmra.mrb[20].mxu0 %v6349_v2  ;;  %1909 = vmatmul.mubr.bf16.gmra.mrb[20].mxu1 %v6350_v3  ;;  %v6368_v2 = vld [vmem:[%s6924_s12 + $0x170] sm:$0xff]  }
 0x106   : > { %1598 = vmatprep.mubr.bf16.mxu0 %v8713_v0  ;;  %1918 = vmatprep.mubr.bf16.mxu1 %v8713_v0 }
 0x108   : > { %4067 = vperm.xlu1 %6314, %v3781_v4   ;;  %4062 = vperm.xlu0 %6313, %v3780_v5   ;;  %v3817_v5 = vld [vmem:[%s6941_s9 + $0x258] sm:$0xff] }
 0x10c   : > { %4077 = vperm.xlu1 %6314, %v3783_v6   ;;  %4072 = vperm.xlu0 %6313, %v3782_v7   ;;  %v3816_v6 = vld [vmem:[%s6941_s9 + $0x250] sm:$0xff] }
 0x10d   : > { %1599 = vmatmul.mubr.bf16.gmra.mrb[24].mxu0 %v6351_v8  ;;  %1919 = vmatmul.mubr.bf16.gmra.mrb[24].mxu1 %v6352_v9  ;;  %v3819_v9 = vld [vmem:[%s6941_s9 + $0x268] sm:$0xff] }
 0x10e   : > { %1608 = vmatprep.mubr.bf16.mxu0 %v8713_v0  ;;  %1928 = vmatprep.mubr.bf16.mxu1 %v8713_v0 }
 0x110   : > { %4087 = vperm.xlu1 %6314, %v3785_v10   ;;  %4082 = vperm.xlu0 %6313, %v3784_v11   ;;  %v3818_v10 = vld [vmem:[%s6941_s9 + $0x260] sm:$0xff]  ;;  %v6369_v11 = vld [vmem:[%s6924_s12 + $0x78] sm:$0xff]  }
 0x114   : > { %4097 = vperm.xlu1 %6314, %v3787_v12   ;;  %4092 = vperm.xlu0 %6313, %v3786_v13   ;;  %v6370_v12 = vld [vmem:[%s6924_s12 + $0x178] sm:$0xff]  }
 0x115   : > { %1609 = vmatmul.mubr.bf16.gmra.mrb[28].mxu0 %v6353_v14  ;;  %1929 = vmatmul.mubr.bf16.gmra.mrb[28].mxu1 %v6354_v15  ;;  %v3821_v15 = vld [vmem:[%s6941_s9 + $0x278] sm:$0xff] }
 0x116   : > { %1618 = vmatprep.mubr.bf16.mxu0 %v8713_v0  ;;  %1938 = vmatprep.mubr.bf16.mxu1 %v8713_v0 }
 0x118   : > { %4107 = vperm.xlu1 %6314, %v3789_v16   ;;  %4102 = vperm.xlu0 %6313, %v3788_v17   ;;  %v3820_v16 = vld [vmem:[%s6941_s9 + $0x270] sm:$0xff] }
 0x11c   : > { %4117 = vperm.xlu1 %6314, %v3791_v18   ;;  %4112 = vperm.xlu0 %6313, %v3790_v19   ;;  %v3823_v19 = vld [vmem:[%s6941_s9 + $0x288] sm:$0xff] }
 0x11d   : > { %1619 = vmatmul.mubr.bf16.gmra.mrb[32].mxu0 %v6355_v20  ;;  %1939 = vmatmul.mubr.bf16.gmra.mrb[32].mxu1 %v6356_v21  ;;  %v3822_v20 = vld [vmem:[%s6941_s9 + $0x280] sm:$0xff] }
 0x11e   : > { %1628 = vmatprep.mubr.bf16.mxu0 %v8713_v0  ;;  %1948 = vmatprep.mubr.bf16.mxu1 %v8713_v0  ;;  %v6371_v21 = vld [vmem:[%s6924_s12 + $0x80] sm:$0xff]  }
 0x120   : > { %4127 = vperm.xlu1 %6314, %v3793_v22   ;;  %4122 = vperm.xlu0 %6313, %v3792_v23   ;;  %v6372_v22 = vld [vmem:[%s6924_s12 + $0x180] sm:$0xff]  }
 0x124   : > { %4137 = vperm.xlu1 %6314, %v3795_v24   ;;  %4132 = vperm.xlu0 %6313, %v3794_v25   ;;  %v3825_v25 = vld [vmem:[%s6941_s9 + $0x298] sm:$0xff] }
 0x125   : > { %1629 = vmatmul.mubr.bf16.gmra.mrb[36].mxu0 %v6357_v26  ;;  %1949 = vmatmul.mubr.bf16.gmra.mrb[36].mxu1 %v6358_v27  ;;  %v3824_v26 = vld [vmem:[%s6941_s9 + $0x290] sm:$0xff] }
 0x126   : > { %1638 = vmatprep.mubr.bf16.mxu0 %v8713_v0  ;;  %1958 = vmatprep.mubr.bf16.mxu1 %v8713_v0 }
 0x128   : > { %4147 = vperm.xlu1 %6314, %v3797_v28   ;;  %4142 = vperm.xlu0 %6313, %v3796_v29   ;;  %v3827_v29 = vld [vmem:[%s6941_s9 + $0x2a8] sm:$0xff] }
 0x12c   : > { %4157 = vperm.xlu1 %6314, %v3799_v30   ;;  %4152 = vperm.xlu0 %6313, %v3798_v31   ;;  %v3826_v30 = vld [vmem:[%s6941_s9 + $0x2a0] sm:$0xff] }
 0x12d   : > { %1639 = vmatmul.mubr.bf16.gmra.mrb[40].mxu0 %v6359_v32  ;;  %1959 = vmatmul.mubr.bf16.gmra.mrb[40].mxu1 %v6360_v33  ;;  %v6373_v31 = vld [vmem:[%s6924_s12 + $0x88] sm:$0xff]  }
 0x12e   : > { %1648 = vmatprep.mubr.bf16.mxu0 %v8713_v0  ;;  %1968 = vmatprep.mubr.bf16.mxu1 %v8713_v0  ;;  %v6374_v32 = vld [vmem:[%s6924_s12 + $0x188] sm:$0xff]  }
 0x130   : > { %4167 = vperm.xlu1 %6314, %v3801_v34   ;;  %4162 = vperm.xlu0 %6313, %v3800_v35   ;;  %v3829_v35 = vld [vmem:[%s6941_s9 + $0x2b8] sm:$0xff] }
 0x134   : > { %4177 = vperm.xlu1 %6314, %v3803_v36   ;;  %4172 = vperm.xlu0 %6313, %v3802_v37   ;;  %v3828_v36 = vld [vmem:[%s6941_s9 + $0x2b0] sm:$0xff] }
 0x135   : > { %1649 = vmatmul.mubr.bf16.gmra.mrb[44].mxu0 %v6361_v38  ;;  %1969 = vmatmul.mubr.bf16.gmra.mrb[44].mxu1 %v6362_v39  ;;  %v3831_v39 = vld [vmem:[%s6941_s9 + $0x2c8] sm:$0xff] }
 0x136   : > { %1658 = vmatprep.mubr.bf16.mxu0 %v8713_v0  ;;  %1978 = vmatprep.mubr.bf16.mxu1 %v8713_v0 }
 0x138   : > { %4187 = vperm.xlu1 %6314, %v3805_v40   ;;  %4182 = vperm.xlu0 %6313, %v3804_v41   ;;  %v3830_v40 = vld [vmem:[%s6941_s9 + $0x2c0] sm:$0xff]  ;;  %v6375_v41 = vld [vmem:[%s6924_s12 + $0x90] sm:$0xff]  }
 0x13b   : > { %v7067_v46 = vpop.permute.xlu1 %3882  ;;  %v7069_v47 = vpop.permute.xlu0 %3872 }
 0x13c   : > { %4197 = vperm.xlu1 %6314, %v3807_v42   ;;  %4192 = vperm.xlu0 %6313, %v3806_v43   ;;  %v6376_v42 = vld [vmem:[%s6924_s12 + $0x190] sm:$0xff]  }
 0x13d   : > { %1659 = vmatmul.mubr.bf16.gmra.mrb[48].mxu0 %v6363_v44  ;;  %1979 = vmatmul.mubr.bf16.gmra.mrb[48].mxu1 %v6364_v45  ;;  %v3833_v45 = vld [vmem:[%s6941_s9 + $0x2d8] sm:$0xff] }
 0x13e   : > { %1668 = vmatprep.mubr.bf16.mxu0 %v8713_v0  ;;  %1988 = vmatprep.mubr.bf16.mxu1 %v8713_v0 }
 0x13f   : > { %v7073_v50 = vpop.permute.xlu1 %3887  ;;  %v7075_v51 = vpop.permute.xlu0 %3877 }
 0x140   : > { %4207 = vperm.xlu1 %6314, %v3809_v48   ;;  %4202 = vperm.xlu0 %6313, %v3808_v49   ;;  %v3832_v48 = vld [vmem:[%s6941_s9 + $0x2d0] sm:$0xff] }
 0x143   : > { %v7083_v56 = vpop.permute.xlu1 %3897  ;;  %v7085_v57 = vpop.permute.xlu0 %3892 }
 0x144   : > { %4217 = vperm.xlu1 %6314, %v3811_v52   ;;  %4212 = vperm.xlu0 %6313, %v3810_v53   ;;  %v3835_v53 = vld [vmem:[%s6941_s9 + $0x2e8] sm:$0xff] }
 0x145   : > { %1669 = vmatmul.mubr.bf16.gmra.mrb[52].mxu0 %v6365_v54  ;;  %1989 = vmatmul.mubr.bf16.gmra.mrb[52].mxu1 %v6366_v55  ;;  %v3834_v54 = vld [vmem:[%s6941_s9 + $0x2e0] sm:$0xff]  ;;  %v6377_v55 = vld [vmem:[%s6924_s12 + $0x98] sm:$0xff]  }
 0x146   : > { %1678 = vmatprep.mubr.bf16.mxu0 %v8713_v0  ;;  %1998 = vmatprep.mubr.bf16.mxu1 %v8713_v0 }
 0x147   : > { %v7089_v60 = vpop.permute.xlu1 %3907  ;;  %v7091_v61 = vpop.permute.xlu0 %3902 }
 0x148   : > { %4227 = vperm.xlu1 %6314, %v3813_v58   ;;  %4222 = vperm.xlu0 %6313, %v3812_v59   ;;  %v6378_v58 = vld [vmem:[%s6924_s12 + $0x198] sm:$0xff]  }
 0x14b   : > { %v7099_v3 = vpop.permute.xlu1 %3917  ;;  %v7101_v4 = vpop.permute.xlu0 %3912 }
 0x14c   : > { %4237 = vperm.xlu1 %6314, %v3815_v62   ;;  %4232 = vperm.xlu0 %6313, %v3814_v63   ;;  %v3837_v63 = vld [vmem:[%s6941_s9 + $0x2f8] sm:$0xff] }
 0x14d   : > { %1679 = vmatmul.mubr.bf16.gmra.mrb[56].mxu0 %v6367_v1  ;;  %1999 = vmatmul.mubr.bf16.gmra.mrb[56].mxu1 %v6368_v2  ;;  %v3836_v1 = vld [vmem:[%s6941_s9 + $0x2f0] sm:$0xff] }
 0x14e   : > { %1688 = vmatprep.mubr.bf16.mxu0 %v8713_v0  ;;  %2008 = vmatprep.mubr.bf16.mxu1 %v8713_v0 }
 0x14f   : > { %v7105_v7 = vpop.permute.xlu1 %3927  ;;  %v7107_v8 = vpop.permute.xlu0 %3922 }
 0x150   : > { %4247 = vperm.xlu1 %6314, %v3817_v5   ;;  %4242 = vperm.xlu0 %6313, %v3816_v6   ;;  %v3839_v6 = vld [vmem:[%s6941_s9 + $0x308] sm:$0xff] }
 0x153   : > { %v7115_v13 = vpop.permute.xlu1 %3937  ;;  %v7117_v14 = vpop.permute.xlu0 %3932 }
 0x154   : > { %4257 = vperm.xlu1 %6314, %v3819_v9   ;;  %4252 = vperm.xlu0 %6313, %v3818_v10   ;;  %v3838_v9 = vld [vmem:[%s6941_s9 + $0x300] sm:$0xff] }
 0x155   : > { %1689 = vmatmul.mubr.bf16.gmra.mrb[60].mxu0 %v6369_v11  ;;  %2009 = vmatmul.mubr.bf16.gmra.mrb[60].mxu1 %v6370_v12  ;;  %v6379_v10 = vld [vmem:[%s6924_s12 + $0xa0] sm:$0xff]  }
 0x156   : > { %1698 = vmatprep.mubr.bf16.mxu0 %v8713_v0  ;;  %2018 = vmatprep.mubr.bf16.mxu1 %v8713_v0  ;;  %v6380_v11 = vld [vmem:[%s6924_s12 + $0x1a0] sm:$0xff]  }
 0x157   : > { %v7121_v17 = vpop.permute.xlu1 %3947  ;;  %v7123_v18 = vpop.permute.xlu0 %3942 }
 0x158   : > { %4267 = vperm.xlu1 %6314, %v3821_v15   ;;  %4262 = vperm.xlu0 %6313, %v3820_v16   ;;  %v3841_v16 = vld [vmem:[%s6941_s9 + $0x318] sm:$0xff] }
 0x15b   : > { %v7131_v23 = vpop.permute.xlu1 %3957  ;;  %v7133_v24 = vpop.permute.xlu0 %3952 }
 0x15c   : > { %4277 = vperm.xlu1 %6314, %v3823_v19   ;;  %4272 = vperm.xlu0 %6313, %v3822_v20   ;;  %v3840_v19 = vld [vmem:[%s6941_s9 + $0x310] sm:$0xff] }
 0x15d   : > { %1699 = vmatmul.mubr.bf16.gmra.mrb[64].mxu0 %v6371_v21  ;;  %2019 = vmatmul.mubr.bf16.gmra.mrb[64].mxu1 %v6372_v22  ;;  %v3843_v22 = vld [vmem:[%s6941_s9 + $0x328] sm:$0xff] }
 0x15e   : > { %1708 = vmatprep.mubr.bf16.mxu0 %v8713_v0  ;;  %2028 = vmatprep.mubr.bf16.mxu1 %v8713_v0 }
 0x15f   : > { %v7137_v27 = vpop.permute.xlu1 %3967  ;;  %v7139_v28 = vpop.permute.xlu0 %3962 }
 0x160   : > { %4287 = vperm.xlu1 %6314, %v3825_v25   ;;  %4282 = vperm.xlu0 %6313, %v3824_v26   ;;  %v3842_v25 = vld [vmem:[%s6941_s9 + $0x320] sm:$0xff] }
 0x161   : > { %v6381_v26 = vld [vmem:[%s6924_s12 + $0xa8] sm:$0xff]  }
 0x163   : > { %v7147_v33 = vpop.permute.xlu1 %3977  ;;  %v7149_v34 = vpop.permute.xlu0 %3972 }
 0x164   : > { %4297 = vperm.xlu1 %6314, %v3827_v29   ;;  %4292 = vperm.xlu0 %6313, %v3826_v30   ;;  %v6382_v29 = vld [vmem:[%s6924_s12 + $0x1a8] sm:$0xff]  }
 0x165   : > { %1709 = vmatmul.mubr.bf16.gmra.mrb[68].mxu0 %v6373_v31  ;;  %2029 = vmatmul.mubr.bf16.gmra.mrb[68].mxu1 %v6374_v32  ;;  %v3845_v32 = vld [vmem:[%s6941_s9 + $0x338] sm:$0xff] }
 0x166   : > { %1718 = vmatprep.mubr.bf16.mxu0 %v8713_v0  ;;  %2038 = vmatprep.mubr.bf16.mxu1 %v8713_v0 }
 0x167   : > { %v7153_v37 = vpop.permute.xlu1 %3987  ;;  %v7155_v38 = vpop.permute.xlu0 %3982 }
 0x168   : > { %4307 = vperm.xlu1 %6314, %v3829_v35   ;;  %4302 = vperm.xlu0 %6313, %v3828_v36   ;;  %v3844_v35 = vld [vmem:[%s6941_s9 + $0x330] sm:$0xff] }
 0x16b   : > { %v7163_v43 = vpop.permute.xlu1 %3997  ;;  %v7165_v44 = vpop.permute.xlu0 %3992 }
 0x16c   : > { %4317 = vperm.xlu1 %6314, %v3831_v39   ;;  %4312 = vperm.xlu0 %6313, %v3830_v40   ;;  %v3847_v40 = vld [vmem:[%s6941_s9 + $0x348] sm:$0xff] }
 0x16d   : > { %1719 = vmatmul.mubr.bf16.gmra.mrb[72].mxu0 %v6375_v41  ;;  %2039 = vmatmul.mubr.bf16.gmra.mrb[72].mxu1 %v6376_v42  ;;  %v3846_v41 = vld [vmem:[%s6941_s9 + $0x340] sm:$0xff]  ;;  %v6383_v42 = vld [vmem:[%s6924_s12 + $0xb0] sm:$0xff]  }
 0x16e   : > { %1728 = vmatprep.mubr.bf16.mxu0 %v8713_v0  ;;  %2048 = vmatprep.mubr.bf16.mxu1 %v8713_v0 }
 0x16f   : > { %v7169_v49 = vpop.permute.xlu1 %4007  ;;  %v7171_v52 = vpop.permute.xlu0 %4002 }
 0x170   : > { %4327 = vperm.xlu1 %6314, %v3833_v45   ;;  %4322 = vperm.xlu0 %6313, %v3832_v48   ;;  %v6384_v45 = vld [vmem:[%s6924_s12 + $0x1b0] sm:$0xff]  }
 0x173   : > { %v7179_v59 = vpop.permute.xlu1 %4017  ;;  %v7181_v62 = vpop.permute.xlu0 %4012 }
 0x174   : > { %4337 = vperm.xlu1 %6314, %v3835_v53   ;;  %4332 = vperm.xlu0 %6313, %v3834_v54   ;;  %v3849_v54 = vld [vmem:[%s6941_s9 + $0x358] sm:$0xff] }
 0x175   : > { %1729 = vmatmul.mubr.bf16.gmra.mrb[76].mxu0 %v6377_v55  ;;  %2049 = vmatmul.mubr.bf16.gmra.mrb[76].mxu1 %v6378_v58  ;;  %v3848_v55 = vld [vmem:[%s6941_s9 + $0x350] sm:$0xff] }
 0x176   : > { %1738 = vmatprep.mubr.bf16.mxu0 %v8713_v0  ;;  %2058 = vmatprep.mubr.bf16.mxu1 %v8713_v0 }
 0x177   : > { %v7185_v2 = vpop.permute.xlu1 %4027  ;;  %v7187_v5 = vpop.permute.xlu0 %4022 }
 0x178   : > { %8779 = vst [vmem:[#allocation23_spill] sm:$0xff] %v7185_v2  ;;  %4347 = vperm.xlu1 %6314, %v3837_v63   ;;  %4342 = vperm.xlu0 %6313, %v3836_v1   ;;  %v3851_v1 = vld [vmem:[%s6941_s9 + $0x368] sm:$0xff] }
 0x17b   : > { %v7195_v12 = vpop.permute.xlu1 %4037  ;;  %v7197_v15 = vpop.permute.xlu0 %4032 }
 0x17c   : > { %8780 = vst [vmem:[#allocation24_spill] sm:$0xff] %v7195_v12  ;;  %8781 = vst [vmem:[#allocation25_spill] sm:$0xff] %v7197_v15  ;;  %4357 = vperm.xlu1 %6314, %v3839_v6   ;;  %4352 = vperm.xlu0 %6313, %v3838_v9   ;;  %v3850_v6 = vld [vmem:[%s6941_s9 + $0x360] sm:$0xff]  ;;  %v6385_v9 = vld [vmem:[%s6924_s12 + $0xb8] sm:$0xff]  }
 0x17d   : > { %1739 = vmatmul.mubr.bf16.gmra.mrb[80].mxu0 %v6379_v10  ;;  %2059 = vmatmul.mubr.bf16.gmra.mrb[80].mxu1 %v6380_v11  ;;  %v6386_v10 = vld [vmem:[%s6924_s12 + $0x1b8] sm:$0xff]  }
 0x17e   : > { %1748 = vmatprep.mubr.bf16.mxu0 %v8713_v0  ;;  %2068 = vmatprep.mubr.bf16.mxu1 %v8713_v0 }
 0x17f   : > { %v7201_v20 = vpop.permute.xlu1 %4047  ;;  %v7203_v21 = vpop.permute.xlu0 %4042 }
 0x180   : > { %8782 = vst [vmem:[#allocation26_spill] sm:$0xff] %v7201_v20  ;;  %8783 = vst [vmem:[#allocation27_spill] sm:$0xff] %v7203_v21  ;;  %4367 = vperm.xlu1 %6314, %v3841_v16   ;;  %4362 = vperm.xlu0 %6313, %v3840_v19   ;;  %v3853_v19 = vld [vmem:[%s6941_s9 + $0x378] sm:$0xff] }
 0x183   : > { %v7211_v30 = vpop.permute.xlu1 %4057  ;;  %v7213_v31 = vpop.permute.xlu0 %4052 }
 0x184   : > { %8784 = vst [vmem:[#allocation28_spill] sm:$0xff] %v7211_v30  ;;  %8785 = vst [vmem:[#allocation29_spill] sm:$0xff] %v7213_v31  ;;  %4377 = vperm.xlu1 %6314, %v3843_v22   ;;  %4372 = vperm.xlu0 %6313, %v3842_v25   ;;  %v3852_v22 = vld [vmem:[%s6941_s9 + $0x370] sm:$0xff]  ;;  %v6395_v31 = vld [vmem:[%s6924_s12 + $0xe0] sm:$0xff]  }
 0x185   : > { %1749 = vmatmul.mubr.bf16.gmra.mrb[84].mxu0 %v6381_v26  ;;  %2069 = vmatmul.mubr.bf16.gmra.mrb[84].mxu1 %v6382_v29  ;;  %v3855_v29 = vld [vmem:[%s6941_s9 + $0x388] sm:$0xff] }
 0x186   : > { %1758 = vmatprep.mubr.bf16.mxu0 %v8713_v0  ;;  %2078 = vmatprep.mubr.bf16.mxu1 %v8713_v0 }
 0x187   : > { %v7217_v36 = vpop.permute.xlu1 %4067  ;;  %v7219_v39 = vpop.permute.xlu0 %4062 }
 0x188   : > { %8786 = vst [vmem:[#allocation30_spill] sm:$0xff] %v7217_v36  ;;  %8787 = vst [vmem:[#allocation31_spill] sm:$0xff] %v7219_v39  ;;  %4387 = vperm.xlu1 %6314, %v3845_v32   ;;  %4382 = vperm.xlu0 %6313, %v3844_v35   ;;  %v3854_v32 = vld [vmem:[%s6941_s9 + $0x380] sm:$0xff] }
 0x189   : > { %v6387_v35 = vld [vmem:[%s6924_s12 + $0xc0] sm:$0xff]  }
 0x18b   : > { %v7227_v48 = vpop.permute.xlu1 %4077  ;;  %v7229_v53 = vpop.permute.xlu0 %4072 }
 0x18c   : > { %8788 = vst [vmem:[#allocation32_spill] sm:$0xff] %v7227_v48  ;;  %8789 = vst [vmem:[#allocation33_spill] sm:$0xff] %v7229_v53  ;;  %4397 = vperm.xlu1 %6314, %v3847_v40   ;;  %4392 = vperm.xlu0 %6313, %v3846_v41   ;;  %v6388_v40 = vld [vmem:[%s6924_s12 + $0x1c0] sm:$0xff]  }
 0x18d   : > { %1759 = vmatmul.mubr.bf16.gmra.mrb[88].mxu0 %v6383_v42  ;;  %2079 = vmatmul.mubr.bf16.gmra.mrb[88].mxu1 %v6384_v45  ;;  %v3857_v45 = vld [vmem:[%s6941_s9 + $0x398] sm:$0xff] }
 0x18e   : > { %1768 = vmatprep.mubr.bf16.mxu0 %v8713_v0  ;;  %2088 = vmatprep.mubr.bf16.mxu1 %v8713_v0  ;;  %v3869_v53 = vld [vmem:[%s6941_s9 + $0x3f8] sm:$0xff] }
 0x18f   : > { %v7233_v58 = vpop.permute.xlu1 %4087  ;;  %v7235_v63 = vpop.permute.xlu0 %4082 }
 0x190   : > { %8790 = vst [vmem:[#allocation34_spill] sm:$0xff] %v7233_v58  ;;  %8791 = vst [vmem:[#allocation35_spill] sm:$0xff] %v7235_v63  ;;  %4407 = vperm.xlu1 %6314, %v3849_v54   ;;  %4402 = vperm.xlu0 %6313, %v3848_v55   ;;  %v3856_v54 = vld [vmem:[%s6941_s9 + $0x390] sm:$0xff] }
 0x193   : > { %v7243_v11 = vpop.permute.xlu1 %4097  ;;  %v7245_v16 = vpop.permute.xlu0 %4092 }
 0x194   : > { %8792 = vst [vmem:[#allocation36_spill] sm:$0xff] %v7243_v11  ;;  %8793 = vst [vmem:[#allocation37_spill] sm:$0xff] %v7245_v16  ;;  %4417 = vperm.xlu1 %6314, %v3851_v1   ;;  %4412 = vperm.xlu0 %6313, %v3850_v6   ;;  %v3859_v6 = vld [vmem:[%s6941_s9 + $0x3a8] sm:$0xff]  ;;  %v6393_v11 = vld [vmem:[%s6924_s12 + $0xd8] sm:$0xff]  }
 0x195   : > { %1769 = vmatmul.mubr.bf16.gmra.mrb[92].mxu0 %v6385_v9  ;;  %2089 = vmatmul.mubr.bf16.gmra.mrb[92].mxu1 %v6386_v10  ;;  %v3858_v9 = vld [vmem:[%s6941_s9 + $0x3a0] sm:$0xff]  ;;  %v6394_v16 = vld [vmem:[%s6924_s12 + $0x1d8] sm:$0xff]  }
 0x196   : > { %1778 = vmatprep.mubr.bf16.mxu0 %v8713_v0  ;;  %2098 = vmatprep.mubr.bf16.mxu1 %v8713_v0  ;;  %v6389_v10 = vld [vmem:[%s6924_s12 + $0xc8] sm:$0xff]  }
 0x197   : > { %v7249_v25 = vpop.permute.xlu1 %4107  ;;  %v7251_v26 = vpop.permute.xlu0 %4102 }
 0x198   : > { %8794 = vst [vmem:[#allocation38_spill] sm:$0xff] %v7249_v25  ;;  %8795 = vst [vmem:[#allocation39_spill] sm:$0xff] %v7251_v26  ;;  %4427 = vperm.xlu1 %6314, %v3853_v19   ;;  %4422 = vperm.xlu0 %6313, %v3852_v22   ;;  %v6390_v19 = vld [vmem:[%s6924_s12 + $0x1c8] sm:$0xff]   ;;  %v2952_v22 = vlaneseq }
 0x19b   : > { %v7259_v41 = vpop.permute.xlu1 %4117  ;;  %v7261_v42 = vpop.permute.xlu0 %4112 }
 0x19c   : > { %8796 = vst [vmem:[#allocation40_spill] sm:$0xff] %v7259_v41  ;;  %8797 = vst [vmem:[#allocation41_spill] sm:$0xff] %v7261_v42  ;;  %4437 = vperm.xlu1 %6314, %v3855_v29   ;;  %4432 = vperm.xlu0 %6313, %v3854_v32   ;;  %v3864_v41 = vld [vmem:[%s6941_s9 + $0x3d0] sm:$0xff]  ;;  %v3218_v42 = vld [vmem:[#allocation9] sm:$0x3] }
 0x19d   : > { %1779 = vmatmul.mubr.bf16.gmra.mrb[96].mxu0 %v6387_v35  ;;  %2099 = vmatmul.mubr.bf16.gmra.mrb[96].mxu1 %v6388_v40  ;;  %v3861_v35 = vld [vmem:[%s6941_s9 + $0x3b8] sm:$0xff]  ;;  %v3860_v40 = vld [vmem:[%s6941_s9 + $0x3b0] sm:$0xff] }
 0x19e   : > { %1788 = vmatprep.mubr.bf16.mxu0 %v8713_v0  ;;  %2108 = vmatprep.mubr.bf16.mxu1 %v8713_v0 }
 0x19f   : > { %v7265_v55 = vpop.permute.xlu1 %4127  ;;  %v7267_v1 = vpop.permute.xlu0 %4122 }
 0x1a0   : > { %8798 = vst [vmem:[#allocation42_spill] sm:$0xff] %v7265_v55  ;;  %8799 = vst [vmem:[#allocation43_spill] sm:$0xff] %v7267_v1  ;;  %4447 = vperm.xlu1 %6314, %v3857_v45   ;;  %4442 = vperm.xlu0 %6313, %v3856_v54   ;;  %v2953_v45 = vshrl.u32 %v2952_v22, 7  ;;  %v8804_v55 = vmov 0   ;;  %v2950_v22 = vld [vmem:[#allocation8] sm:$0x3] }
 0x1a2   : > { %v2954_v1 = vsub.s32 0, %v2953_v45 }
 0x1a3   : > { %v7275_v29 = vpop.permute.xlu1 %4137  ;;  %v7277_v32 = vpop.permute.xlu0 %4132 }
 0x1a4   : > { %8800 = vst [vmem:[#allocation44_spill] sm:$0xff] %v7275_v29  ;;  %8801 = vst [vmem:[#allocation45_spill] sm:$0xff] %v7277_v32  ;;  %4457 = vperm.xlu1 %6314, %v3859_v6   ;;  %4452 = vperm.xlu0 %6313, %v3858_v9   ;;  %v3863_v6 = vld [vmem:[%s6941_s9 + $0x3c8] sm:$0xff]  ;;  %v3862_v29 = vld [vmem:[%s6941_s9 + $0x3c0] sm:$0xff] }
 0x1a5   : > { %1789 = vmatmul.mubr.bf16.gmra.mrb[100].mxu0 %v6389_v10  ;;  %2109 = vmatmul.mubr.bf16.gmra.mrb[100].mxu1 %v6390_v19  ;;  %v6391_v9 = vld [vmem:[%s6924_s12 + $0xd0] sm:$0xff]  }
 0x1a6   : > { %1798 = vmatprep.mubr.bf16.mxu0 %v8804_v55  ;;  %2118 = vmatprep.mubr.bf16.mxu1 %v8804_v55  ;;  %v6392_v32 = vld [vmem:[%s6924_s12 + $0x1d0] sm:$0xff]  }
 0x1a7   : > { %v7281_v54 = vpop.permute.xlu1 %4147  ;;  %v7283_v0 = vpop.permute.xlu0 %4142 }
 0x1a8   : > { %8802 = vst [vmem:[#allocation46_spill] sm:$0xff] %v7281_v54  ;;  %8803 = vst [vmem:[#allocation47_spill] sm:$0xff] %v7283_v0  ;;  %4467 = vperm.xlu1 %6314, %v3861_v35   ;;  %4462 = vperm.xlu0 %6313, %v3860_v40   ;;  %v2958_v54 = vsub.s32 1, %v2953_v45  ;;  %v3865_v0 = vld [vmem:[%s6941_s9 + $0x3d8] sm:$0xff]  ;;  %v7297_v35 = vrot.slane %v2950_v22, %v2954_v1 }
 0x1ab   : > { %v7291_v10 = vpop.permute.xlu1 %4157  ;;  %v7293_v19 = vpop.permute.xlu0 %4152 }
 0x1ac   : > { %8805 = vst [vmem:[#allocation48_spill] sm:$0xff] %v7291_v10  ;;  %8806 = vst [vmem:[#allocation49_spill] sm:$0xff] %v7293_v19  ;;  %4477 = vperm.xlu1 %6314, %v3863_v6   ;;  %4472 = vperm.xlu0 %6313, %v3862_v29   ;;  %v7303_v10 = vrot.slane %v2950_v22, %v2958_v54  ;;  %v7307_v29 = vrot.slane %v3218_v42, %v2954_v1 }
 0x1ad   : > { %1799 = vmatmul.mubr.bf16.gmra.mrb[104].mxu0 %v6391_v9  ;;  %2119 = vmatmul.mubr.bf16.gmra.mrb[104].mxu1 %v6392_v32  ;;  %v7309_v6 = vrot.slane %v3218_v42, %v2958_v54  ;;  %v3867_v9 = vld [vmem:[%s6941_s9 + $0x3e8] sm:$0xff] }
 0x1ae   : > { %1808 = vmatprep.mubr.bf16.mxu0 %v8804_v55  ;;  %2128 = vmatprep.mubr.bf16.mxu1 %v8804_v55 }
 0x1af   : > { %v7299_v40 = vpop.permute.xlu1 %4167  ;;  %v7301_v25 = vpop.permute.xlu0 %4162 }
 0x1b0   : > { %8807 = vst [vmem:[#allocation50_spill] sm:$0xff] %v7299_v40  ;;  %8808 = vst [vmem:[#allocation51_spill] sm:$0xff] %v7301_v25  ;;  %4487 = vperm.xlu1 %6314, %v3865_v0   ;;  %4482 = vperm.xlu0 %6313, %v3864_v41   ;;  %v1540_v45 = vpop.f32.mrb[0].mxu0  ;;  %v1860_v32 = vpop.f32.mrb[0].mxu1  ;;  %v3866_v40 = vld [vmem:[%s6941_s9 + $0x3e0] sm:$0xff] }
 0x1b1   : > { %v2962_v25 = vmul.f32 %v7297_v35, %v1540_v45  ;;  %v3090_v22 = vmul.f32 %v7297_v35, %v1860_v32  ;;  %v1542_v19 = vpop.f32.mrb[1].mxu0  ;;  %v1862_v26 = vpop.f32.mrb[1].mxu1 }
 0x1b2   : > { %v2963_v58 = vmul.f32 %v7303_v10, %v1542_v19  ;;  %v3091_v0 = vmul.f32 %v7303_v10, %v1862_v26  ;;  %v1544_v45 = vpop.f32.mrb[2].mxu0  ;;  %v1864_v32 = vpop.f32.mrb[2].mxu1 }
 0x1b3   : > { %v7319_v41 = vpop.permute.xlu1 %4177  ;;  %v7321_v42 = vpop.permute.xlu0 %4172  ;;  %v3230_v1 = vadd.f32 %v7307_v29, %v2962_v25  ;;  %v7325_v54 = vadd.f32 %v7307_v29, %v3090_v22  ;;  %v2964_v26 = vmul.f32 %v7297_v35, %v1544_v45  ;;  %v3868_v25 = vld [vmem:[%s6941_s9 + $0x3f0] sm:$0xff] }
 0x1b4   : > { %8809 = vst [vmem:[#allocation52_spill] sm:$0xff] %v7319_v41  ;;  %8810 = vst [vmem:[#allocation53_spill] sm:$0xff] %v7321_v42  ;;  %4497 = vperm.xlu1 %6314, %v3867_v9   ;;  %4492 = vperm.xlu0 %6313, %v3866_v40   ;;  %v3231_v63 = vadd.f32 %v7309_v6, %v2963_v58  ;;  %v7329_v19 = vadd.f32 %v7309_v6, %v3091_v0  ;;  %v1546_v48 = vpop.f32.mrb[3].mxu0  ;;  %v1866_v42 = vpop.f32.mrb[3].mxu1 }
 0x1b5   : > { %v3092_v41 = vmul.f32 %v7297_v35, %v1864_v32  ;;  %v3486_v36 = vmax.f32 %v3230_v1, 0.0  ;;  %v2965_v22 = vmul.f32 %v7303_v10, %v1546_v48  ;;  %v3093_v39 = vmul.f32 %v7303_v10, %v1866_v42  ;;  %1809 = vmatmul.mubr.bf16.gmra.mrb[108].mxu0 %v6393_v11  ;;  %2129 = vmatmul.mubr.bf16.gmra.mrb[108].mxu1 %v6394_v16 }
 0x1b6   : > { %v3487_v40 = vmax.f32 %v3231_v63, 0.0  ;;  %v3232_v58 = vadd.f32 %v7307_v29, %v2964_v26  ;;  %1818 = vmatprep.mubr.bf16.mxu0 %v8804_v55  ;;  %2138 = vmatprep.mubr.bf16.mxu1 %v8804_v55  ;;  %v3614_v48 = vmax.f32 %v7325_v54, 0.0 }
 0x1b7   : > { %v3360_v9 = vadd.f32 %v7307_v29, %v3092_v41  ;;  %v7339_v0 = vpop.permute.xlu1 %4187  ;;  %v7341_v45 = vpop.permute.xlu0 %4182  ;;  %v4510_v1 = vmul.f32 %v7069_v47, %v3486_v36  ;;  %v3233_v11 = vadd.f32 %v7309_v6, %v2965_v22  ;;  %v3361_v63 = vadd.f32 %v7309_v6, %v3093_v39 }
 0x1b8   : > { %8811 = vst [vmem:[#allocation54_spill] sm:$0xff] %v7339_v0  ;;  %8812 = vst [vmem:[#allocation55_spill] sm:$0xff] %v7341_v45  ;;  %4507 = vperm.xlu1 %6314, %v3869_v53   ;;  %4502 = vperm.xlu0 %6313, %v3868_v25   ;;  %v4511_v16 = vmul.f32 %v7069_v47, %v3487_v40  ;;  %v3615_v41 = vmax.f32 %v7329_v19, 0.0  ;;  %v3488_v42 = vmax.f32 %v3232_v58, 0.0  ;;  %v1550_v26 = vpop.f32.mrb[4].mxu0  ;;  %v1870_v0 = vpop.f32.mrb[4].mxu1 }
 0x1b9   : > { %v3616_v32 = vmax.f32 %v3360_v9, 0.0  ;;  %v3489_v45 = vmax.f32 %v3233_v11, 0.0  ;;  %v3617_v36 = vmax.f32 %v3361_v63, 0.0  ;;  %v2966_v54 = vmul.f32 %v7297_v35, %v1550_v26  ;;  %v1552_v30 = vpop.f32.mrb[5].mxu0  ;;  %v1872_v39 = vpop.f32.mrb[5].mxu1  ;;  %v6396_v53 = vld [vmem:[%s6924_s12 + $0x1e0] sm:$0xff]  }
 0x1ba   : > { %v3094_v22 = vmul.f32 %v7297_v35, %v1870_v0  ;;  %v6062_v25 = vpack.c.bf16 %v4511_v16, %v4510_v1  ;;  %v4512_v47 = vmul.f32 %v7075_v51, %v3488_v42  ;;  %v2967_v19 = vmul.f32 %v7303_v10, %v1552_v30  ;;  %v1554_v20 = vpop.f32.mrb[6].mxu0  ;;  %v1874_v21 = vpop.f32.mrb[6].mxu1 }
 0x1bb   : > { %v3095_v40 = vmul.f32 %v7303_v10, %v1872_v39  ;;  %v4198_v58 = vpop.permute.xlu1 %4197  ;;  %v4193_v9 = vpop.permute.xlu0 %4192  ;;  %v4513_v11 = vmul.f32 %v7075_v51, %v3489_v45  ;;  %v3234_v63 = vadd.f32 %v7307_v29, %v2966_v54 }
 0x1bc   : > { %v3362_v0 = vadd.f32 %v7307_v29, %v3094_v22  ;;  %v4640_v26 = vmul.f32 %v4198_v58, %v3616_v32  ;;  %5534 = vst [vmem:[%s7363_s24] sm:$0xff] %v6062_v25  ;;  %v3235_v30 = vadd.f32 %v7309_v6, %v2967_v19  ;;  %v4641_v16 = vmul.f32 %v4198_v58, %v3617_v36  ;;  %v1556_v51 = vpop.f32.mrb[7].mxu0  ;;  %v1876_v45 = vpop.f32.mrb[7].mxu1 }
 0x1bd   : > { %v3363_v1 = vadd.f32 %v7309_v6, %v3095_v40  ;;  %v4638_v42 = vmul.f32 %v4193_v9, %v3614_v48  ;;  %v6063_v54 = vpack.c.bf16 %v4513_v11, %v4512_v47  ;;  %v3490_v39 = vmax.f32 %v3234_v63, 0.0  ;;  %1819 = vmatmul.mubr.bf16.gmra.mrb[112].mxu0 %v6395_v31  ;;  %2139 = vmatmul.mubr.bf16.gmra.mrb[112].mxu1 %v6396_v53 }
 0x1be   : > { %v3618_v22 = vmax.f32 %v3362_v0, 0.0  ;;  %v4639_v32 = vmul.f32 %v4193_v9, %v3615_v41  ;;  %v3491_v12 = vmax.f32 %v3235_v30, 0.0  ;;  %v6127_v2 = vpack.c.bf16 %v4641_v16, %v4640_v26  ;;  %1828 = vmatprep.mubr.bf16.mxu0 %v8804_v55  ;;  %2148 = vmatprep.mubr.bf16.mxu1 %v8804_v55 }
 0x1bf   : > { %v3619_v15 = vmax.f32 %v3363_v1, 0.0  ;;  %v2968_v25 = vmul.f32 %v7297_v35, %v1554_v20  ;;  %v4203_v19 = vpop.permute.xlu0 %4202  ;;  %5535 = vst [vmem:[%s7363_s24 + $0x8] sm:$0xff] %v6063_v54  ;;  %v4514_v48 = vmul.f32 %v7067_v46, %v3490_v39  ;;  %v3096_v41 = vmul.f32 %v7297_v35, %v1874_v21 }
 0x1c0   : > { %v6126_v36 = vpack.c.bf16 %v4639_v32, %v4638_v42  ;;  %v2969_v31 = vmul.f32 %v7303_v10, %v1556_v51  ;;  %v4515_v53 = vmul.f32 %v7067_v46, %v3491_v12  ;;  %5599 = vst [vmem:[%s7363_s24 + $0x208] sm:$0xff] %v6127_v2  ;;  %v3097_v47 = vmul.f32 %v7303_v10, %v1876_v45  ;;  %v1560_v58 = vpop.f32.mrb[8].mxu0  ;;  %v1880_v9 = vpop.f32.mrb[8].mxu1  ;;  %v6397_v46 = vld [vmem:[%s6924_s12 + $0xe8] sm:$0xff]  }
 0x1c1   : > { %v3236_v20 = vadd.f32 %v7307_v29, %v2968_v25  ;;  %v4642_v40 = vmul.f32 %v4203_v19, %v3618_v22  ;;  %v3364_v11 = vadd.f32 %v7307_v29, %v3096_v41  ;;  %v4643_v21 = vmul.f32 %v4203_v19, %v3619_v15  ;;  %v1562_v26 = vpop.f32.mrb[9].mxu0  ;;  %v1882_v30 = vpop.f32.mrb[9].mxu1  ;;  %v6398_v2 = vld [vmem:[%s6924_s12 + $0x1e8] sm:$0xff]  }
 0x1c2   : > { %5598 = vst [vmem:[%s7363_s24 + $0x200] sm:$0xff] %v6126_v36  ;;  %v3237_v63 = vadd.f32 %v7309_v6, %v2969_v31  ;;  %v2970_v0 = vmul.f32 %v7297_v35, %v1560_v58  ;;  %v6064_v12 = vpack.c.bf16 %v4515_v53, %v4514_v48  ;;  %v3365_v16 = vadd.f32 %v7309_v6, %v3097_v47  ;;  %v4208_v42 = vpop.permute.xlu1 %4207  ;;  %v1564_v22 = vpop.f32.mrb[10].mxu0 }
 0x1c3   : > { %v3492_v1 = vmax.f32 %v3236_v20, 0.0  ;;  %v3098_v51 = vmul.f32 %v7297_v35, %v1880_v9  ;;  %v3620_v45 = vmax.f32 %v3364_v11, 0.0  ;;  %v6128_v39 = vpack.c.bf16 %v4643_v21, %v4642_v40  ;;  %v1884_v32 = vpop.f32.mrb[10].mxu1  ;;  %v1566_v41 = vpop.f32.mrb[11].mxu0 }
 0x1c4   : > { %v3493_v54 = vmax.f32 %v3237_v63, 0.0  ;;  %v3238_v15 = vadd.f32 %v7307_v29, %v2970_v0  ;;  %5536 = vst [vmem:[%s7363_s24 + $0x10] sm:$0xff] %v6064_v12  ;;  %v3621_v19 = vmax.f32 %v3365_v16, 0.0  ;;  %v2971_v36 = vmul.f32 %v7303_v10, %v1562_v26  ;;  %v1886_v31 = vpop.f32.mrb[11].mxu1  ;;  %v4213_v26 = vpop.permute.xlu0 %4212 }
 0x1c5   : > { %v4516_v25 = vmul.f32 %v7073_v50, %v3492_v1  ;;  %v3366_v48 = vadd.f32 %v7307_v29, %v3098_v51  ;;  %v4644_v20 = vmul.f32 %v4208_v42, %v3620_v45  ;;  %5600 = vst [vmem:[%s7363_s24 + $0x210] sm:$0xff] %v6128_v39  ;;  %v3099_v40 = vmul.f32 %v7303_v10, %v1882_v30 }
 0x1c6   : > { %v4517_v53 = vmul.f32 %v7073_v50, %v3493_v54  ;;  %v3494_v47 = vmax.f32 %v3238_v15, 0.0  ;;  %1829 = vmatmul.mubr.bf16.gmra.mrb[116].mxu0 %v6397_v46  ;;  %2149 = vmatmul.mubr.bf16.gmra.mrb[116].mxu1 %v6398_v2  ;;  %v4645_v58 = vmul.f32 %v4208_v42, %v3621_v19  ;;  %v3239_v11 = vadd.f32 %v7309_v6, %v2971_v36 }
 0x1c7   : > { %v3622_v9 = vmax.f32 %v3366_v48, 0.0  ;;  %v2972_v63 = vmul.f32 %v7297_v35, %v1564_v22  ;;  %1838 = vmatprep.mubr.bf16.mxu0 %v8804_v55  ;;  %2158 = vmatprep.mubr.bf16.mxu1 %v8804_v55  ;;  %v3367_v0 = vadd.f32 %v7309_v6, %v3099_v40  ;;  %v3100_v30 = vmul.f32 %v7297_v35, %v1884_v32  ;;  %v6400_v32 = vld [vmem:[%s6924_s12 + $0x1f0] sm:$0xff]   ;;  %v4218_v48 = vpop.permute.xlu1 %4217 }
 0x1c8   : > { %v6065_v21 = vpack.c.bf16 %v4517_v53, %v4516_v25  ;;  %v4518_v50 = vmul.f32 %v7085_v57, %v3494_v47  ;;  %v6129_v46 = vpack.c.bf16 %v4645_v58, %v4644_v20  ;;  %v3495_v2 = vmax.f32 %v3239_v11, 0.0  ;;  %v1570_v16 = vpop.f32.mrb[12].mxu0  ;;  %v1890_v42 = vpop.f32.mrb[12].mxu1  ;;  %v6399_v25 = vld [vmem:[%s6924_s12 + $0xf0] sm:$0xff]  }
 0x1c9   : > { %v4646_v12 = vmul.f32 %v4213_v26, %v3622_v9  ;;  %v3240_v1 = vadd.f32 %v7307_v29, %v2972_v63  ;;  %v3623_v51 = vmax.f32 %v3367_v0, 0.0  ;;  %v3368_v45 = vadd.f32 %v7307_v29, %v3100_v30  ;;  %v1572_v15 = vpop.f32.mrb[13].mxu0  ;;  %v1892_v22 = vpop.f32.mrb[13].mxu1 }
 0x1ca   : > { %5537 = vst [vmem:[%s7363_s24 + $0x18] sm:$0xff] %v6065_v21  ;;  %v2973_v54 = vmul.f32 %v7303_v10, %v1566_v41  ;;  %v3101_v39 = vmul.f32 %v7303_v10, %v1886_v31  ;;  %5601 = vst [vmem:[%s7363_s24 + $0x218] sm:$0xff] %v6129_v46  ;;  %v4519_v19 = vmul.f32 %v7085_v57, %v3495_v2  ;;  %v1574_v31 = vpop.f32.mrb[14].mxu0  ;;  %v1894_v9 = vpop.f32.mrb[14].mxu1 }
 0x1cb   : > { %v3496_v36 = vmax.f32 %v3240_v1, 0.0  ;;  %v2974_v53 = vmul.f32 %v7297_v35, %v1570_v16  ;;  %v3102_v20 = vmul.f32 %v7297_v35, %v1890_v42  ;;  %v4647_v47 = vmul.f32 %v4213_v26, %v3623_v51  ;;  %v1576_v0 = vpop.f32.mrb[15].mxu0  ;;  %v1896_v30 = vpop.f32.mrb[15].mxu1 }
 0x1cc   : > { %v3624_v40 = vmax.f32 %v3368_v45, 0.0  ;;  %v3241_v58 = vadd.f32 %v7309_v6, %v2973_v54  ;;  %v3369_v41 = vadd.f32 %v7309_v6, %v3101_v39  ;;  %v6066_v11 = vpack.c.bf16 %v4519_v19, %v4518_v50  ;;  %v4223_v54 = vpop.permute.xlu0 %4222 }
 0x1cd   : > { %v4520_v63 = vmul.f32 %v7083_v56, %v3496_v36  ;;  %v3242_v57 = vadd.f32 %v7307_v29, %v2974_v53  ;;  %v3370_v21 = vadd.f32 %v7307_v29, %v3102_v20  ;;  %v6130_v46 = vpack.c.bf16 %v4647_v47, %v4646_v12 }
 0x1ce   : > { %v4648_v26 = vmul.f32 %v4218_v48, %v3624_v40  ;;  %v3497_v2 = vmax.f32 %v3241_v58, 0.0  ;;  %v3625_v1 = vmax.f32 %v3369_v41, 0.0  ;;  %1839 = vmatmul.mubr.bf16.gmra.mrb[120].mxu0 %v6399_v25  ;;  %2159 = vmatmul.mubr.bf16.gmra.mrb[120].mxu1 %v6400_v32  ;;  %5538 = vst [vmem:[%s7363_s24 + $0x20] sm:$0xff] %v6066_v11  ;;  %v2975_v50 = vmul.f32 %v7303_v10, %v1572_v15  ;;  %v6401_v58 = vld [vmem:[%s6924_s12 + $0xf8] sm:$0xff]   ;;  %v4228_v41 = vpop.permute.xlu1 %4227 }
 0x1cf   : > { %v3498_v16 = vmax.f32 %v3242_v57, 0.0  ;;  %v3626_v42 = vmax.f32 %v3370_v21, 0.0  ;;  %v3103_v51 = vmul.f32 %v7303_v10, %v1892_v22  ;;  %1848 = vmatprep.mubr.bf16.mxu0 %v8804_v55  ;;  %2168 = vmatprep.mubr.bf16.mxu1 %v8804_v55  ;;  %5602 = vst [vmem:[%s7363_s24 + $0x220] sm:$0xff] %v6130_v46  ;;  %v2976_v39 = vmul.f32 %v7297_v35, %v1574_v31  ;;  %v6402_v21 = vld [vmem:[%s6924_s12 + $0x1f8] sm:$0xff]  }
 0x1d0   : > { %v4521_v45 = vmul.f32 %v7083_v56, %v3497_v2  ;;  %v4649_v12 = vmul.f32 %v4218_v48, %v3625_v1  ;;  %v3104_v25 = vmul.f32 %v7297_v35, %v1894_v9  ;;  %v3243_v15 = vadd.f32 %v7309_v6, %v2975_v50  ;;  %v1580_v55 = vpop.f32.mrb[16].mxu0  ;;  %v1900_v36 = vpop.f32.mrb[16].mxu1 }
 0x1d1   : > { %v4522_v32 = vmul.f32 %v7091_v61, %v3498_v16  ;;  %v4650_v19 = vmul.f32 %v4223_v54, %v3626_v42  ;;  %v3371_v22 = vadd.f32 %v7309_v6, %v3103_v51  ;;  %v3244_v53 = vadd.f32 %v7307_v29, %v2976_v39  ;;  %v1582_v47 = vpop.f32.mrb[17].mxu0  ;;  %v1902_v40 = vpop.f32.mrb[17].mxu1 }
 0x1d2   : > { %v6067_v56 = vpack.c.bf16 %v4521_v45, %v4520_v63  ;;  %v6131_v48 = vpack.c.bf16 %v4649_v12, %v4648_v26  ;;  %v3372_v20 = vadd.f32 %v7307_v29, %v3104_v25  ;;  %v3499_v31 = vmax.f32 %v3243_v15, 0.0  ;;  %v1584_v1 = vpop.f32.mrb[18].mxu0  ;;  %v1904_v16 = vpop.f32.mrb[18].mxu1 }
 0x1d3   : > { %v3627_v9 = vmax.f32 %v3371_v22, 0.0  ;;  %v2977_v11 = vmul.f32 %v7303_v10, %v1576_v0  ;;  %v3105_v57 = vmul.f32 %v7303_v10, %v1896_v30  ;;  %v3500_v46 = vmax.f32 %v3244_v53, 0.0  ;;  %v1586_v45 = vpop.f32.mrb[19].mxu0  ;;  %v1906_v30 = vpop.f32.mrb[19].mxu1 }
 0x1d4   : > { %5539 = vst [vmem:[%s7363_s24 + $0x28] sm:$0xff] %v6067_v56  ;;  %5603 = vst [vmem:[%s7363_s24 + $0x228] sm:$0xff] %v6131_v48  ;;  %v3628_v63 = vmax.f32 %v3372_v20, 0.0  ;;  %v2978_v26 = vmul.f32 %v7297_v35, %v1580_v55  ;;  %v3106_v2 = vmul.f32 %v7297_v35, %v1900_v36  ;;  %v4523_v42 = vmul.f32 %v7091_v61, %v3499_v31  ;;  %v4233_v36 = vpop.permute.xlu0 %4232 }
 0x1d5   : > { %v4651_v50 = vmul.f32 %v4223_v54, %v3627_v9  ;;  %v3245_v51 = vadd.f32 %v7309_v6, %v2977_v11  ;;  %v3373_v0 = vadd.f32 %v7309_v6, %v3105_v57  ;;  %v4524_v12 = vmul.f32 %v7089_v60, %v3500_v46 }
 0x1d6   : > { %v4652_v39 = vmul.f32 %v4228_v41, %v3628_v63  ;;  %v3246_v25 = vadd.f32 %v7307_v29, %v2978_v26  ;;  %v3374_v15 = vadd.f32 %v7307_v29, %v3106_v2  ;;  %1849 = vmatmul.mubr.bf16.gmra.mrb[124].mxu0 %v6401_v58  ;;  %v6068_v22 = vpack.c.bf16 %v4523_v42, %v4522_v32 }
 0x1d7   : > { %v6132_v55 = vpack.c.bf16 %v4651_v50, %v4650_v19  ;;  %v3501_v61 = vmax.f32 %v3245_v51, 0.0  ;;  %v3629_v54 = vmax.f32 %v3373_v0, 0.0  ;;  %2169 = vmatmul.mubr.bf16.gmra.mrb[124].mxu1 %v6402_v21  ;;  %v2979_v53 = vmul.f32 %v7303_v10, %v1582_v47 }
 0x1d8   : > { %v3502_v56 = vmax.f32 %v3246_v25, 0.0  ;;  %v3630_v48 = vmax.f32 %v3374_v15, 0.0  ;;  %v3107_v20 = vmul.f32 %v7303_v10, %v1902_v40  ;;  %5540 = vst [vmem:[%s7363_s24 + $0x30] sm:$0xff] %v6068_v22  ;;  %v2980_v11 = vmul.f32 %v7297_v35, %v1584_v1  ;;  %v1590_v19 = vpop.f32.mrb[20].mxu0  ;;  %v1910_v58 = vpop.f32.mrb[20].mxu1 }
 0x1d9   : > { %5604 = vst [vmem:[%s7363_s24 + $0x230] sm:$0xff] %v6132_v55  ;;  %v4525_v31 = vmul.f32 %v7089_v60, %v3501_v61  ;;  %v4653_v9 = vmul.f32 %v4228_v41, %v3629_v54  ;;  %v3108_v32 = vmul.f32 %v7297_v35, %v1904_v16  ;;  %v3247_v47 = vadd.f32 %v7309_v6, %v2979_v53  ;;  %v1592_v46 = vpop.f32.mrb[21].mxu0  ;;  %v1912_v63 = vpop.f32.mrb[21].mxu1 }
 0x1da   : > { %v4526_v57 = vmul.f32 %v7101_v4, %v3502_v56  ;;  %v4654_v21 = vmul.f32 %v4233_v36, %v3630_v48  ;;  %v3375_v40 = vadd.f32 %v7309_v6, %v3107_v20  ;;  %v3248_v41 = vadd.f32 %v7307_v29, %v2980_v11  ;;  %v1594_v51 = vpop.f32.mrb[22].mxu0  ;;  %v1914_v0 = vpop.f32.mrb[22].mxu1 }
 0x1db   : > { %v6069_v26 = vpack.c.bf16 %v4525_v31, %v4524_v12  ;;  %v6133_v60 = vpack.c.bf16 %v4653_v9, %v4652_v39  ;;  %v3376_v2 = vadd.f32 %v7307_v29, %v3108_v32  ;;  %v3503_v1 = vmax.f32 %v3247_v47, 0.0  ;;  %v1596_v39 = vpop.f32.mrb[23].mxu0  ;;  %v1916_v55 = vpop.f32.mrb[23].mxu1 }
 0x1dc   : > { %v3631_v16 = vmax.f32 %v3375_v40, 0.0  ;;  %v2981_v42 = vmul.f32 %v7303_v10, %v1586_v45  ;;  %v3109_v50 = vmul.f32 %v7303_v10, %v1906_v30  ;;  %v3504_v25 = vmax.f32 %v3248_v41, 0.0  ;;  %v4238_v61 = vpop.permute.xlu1 %4237  ;;  %v4243_v9 = vpop.permute.xlu0 %4242 }
 0x1dd   : > { %5541 = vst [vmem:[%s7363_s24 + $0x38] sm:$0xff] %v6069_v26  ;;  %5605 = vst [vmem:[%s7363_s24 + $0x238] sm:$0xff] %v6133_v60  ;;  %v3632_v15 = vmax.f32 %v3376_v2, 0.0  ;;  %v2982_v22 = vmul.f32 %v7297_v35, %v1590_v19  ;;  %v3110_v12 = vmul.f32 %v7297_v35, %v1910_v58  ;;  %v4527_v54 = vmul.f32 %v7101_v4, %v3503_v1 }
 0x1de   : > { %v4655_v56 = vmul.f32 %v4233_v36, %v3631_v16  ;;  %v3249_v45 = vadd.f32 %v7309_v6, %v2981_v42  ;;  %v3377_v30 = vadd.f32 %v7309_v6, %v3109_v50  ;;  %v4528_v48 = vmul.f32 %v7099_v3, %v3504_v25 }
 0x1df   : > { %v4656_v53 = vmul.f32 %v4238_v61, %v3632_v15  ;;  %v3250_v20 = vadd.f32 %v7307_v29, %v2982_v22  ;;  %v3378_v31 = vadd.f32 %v7307_v29, %v3110_v12  ;;  %v6070_v11 = vpack.c.bf16 %v4527_v54, %v4526_v57 }
 0x1e0   : > { %v6134_v32 = vpack.c.bf16 %v4655_v56, %v4654_v21  ;;  %v3505_v19 = vmax.f32 %v3249_v45, 0.0  ;;  %v3633_v58 = vmax.f32 %v3377_v30, 0.0  ;;  %v2983_v47 = vmul.f32 %v7303_v10, %v1592_v46  ;;  %v1600_v26 = vpop.f32.mrb[24].mxu0  ;;  %v1920_v60 = vpop.f32.mrb[24].mxu1 }
 0x1e1   : > { %v3506_v4 = vmax.f32 %v3250_v20, 0.0  ;;  %v3634_v36 = vmax.f32 %v3378_v31, 0.0  ;;  %v3111_v40 = vmul.f32 %v7303_v10, %v1912_v63  ;;  %5542 = vst [vmem:[%s7363_s24 + $0x40] sm:$0xff] %v6070_v11  ;;  %v2984_v1 = vmul.f32 %v7297_v35, %v1594_v51  ;;  %v1602_v21 = vpop.f32.mrb[25].mxu0  ;;  %v1922_v16 = vpop.f32.mrb[25].mxu1 }
 0x1e2   : > { %5606 = vst [vmem:[%s7363_s24 + $0x240] sm:$0xff] %v6134_v32  ;;  %v4529_v41 = vmul.f32 %v7099_v3, %v3505_v19  ;;  %v4657_v2 = vmul.f32 %v4238_v61, %v3633_v58  ;;  %v3112_v57 = vmul.f32 %v7297_v35, %v1914_v0  ;;  %v3251_v46 = vadd.f32 %v7309_v6, %v2983_v47  ;;  %v1604_v51 = vpop.f32.mrb[26].mxu0  ;;  %v1924_v12 = vpop.f32.mrb[26].mxu1 }
 0x1e3   : > { %v4530_v42 = vmul.f32 %v7107_v8, %v3506_v4  ;;  %v4658_v50 = vmul.f32 %v4243_v9, %v3634_v36  ;;  %v3379_v63 = vadd.f32 %v7309_v6, %v3111_v40  ;;  %v3252_v3 = vadd.f32 %v7307_v29, %v2984_v1  ;;  %v1606_v45 = vpop.f32.mrb[27].mxu0  ;;  %v1926_v30 = vpop.f32.mrb[27].mxu1 }
 0x1e4   : > { %v6071_v25 = vpack.c.bf16 %v4529_v41, %v4528_v48  ;;  %v6135_v15 = vpack.c.bf16 %v4657_v2, %v4656_v53  ;;  %v3380_v22 = vadd.f32 %v7307_v29, %v3112_v57  ;;  %v3507_v0 = vmax.f32 %v3251_v46, 0.0  ;;  %v4248_v11 = vpop.permute.xlu1 %4247 }
 0x1e5   : > { %v3635_v61 = vmax.f32 %v3379_v63, 0.0  ;;  %v2985_v54 = vmul.f32 %v7303_v10, %v1596_v39  ;;  %v3113_v56 = vmul.f32 %v7303_v10, %v1916_v55  ;;  %v3508_v20 = vmax.f32 %v3252_v3, 0.0 }
 0x1e6   : > { %5543 = vst [vmem:[%s7363_s24 + $0x48] sm:$0xff] %v6071_v25  ;;  %5607 = vst [vmem:[%s7363_s24 + $0x248] sm:$0xff] %v6135_v15  ;;  %v3636_v31 = vmax.f32 %v3380_v22, 0.0  ;;  %v2986_v48 = vmul.f32 %v7297_v35, %v1600_v26  ;;  %v3114_v53 = vmul.f32 %v7297_v35, %v1920_v60  ;;  %v4531_v32 = vmul.f32 %v7107_v8, %v3507_v0  ;;  %v4253_v15 = vpop.permute.xlu0 %4252 }
 0x1e7   : > { %v4659_v19 = vmul.f32 %v4243_v9, %v3635_v61  ;;  %v3253_v58 = vadd.f32 %v7309_v6, %v2985_v54  ;;  %v3381_v39 = vadd.f32 %v7309_v6, %v3113_v56  ;;  %v4532_v55 = vmul.f32 %v7105_v7, %v3508_v20 }
 0x1e8   : > { %v4660_v4 = vmul.f32 %v4248_v11, %v3636_v31  ;;  %v3254_v36 = vadd.f32 %v7307_v29, %v2986_v48  ;;  %v3382_v47 = vadd.f32 %v7307_v29, %v3114_v53  ;;  %v6072_v40 = vpack.c.bf16 %v4531_v32, %v4530_v42  ;;  %v1610_v2 = vpop.f32.mrb[28].mxu0  ;;  %v1930_v8 = vpop.f32.mrb[28].mxu1 }
 0x1e9   : > { %v6136_v26 = vpack.c.bf16 %v4659_v19, %v4658_v50  ;;  %v3509_v60 = vmax.f32 %v3253_v58, 0.0  ;;  %v3637_v41 = vmax.f32 %v3381_v39, 0.0  ;;  %v2987_v57 = vmul.f32 %v7303_v10, %v1602_v21  ;;  %v1612_v63 = vpop.f32.mrb[29].mxu0  ;;  %v1932_v25 = vpop.f32.mrb[29].mxu1 }
 0x1ea   : > { %v3510_v9 = vmax.f32 %v3254_v36, 0.0  ;;  %v3638_v1 = vmax.f32 %v3382_v47, 0.0  ;;  %v3115_v46 = vmul.f32 %v7303_v10, %v1922_v16  ;;  %5544 = vst [vmem:[%s7363_s24 + $0x50] sm:$0xff] %v6072_v40  ;;  %v2988_v42 = vmul.f32 %v7297_v35, %v1604_v51  ;;  %v1614_v54 = vpop.f32.mrb[30].mxu0  ;;  %v1934_v56 = vpop.f32.mrb[30].mxu1 }
 0x1eb   : > { %5608 = vst [vmem:[%s7363_s24 + $0x250] sm:$0xff] %v6136_v26  ;;  %v4533_v3 = vmul.f32 %v7105_v7, %v3509_v60  ;;  %v4661_v22 = vmul.f32 %v4248_v11, %v3637_v41  ;;  %v3116_v50 = vmul.f32 %v7297_v35, %v1924_v12  ;;  %v3255_v21 = vadd.f32 %v7309_v6, %v2987_v57  ;;  %v1616_v51 = vpop.f32.mrb[31].mxu0  ;;  %v1936_v53 = vpop.f32.mrb[31].mxu1 }
 0x1ec   : > { %v4534_v0 = vmul.f32 %v7117_v14, %v3510_v9  ;;  %v4662_v61 = vmul.f32 %v4253_v15, %v3638_v1  ;;  %v3383_v16 = vadd.f32 %v7309_v6, %v3115_v46  ;;  %v3256_v7 = vadd.f32 %v7307_v29, %v2988_v42 }
 0x1ed   : > { %v6073_v20 = vpack.c.bf16 %v4533_v3, %v4532_v55  ;;  %v6137_v31 = vpack.c.bf16 %v4661_v22, %v4660_v4  ;;  %v3384_v48 = vadd.f32 %v7307_v29, %v3116_v50  ;;  %v3511_v12 = vmax.f32 %v3255_v21, 0.0  ;;  %v4258_v4 = vpop.permute.xlu1 %4257  ;;  %v4263_v22 = vpop.permute.xlu0 %4262 }
 0x1ee   : > { %v3639_v11 = vmax.f32 %v3383_v16, 0.0  ;;  %v2989_v32 = vmul.f32 %v7303_v10, %v1606_v45  ;;  %v3117_v19 = vmul.f32 %v7303_v10, %v1926_v30  ;;  %v3512_v58 = vmax.f32 %v3256_v7, 0.0 }
 0x1ef   : > { %5545 = vst [vmem:[%s7363_s24 + $0x58] sm:$0xff] %v6073_v20  ;;  %5609 = vst [vmem:[%s7363_s24 + $0x258] sm:$0xff] %v6137_v31  ;;  %v3640_v39 = vmax.f32 %v3384_v48, 0.0  ;;  %v2990_v36 = vmul.f32 %v7297_v35, %v1610_v2  ;;  %v3118_v55 = vmul.f32 %v7297_v35, %v1930_v8  ;;  %v4535_v47 = vmul.f32 %v7117_v14, %v3511_v12 }
 0x1f0   : > { %v4663_v40 = vmul.f32 %v4253_v15, %v3639_v11  ;;  %v3257_v26 = vadd.f32 %v7309_v6, %v2989_v32  ;;  %v3385_v60 = vadd.f32 %v7309_v6, %v3117_v19  ;;  %v4536_v45 = vmul.f32 %v7115_v13, %v3512_v58  ;;  %v1620_v2 = vpop.f32.mrb[32].mxu0  ;;  %v1940_v1 = vpop.f32.mrb[32].mxu1 }
 0x1f1   : > { %v4664_v41 = vmul.f32 %v4258_v4, %v3640_v39  ;;  %v3258_v30 = vadd.f32 %v7307_v29, %v2990_v36  ;;  %v3386_v9 = vadd.f32 %v7307_v29, %v3118_v55  ;;  %v6074_v8 = vpack.c.bf16 %v4535_v47, %v4534_v0  ;;  %v1622_v15 = vpop.f32.mrb[33].mxu0  ;;  %v1942_v3 = vpop.f32.mrb[33].mxu1 }
 0x1f2   : > { %v6138_v57 = vpack.c.bf16 %v4663_v40, %v4662_v61  ;;  %v3513_v46 = vmax.f32 %v3257_v26, 0.0  ;;  %v3641_v14 = vmax.f32 %v3385_v60, 0.0  ;;  %v2991_v21 = vmul.f32 %v7303_v10, %v1612_v63  ;;  %v1624_v61 = vpop.f32.mrb[34].mxu0  ;;  %v1944_v48 = vpop.f32.mrb[34].mxu1 }
 0x1f3   : > { %v3514_v42 = vmax.f32 %v3258_v30, 0.0  ;;  %v3642_v50 = vmax.f32 %v3386_v9, 0.0  ;;  %v3119_v16 = vmul.f32 %v7303_v10, %v1932_v25  ;;  %5546 = vst [vmem:[%s7363_s24 + $0x60] sm:$0xff] %v6074_v8  ;;  %v2992_v7 = vmul.f32 %v7297_v35, %v1614_v54  ;;  %v1626_v32 = vpop.f32.mrb[35].mxu0  ;;  %v1946_v19 = vpop.f32.mrb[35].mxu1 }
 0x1f4   : > { %5610 = vst [vmem:[%s7363_s24 + $0x260] sm:$0xff] %v6138_v57  ;;  %v4537_v20 = vmul.f32 %v7115_v13, %v3513_v46  ;;  %v4665_v31 = vmul.f32 %v4258_v4, %v3641_v14  ;;  %v3120_v0 = vmul.f32 %v7297_v35, %v1934_v56  ;;  %v3259_v63 = vadd.f32 %v7309_v6, %v2991_v21  ;;  %v4268_v47 = vpop.permute.xlu1 %4267 }
 0x1f5   : > { %v4538_v12 = vmul.f32 %v7123_v18, %v3514_v42  ;;  %v4666_v11 = vmul.f32 %v4263_v22, %v3642_v50  ;;  %v3387_v25 = vadd.f32 %v7309_v6, %v3119_v16  ;;  %v3260_v39 = vadd.f32 %v7307_v29, %v2992_v7  ;;  %v4273_v50 = vpop.permute.xlu0 %4272 }
 0x1f6   : > { %v6075_v58 = vpack.c.bf16 %v4537_v20, %v4536_v45  ;;  %v6139_v13 = vpack.c.bf16 %v4665_v31, %v4664_v41  ;;  %v3388_v54 = vadd.f32 %v7307_v29, %v3120_v0  ;;  %v3515_v56 = vmax.f32 %v3259_v63, 0.0 }
 0x1f7   : > { %v3643_v36 = vmax.f32 %v3387_v25, 0.0  ;;  %v2993_v55 = vmul.f32 %v7303_v10, %v1616_v51  ;;  %v3121_v4 = vmul.f32 %v7303_v10, %v1936_v53  ;;  %v3516_v40 = vmax.f32 %v3260_v39, 0.0 }
 0x1f8   : > { %5547 = vst [vmem:[%s7363_s24 + $0x68] sm:$0xff] %v6075_v58  ;;  %5611 = vst [vmem:[%s7363_s24 + $0x268] sm:$0xff] %v6139_v13  ;;  %v3644_v26 = vmax.f32 %v3388_v54, 0.0  ;;  %v2994_v60 = vmul.f32 %v7297_v35, %v1620_v2  ;;  %v3122_v45 = vmul.f32 %v7297_v35, %v1940_v1  ;;  %v4539_v41 = vmul.f32 %v7123_v18, %v3515_v56  ;;  %v1630_v57 = vpop.f32.mrb[36].mxu0  ;;  %v1950_v51 = vpop.f32.mrb[36].mxu1 }
 0x1f9   : > { %v4667_v30 = vmul.f32 %v4263_v22, %v3643_v36  ;;  %v3261_v9 = vadd.f32 %v7309_v6, %v2993_v55  ;;  %v3389_v8 = vadd.f32 %v7309_v6, %v3121_v4  ;;  %v4540_v53 = vmul.f32 %v7121_v17, %v3516_v40  ;;  %v1632_v42 = vpop.f32.mrb[37].mxu0  ;;  %v1952_v1 = vpop.f32.mrb[37].mxu1 }
 0x1fa   : > { %v4668_v46 = vmul.f32 %v4268_v47, %v3644_v26  ;;  %v3262_v14 = vadd.f32 %v7307_v29, %v2994_v60  ;;  %v3390_v2 = vadd.f32 %v7307_v29, %v3122_v45  ;;  %v6076_v18 = vpack.c.bf16 %v4539_v41, %v4538_v12  ;;  %v1634_v63 = vpop.f32.mrb[38].mxu0  ;;  %v1954_v25 = vpop.f32.mrb[38].mxu1 }
 0x1fb   : > { %v6140_v22 = vpack.c.bf16 %v4667_v30, %v4666_v11  ;;  %v3517_v21 = vmax.f32 %v3261_v9, 0.0  ;;  %v3645_v16 = vmax.f32 %v3389_v8, 0.0  ;;  %v2995_v7 = vmul.f32 %v7303_v10, %v1622_v15  ;;  %v1636_v11 = vpop.f32.mrb[39].mxu0  ;;  %v1956_v54 = vpop.f32.mrb[39].mxu1 }
 0x1fc   : > { %v3518_v20 = vmax.f32 %v3262_v14, 0.0  ;;  %v3646_v31 = vmax.f32 %v3390_v2, 0.0  ;;  %v3123_v0 = vmul.f32 %v7303_v10, %v1942_v3  ;;  %5548 = vst [vmem:[%s7363_s24 + $0x70] sm:$0xff] %v6076_v18  ;;  %v2996_v39 = vmul.f32 %v7297_v35, %v1624_v61  ;;  %v4278_v61 = vpop.permute.xlu1 %4277 }
 0x1fd   : > { %5612 = vst [vmem:[%s7363_s24 + $0x270] sm:$0xff] %v6140_v22  ;;  %v4541_v58 = vmul.f32 %v7121_v17, %v3517_v21  ;;  %v4669_v13 = vmul.f32 %v4268_v47, %v3645_v16  ;;  %v3124_v12 = vmul.f32 %v7297_v35, %v1944_v48  ;;  %v3263_v3 = vadd.f32 %v7309_v6, %v2995_v7 }
 0x1fe   : > { %v4542_v56 = vmul.f32 %v7133_v24, %v3518_v20  ;;  %v4670_v15 = vmul.f32 %v4273_v50, %v3646_v31  ;;  %v3391_v36 = vadd.f32 %v7309_v6, %v3123_v0  ;;  %v3264_v17 = vadd.f32 %v7307_v29, %v2996_v39 }
 0x1ff   : > { %v6077_v55 = vpack.c.bf16 %v4541_v58, %v4540_v53  ;;  %v6141_v4 = vpack.c.bf16 %v4669_v13, %v4668_v46  ;;  %v3392_v47 = vadd.f32 %v7307_v29, %v3124_v12  ;;  %v3519_v40 = vmax.f32 %v3263_v3, 0.0 }
 0x200   : > { %v3647_v48 = vmax.f32 %v3391_v36, 0.0  ;;  %v2997_v26 = vmul.f32 %v7303_v10, %v1626_v32  ;;  %v3125_v60 = vmul.f32 %v7303_v10, %v1946_v19  ;;  %v3520_v45 = vmax.f32 %v3264_v17, 0.0  ;;  %v1640_v8 = vpop.f32.mrb[40].mxu0  ;;  %v1960_v53 = vpop.f32.mrb[40].mxu1 }
 0x201   : > { %5549 = vst [vmem:[%s7363_s24 + $0x78] sm:$0xff] %v6077_v55  ;;  %5613 = vst [vmem:[%s7363_s24 + $0x278] sm:$0xff] %v6141_v4  ;;  %v3648_v41 = vmax.f32 %v3392_v47, 0.0  ;;  %v2998_v30 = vmul.f32 %v7297_v35, %v1630_v57  ;;  %v3126_v9 = vmul.f32 %v7297_v35, %v1950_v51  ;;  %v4543_v46 = vmul.f32 %v7133_v24, %v3519_v40  ;;  %v7563_v32 = vpop.f32.mrb[41].mxu0  ;;  %v7565_v19 = vpop.f32.mrb[41].mxu1 }
 0x202   : > { %v4671_v14 = vmul.f32 %v4273_v50, %v3647_v48  ;;  %v3265_v2 = vadd.f32 %v7309_v6, %v2997_v26  ;;  %v3393_v18 = vadd.f32 %v7309_v6, %v3125_v60  ;;  %v4544_v22 = vmul.f32 %v7131_v23, %v3520_v45  ;;  %v7570_v31 = vpop.f32.mrb[42].mxu0  ;;  %v7572_v7 = vpop.f32.mrb[42].mxu1 }
 0x203   : > { %v4672_v21 = vmul.f32 %v4278_v61, %v3648_v41  ;;  %v3266_v57 = vadd.f32 %v7307_v29, %v2998_v30  ;;  %v3394_v51 = vadd.f32 %v7307_v29, %v3126_v9  ;;  %v6078_v16 = vpack.c.bf16 %v4543_v46, %v4542_v56  ;;  %v7576_v12 = vpop.f32.mrb[43].mxu0  ;;  %v7578_v3 = vpop.f32.mrb[43].mxu1 }
 0x204   : > { %v6142_v24 = vpack.c.bf16 %v4671_v14, %v4670_v15  ;;  %v3521_v50 = vmax.f32 %v3265_v2, 0.0  ;;  %v3649_v20 = vmax.f32 %v3393_v18, 0.0  ;;  %v2999_v13 = vmul.f32 %v7303_v10, %v1632_v42  ;;  %v4283_v36 = vpop.permute.xlu0 %4282 }
 0x205   : > { %v3522_v0 = vmax.f32 %v3266_v57, 0.0  ;;  %v3650_v58 = vmax.f32 %v3394_v51, 0.0  ;;  %v3127_v39 = vmul.f32 %v7303_v10, %v1952_v1  ;;  %5550 = vst [vmem:[%s7363_s24 + $0x80] sm:$0xff] %v6078_v16  ;;  %v3000_v55 = vmul.f32 %v7297_v35, %v1634_v63 }
 0x206   : > { %5614 = vst [vmem:[%s7363_s24 + $0x280] sm:$0xff] %v6142_v24  ;;  %v4545_v56 = vmul.f32 %v7131_v23, %v3521_v50  ;;  %v4673_v15 = vmul.f32 %v4278_v61, %v3649_v20  ;;  %v3128_v4 = vmul.f32 %v7297_v35, %v1954_v25  ;;  %v3267_v1 = vadd.f32 %v7309_v6, %v2999_v13 }
 0x207   : > { %v4546_v42 = vmul.f32 %v7139_v28, %v3522_v0  ;;  %v4674_v17 = vmul.f32 %v4283_v36, %v3650_v58  ;;  %v3395_v47 = vadd.f32 %v7309_v6, %v3127_v39  ;;  %v3268_v26 = vadd.f32 %v7307_v29, %v3000_v55 }
 0x208   : > { %v6079_v40 = vpack.c.bf16 %v4545_v56, %v4544_v22  ;;  %v6143_v48 = vpack.c.bf16 %v4673_v15, %v4672_v21  ;;  %v3396_v23 = vadd.f32 %v7307_v29, %v3128_v4  ;;  %v3523_v61 = vmax.f32 %v3267_v1, 0.0  ;;  %v1650_v45 = vpop.f32.mrb[44].mxu0  ;;  %v1970_v41 = vpop.f32.mrb[44].mxu1 }
 0x209   : > { %v3651_v60 = vmax.f32 %v3395_v47, 0.0  ;;  %v3001_v63 = vmul.f32 %v7303_v10, %v1636_v11  ;;  %v3129_v25 = vmul.f32 %v7303_v10, %v1956_v54  ;;  %v3524_v30 = vmax.f32 %v3268_v26, 0.0  ;;  %v7596_v2 = vpop.f32.mrb[45].mxu0  ;;  %v7598_v18 = vpop.f32.mrb[45].mxu1 }
 0x20a   : > { %5551 = vst [vmem:[%s7363_s24 + $0x88] sm:$0xff] %v6079_v40  ;;  %5615 = vst [vmem:[%s7363_s24 + $0x288] sm:$0xff] %v6143_v48  ;;  %v3652_v9 = vmax.f32 %v3396_v23, 0.0  ;;  %v3002_v46 = vmul.f32 %v7297_v35, %v1640_v8  ;;  %v3130_v14 = vmul.f32 %v7297_v35, %v1960_v53  ;;  %v4288_v22 = vpop.permute.xlu1 %4287  ;;  %v4547_v21 = vmul.f32 %v7139_v28, %v3523_v61  ;;  %v7606_v24 = vpop.f32.mrb[46].mxu0 }
 0x20b   : > { %v4675_v11 = vmul.f32 %v4283_v36, %v3651_v60  ;;  %v3269_v54 = vadd.f32 %v7309_v6, %v3001_v63  ;;  %v3397_v57 = vadd.f32 %v7309_v6, %v3129_v25  ;;  %v4548_v51 = vmul.f32 %v7137_v27, %v3524_v30  ;;  %v7608_v50 = vpop.f32.mrb[46].mxu1  ;;  %v7610_v13 = vpop.f32.mrb[47].mxu0 }
 0x20c   : > { %v4676_v16 = vmul.f32 %v4288_v22, %v3652_v9  ;;  %v3270_v8 = vadd.f32 %v7307_v29, %v3002_v46  ;;  %v3398_v53 = vadd.f32 %v7307_v29, %v3130_v14  ;;  %v6080_v20 = vpack.c.bf16 %v4547_v21, %v4546_v42  ;;  %v7612_v39 = vpop.f32.mrb[47].mxu1  ;;  %v4293_v4 = vpop.permute.xlu0 %4292 }
 0x20d   : > { %v6144_v28 = vpack.c.bf16 %v4675_v11, %v4674_v17  ;;  %v3525_v0 = vmax.f32 %v3269_v54, 0.0  ;;  %v3653_v58 = vmax.f32 %v3397_v57, 0.0  ;;  %v3003_v15 = vmul.f32 %v7303_v10, %v7563_v32 }
 0x20e   : > { %v3526_v36 = vmax.f32 %v3270_v8, 0.0  ;;  %v3654_v56 = vmax.f32 %v3398_v53, 0.0  ;;  %v3131_v55 = vmul.f32 %v7303_v10, %v7565_v19  ;;  %5552 = vst [vmem:[%s7363_s24 + $0x90] sm:$0xff] %v6080_v20  ;;  %v3004_v1 = vmul.f32 %v7297_v35, %v7570_v31  ;;  %v4298_v14 = vpop.permute.xlu1 %4297 }
 0x20f   : > { %5616 = vst [vmem:[%s7363_s24 + $0x290] sm:$0xff] %v6144_v28  ;;  %v4549_v42 = vmul.f32 %v7137_v27, %v3525_v0  ;;  %v4677_v17 = vmul.f32 %v4288_v22, %v3653_v58  ;;  %v3132_v47 = vmul.f32 %v7297_v35, %v7572_v7  ;;  %v3271_v32 = vadd.f32 %v7309_v6, %v3003_v15 }
 0x210   : > { %v4550_v40 = vmul.f32 %v7149_v34, %v3526_v36  ;;  %v4678_v48 = vmul.f32 %v4293_v4, %v3654_v56  ;;  %v3399_v19 = vadd.f32 %v7309_v6, %v3131_v55  ;;  %v3272_v27 = vadd.f32 %v7307_v29, %v3004_v1  ;;  %v7630_v60 = vpop.f32.mrb[48].mxu0  ;;  %v7632_v31 = vpop.f32.mrb[48].mxu1 }
 0x211   : > { %v6081_v26 = vpack.c.bf16 %v4549_v42, %v4548_v51  ;;  %v6145_v23 = vpack.c.bf16 %v4677_v17, %v4676_v16  ;;  %v3400_v61 = vadd.f32 %v7307_v29, %v3132_v47  ;;  %v3527_v7 = vmax.f32 %v3271_v32, 0.0  ;;  %v7638_v9 = vpop.f32.mrb[49].mxu0  ;;  %v7640_v46 = vpop.f32.mrb[49].mxu1 }
 0x212   : > { %v3655_v63 = vmax.f32 %v3399_v19, 0.0  ;;  %v3005_v25 = vmul.f32 %v7303_v10, %v7576_v12  ;;  %v3133_v30 = vmul.f32 %v7303_v10, %v7578_v3  ;;  %v3528_v22 = vmax.f32 %v3272_v27, 0.0  ;;  %v7649_v16 = vpop.f32.mrb[50].mxu0  ;;  %v7651_v8 = vpop.f32.mrb[50].mxu1 }
 0x213   : > { %5553 = vst [vmem:[%s7363_s24 + $0x98] sm:$0xff] %v6081_v26  ;;  %5617 = vst [vmem:[%s7363_s24 + $0x298] sm:$0xff] %v6145_v23  ;;  %v3656_v21 = vmax.f32 %v3400_v61, 0.0  ;;  %v3006_v11 = vmul.f32 %v7297_v35, %v1650_v45  ;;  %v3134_v54 = vmul.f32 %v7297_v35, %v1970_v41  ;;  %v4551_v57 = vmul.f32 %v7149_v34, %v3527_v7  ;;  %v7656_v28 = vpop.f32.mrb[51].mxu0  ;;  %v7658_v34 = vpop.f32.mrb[51].mxu1 }
 0x214   : > { %v4679_v51 = vmul.f32 %v4293_v4, %v3655_v63  ;;  %v3273_v12 = vadd.f32 %v7309_v6, %v3005_v25  ;;  %v3401_v3 = vadd.f32 %v7309_v6, %v3133_v30  ;;  %v4552_v53 = vmul.f32 %v7147_v33, %v3528_v22  ;;  %v4303_v17 = vpop.permute.xlu0 %4302  ;;  %v4308_v63 = vpop.permute.xlu1 %4307 }
 0x215   : > { %v4680_v20 = vmul.f32 %v4298_v14, %v3656_v21  ;;  %v3274_v45 = vadd.f32 %v7307_v29, %v3006_v11  ;;  %v3402_v41 = vadd.f32 %v7307_v29, %v3134_v54  ;;  %v6082_v0 = vpack.c.bf16 %v4551_v57, %v4550_v40 }
 0x216   : > { %v6146_v58 = vpack.c.bf16 %v4679_v51, %v4678_v48  ;;  %v3529_v36 = vmax.f32 %v3273_v12, 0.0  ;;  %v3657_v56 = vmax.f32 %v3401_v3, 0.0  ;;  %v3007_v4 = vmul.f32 %v7303_v10, %v7596_v2 }
 0x217   : > { %v3530_v15 = vmax.f32 %v3274_v45, 0.0  ;;  %v3658_v55 = vmax.f32 %v3402_v41, 0.0  ;;  %v3135_v42 = vmul.f32 %v7303_v10, %v7598_v18  ;;  %5554 = vst [vmem:[%s7363_s24 + $0xa0] sm:$0xff] %v6082_v0  ;;  %v3008_v40 = vmul.f32 %v7297_v35, %v7606_v24 }
 0x218   : > { %5618 = vst [vmem:[%s7363_s24 + $0x2a0] sm:$0xff] %v6146_v58  ;;  %v4553_v1 = vmul.f32 %v7147_v33, %v3529_v36  ;;  %v4681_v47 = vmul.f32 %v4298_v14, %v3657_v56  ;;  %v3136_v48 = vmul.f32 %v7297_v35, %v7608_v50  ;;  %v3275_v2 = vadd.f32 %v7309_v6, %v3007_v4  ;;  %v7674_v26 = vpop.f32.mrb[52].mxu0  ;;  %v7676_v23 = vpop.f32.mrb[52].mxu1 }
 0x219   : > { %v4554_v32 = vmul.f32 %v7155_v38, %v3530_v15  ;;  %v4682_v19 = vmul.f32 %v4303_v17, %v3658_v55  ;;  %v3403_v18 = vadd.f32 %v7309_v6, %v3135_v42  ;;  %v3276_v24 = vadd.f32 %v7307_v29, %v3008_v40  ;;  %v7680_v50 = vpop.f32.mrb[53].mxu0  ;;  %v7682_v7 = vpop.f32.mrb[53].mxu1 }
 0x21a   : > { %v6083_v33 = vpack.c.bf16 %v4553_v1, %v4552_v53  ;;  %v6147_v27 = vpack.c.bf16 %v4681_v47, %v4680_v20  ;;  %v3404_v61 = vadd.f32 %v7307_v29, %v3136_v48  ;;  %v3531_v25 = vmax.f32 %v3275_v2, 0.0  ;;  %v7694_v51 = vpop.f32.mrb[54].mxu0  ;;  %v7696_v12 = vpop.f32.mrb[54].mxu1 }
 0x21b   : > { %v3659_v30 = vmax.f32 %v3403_v18, 0.0  ;;  %v3009_v14 = vmul.f32 %v7303_v10, %v7610_v13  ;;  %v3137_v22 = vmul.f32 %v7303_v10, %v7612_v39  ;;  %v3532_v21 = vmax.f32 %v3276_v24, 0.0  ;;  %v7701_v20 = vpop.f32.mrb[55].mxu0  ;;  %v7703_v45 = vpop.f32.mrb[55].mxu1 }
 0x21c   : > { %5555 = vst [vmem:[%s7363_s24 + $0xa8] sm:$0xff] %v6083_v33  ;;  %5619 = vst [vmem:[%s7363_s24 + $0x2a8] sm:$0xff] %v6147_v27  ;;  %v3660_v11 = vmax.f32 %v3404_v61, 0.0  ;;  %v3010_v54 = vmul.f32 %v7297_v35, %v7630_v60  ;;  %v3138_v57 = vmul.f32 %v7297_v35, %v7632_v31  ;;  %v4555_v3 = vmul.f32 %v7155_v38, %v3531_v25  ;;  %v4313_v15 = vpop.permute.xlu0 %4312 }
 0x21d   : > { %v4683_v13 = vmul.f32 %v4303_v17, %v3659_v30  ;;  %v3277_v53 = vadd.f32 %v7309_v6, %v3009_v14  ;;  %v3405_v39 = vadd.f32 %v7309_v6, %v3137_v22  ;;  %v4556_v60 = vmul.f32 %v7153_v37, %v3532_v21 }
 0x21e   : > { %v4684_v31 = vmul.f32 %v4308_v63, %v3660_v11  ;;  %v3278_v41 = vadd.f32 %v7307_v29, %v3010_v54  ;;  %v3406_v0 = vadd.f32 %v7307_v29, %v3138_v57  ;;  %v6084_v58 = vpack.c.bf16 %v4555_v3, %v4554_v32 }
 0x21f   : > { %v6148_v38 = vpack.c.bf16 %v4683_v13, %v4682_v19  ;;  %v3533_v36 = vmax.f32 %v3277_v53, 0.0  ;;  %v3661_v56 = vmax.f32 %v3405_v39, 0.0  ;;  %v3011_v42 = vmul.f32 %v7303_v10, %v7638_v9  ;;  %v4318_v13 = vpop.permute.xlu1 %4317 }
 0x220   : > { %v3534_v55 = vmax.f32 %v3278_v41, 0.0  ;;  %v3662_v4 = vmax.f32 %v3406_v0, 0.0  ;;  %v3139_v17 = vmul.f32 %v7303_v10, %v7640_v46  ;;  %5556 = vst [vmem:[%s7363_s24 + $0xb0] sm:$0xff] %v6084_v58  ;;  %v3012_v40 = vmul.f32 %v7297_v35, %v7649_v16  ;;  %v7719_v32 = vpop.f32.mrb[56].mxu0  ;;  %v7721_v19 = vpop.f32.mrb[56].mxu1 }
 0x221   : > { %5620 = vst [vmem:[%s7363_s24 + $0x2b0] sm:$0xff] %v6148_v38  ;;  %v4557_v1 = vmul.f32 %v7153_v37, %v3533_v36  ;;  %v4685_v47 = vmul.f32 %v4308_v63, %v3661_v56  ;;  %v3140_v48 = vmul.f32 %v7297_v35, %v7651_v8  ;;  %v3279_v46 = vadd.f32 %v7309_v6, %v3011_v42  ;;  %v7726_v18 = vpop.f32.mrb[57].mxu0  ;;  %v7728_v33 = vpop.f32.mrb[57].mxu1 }
 0x222   : > { %v4558_v9 = vmul.f32 %v7165_v44, %v3534_v55  ;;  %v4686_v2 = vmul.f32 %v4313_v15, %v3662_v4  ;;  %v3407_v37 = vadd.f32 %v7309_v6, %v3139_v17  ;;  %v3280_v8 = vadd.f32 %v7307_v29, %v3012_v40  ;;  %v7736_v14 = vpop.f32.mrb[58].mxu0  ;;  %v7738_v22 = vpop.f32.mrb[58].mxu1 }
 0x223   : > { %v6085_v16 = vpack.c.bf16 %v4557_v1, %v4556_v60  ;;  %v6149_v27 = vpack.c.bf16 %v4685_v47, %v4684_v31  ;;  %v3408_v24 = vadd.f32 %v7307_v29, %v3140_v48  ;;  %v3535_v61 = vmax.f32 %v3279_v46, 0.0  ;;  %v7746_v3 = vpop.f32.mrb[59].mxu0  ;;  %v4323_v0 = vpop.permute.xlu0 %4322 }
 0x224   : > { %v3663_v63 = vmax.f32 %v3407_v37, 0.0  ;;  %v3013_v25 = vmul.f32 %v7303_v10, %v7656_v28  ;;  %v3141_v30 = vmul.f32 %v7303_v10, %v7658_v34  ;;  %v3536_v21 = vmax.f32 %v3280_v8, 0.0  ;;  %v7748_v28 = vpop.f32.mrb[59].mxu1 }
 0x225   : > { %5557 = vst [vmem:[%s7363_s24 + $0xb8] sm:$0xff] %v6085_v16  ;;  %5621 = vst [vmem:[%s7363_s24 + $0x2b8] sm:$0xff] %v6149_v27  ;;  %v3664_v11 = vmax.f32 %v3408_v24, 0.0  ;;  %v3014_v54 = vmul.f32 %v7297_v35, %v7674_v26  ;;  %v3142_v57 = vmul.f32 %v7297_v35, %v7676_v23  ;;  %v4559_v34 = vmul.f32 %v7165_v44, %v3535_v61 }
 0x226   : > { %v4687_v53 = vmul.f32 %v4313_v15, %v3663_v63  ;;  %v3281_v39 = vadd.f32 %v7309_v6, %v3013_v25  ;;  %v3409_v60 = vadd.f32 %v7309_v6, %v3141_v30  ;;  %v4560_v31 = vmul.f32 %v7163_v43, %v3536_v21 }
 0x227   : > { %v4688_v26 = vmul.f32 %v4318_v13, %v3664_v11  ;;  %v3282_v41 = vadd.f32 %v7307_v29, %v3014_v54  ;;  %v3410_v23 = vadd.f32 %v7307_v29, %v3142_v57  ;;  %v6086_v58 = vpack.c.bf16 %v4559_v34, %v4558_v9  ;;  %v4328_v34 = vpop.permute.xlu1 %4327 }
 0x228   : > { %v6150_v38 = vpack.c.bf16 %v4687_v53, %v4686_v2  ;;  %v3537_v36 = vmax.f32 %v3281_v39, 0.0  ;;  %v3665_v56 = vmax.f32 %v3409_v60, 0.0  ;;  %v3015_v55 = vmul.f32 %v7303_v10, %v7680_v50  ;;  %v7760_v42 = vpop.f32.mrb[60].mxu0  ;;  %v7762_v17 = vpop.f32.mrb[60].mxu1 }
 0x229   : > { %v3538_v44 = vmax.f32 %v3282_v41, 0.0  ;;  %v3666_v15 = vmax.f32 %v3410_v23, 0.0  ;;  %v3143_v4 = vmul.f32 %v7303_v10, %v7682_v7  ;;  %5558 = vst [vmem:[%s7363_s24 + $0xc0] sm:$0xff] %v6086_v58  ;;  %v3016_v40 = vmul.f32 %v7297_v35, %v7694_v51  ;;  %v7771_v9 = vpop.f32.mrb[61].mxu0  ;;  %v7773_v50 = vpop.f32.mrb[61].mxu1 }
 0x22a   : > { %5622 = vst [vmem:[%s7363_s24 + $0x2c0] sm:$0xff] %v6150_v38  ;;  %v4561_v1 = vmul.f32 %v7163_v43, %v3537_v36  ;;  %v4689_v47 = vmul.f32 %v4318_v13, %v3665_v56  ;;  %v3144_v48 = vmul.f32 %v7297_v35, %v7696_v12  ;;  %v3283_v46 = vadd.f32 %v7309_v6, %v3015_v55  ;;  %v7780_v12 = vpop.f32.mrb[62].mxu0  ;;  %v7782_v8 = vpop.f32.mrb[62].mxu1 }
 0x22b   : > { %v4562_v7 = vmul.f32 %v7171_v52, %v3538_v44  ;;  %v4690_v2 = vmul.f32 %v4323_v0, %v3666_v15  ;;  %v3411_v43 = vadd.f32 %v7309_v6, %v3143_v4  ;;  %v3284_v51 = vadd.f32 %v7307_v29, %v3016_v40  ;;  %v7788_v30 = vpop.f32.mrb[63].mxu0  ;;  %v7790_v21 = vpop.f32.mrb[63].mxu1 }
 0x22c   : > { %v6087_v37 = vpack.c.bf16 %v4561_v1, %v4560_v31  ;;  %v6151_v16 = vpack.c.bf16 %v4689_v47, %v4688_v26  ;;  %v3412_v27 = vadd.f32 %v7307_v29, %v3144_v48  ;;  %v3539_v24 = vmax.f32 %v3283_v46, 0.0  ;;  %v4333_v60 = vpop.permute.xlu0 %4332 }
 0x22d   : > { %v3667_v61 = vmax.f32 %v3411_v43, 0.0  ;;  %v3017_v63 = vmul.f32 %v7303_v10, %v7701_v20  ;;  %v3145_v25 = vmul.f32 %v7303_v10, %v7703_v45  ;;  %v3540_v11 = vmax.f32 %v3284_v51, 0.0 }
 0x22e   : > { %5559 = vst [vmem:[%s7363_s24 + $0xc8] sm:$0xff] %v6087_v37  ;;  %5623 = vst [vmem:[%s7363_s24 + $0x2c8] sm:$0xff] %v6151_v16  ;;  %v3668_v54 = vmax.f32 %v3412_v27, 0.0  ;;  %v3018_v57 = vmul.f32 %v7297_v35, %v7719_v32  ;;  %v3146_v13 = vmul.f32 %v7297_v35, %v7721_v19  ;;  %v4563_v20 = vmul.f32 %v7171_v52, %v3539_v24 }
 0x22f   : > { %v4691_v53 = vmul.f32 %v4323_v0, %v3667_v61  ;;  %v3285_v45 = vadd.f32 %v7309_v6, %v3017_v63  ;;  %v3413_v39 = vadd.f32 %v7309_v6, %v3145_v25  ;;  %v4564_v31 = vmul.f32 %v7169_v49, %v3540_v11 }
 0x230   : > { %v4692_v26 = vmul.f32 %v4328_v34, %v3668_v54  ;;  %v3286_v41 = vadd.f32 %v7307_v29, %v3018_v57  ;;  %v3414_v32 = vadd.f32 %v7307_v29, %v3146_v13  ;;  %v6088_v23 = vpack.c.bf16 %v4563_v20, %v4562_v7  ;;  %v7804_v52 = vpop.f32.mrb[64].mxu0  ;;  %v7806_v0 = vpop.f32.mrb[64].mxu1 }
 0x231   : > { %v6152_v19 = vpack.c.bf16 %v4691_v53, %v4690_v2  ;;  %v3541_v58 = vmax.f32 %v3285_v45, 0.0  ;;  %v3669_v38 = vmax.f32 %v3413_v39, 0.0  ;;  %v3019_v44 = vmul.f32 %v7303_v10, %v7726_v18  ;;  %v7812_v55 = vpop.f32.mrb[65].mxu0  ;;  %v7814_v4 = vpop.f32.mrb[65].mxu1 }
 0x232   : > { %v3542_v36 = vmax.f32 %v3286_v41, 0.0  ;;  %v3670_v56 = vmax.f32 %v3414_v32, 0.0  ;;  %v3147_v15 = vmul.f32 %v7303_v10, %v7728_v33  ;;  %5560 = vst [vmem:[%s7363_s24 + $0xd0] sm:$0xff] %v6088_v23  ;;  %v3020_v40 = vmul.f32 %v7297_v35, %v7736_v14  ;;  %v7826_v46 = vpop.f32.mrb[66].mxu0  ;;  %v7828_v43 = vpop.f32.mrb[66].mxu1 }
 0x233   : > { %5624 = vst [vmem:[%s7363_s24 + $0x2d0] sm:$0xff] %v6152_v19  ;;  %v4565_v1 = vmul.f32 %v7169_v49, %v3541_v58  ;;  %v4693_v47 = vmul.f32 %v4328_v34, %v3669_v38  ;;  %v3148_v48 = vmul.f32 %v7297_v35, %v7738_v22  ;;  %v3287_v33 = vadd.f32 %v7309_v6, %v3019_v44  ;;  %v7832_v22 = vpop.f32.mrb[67].mxu0  ;;  %v7834_v51 = vpop.f32.mrb[67].mxu1 }
 0x234   : > { %v4566_v18 = vmul.f32 %v7181_v62, %v3542_v36  ;;  %v4694_v7 = vmul.f32 %v4333_v60, %v3670_v56  ;;  %v3415_v2 = vadd.f32 %v7309_v6, %v3147_v15  ;;  %v3288_v14 = vadd.f32 %v7307_v29, %v3020_v40  ;;  %v4338_v13 = vpop.permute.xlu1 %4337  ;;  %v4343_v34 = vpop.permute.xlu0 %4342 }
 0x235   : > { %v6089_v49 = vpack.c.bf16 %v4565_v1, %v4564_v31  ;;  %v6153_v37 = vpack.c.bf16 %v4693_v47, %v4692_v26  ;;  %v3416_v16 = vadd.f32 %v7307_v29, %v3148_v48  ;;  %v3543_v27 = vmax.f32 %v3287_v33, 0.0 }
 0x236   : > { %v3671_v24 = vmax.f32 %v3415_v2, 0.0  ;;  %v3021_v61 = vmul.f32 %v7303_v10, %v7746_v3  ;;  %v3149_v63 = vmul.f32 %v7303_v10, %v7748_v28  ;;  %v3544_v25 = vmax.f32 %v3288_v14, 0.0 }
 0x237   : > { %5561 = vst [vmem:[%s7363_s24 + $0xd8] sm:$0xff] %v6089_v49  ;;  %5625 = vst [vmem:[%s7363_s24 + $0x2d8] sm:$0xff] %v6153_v37  ;;  %v3672_v11 = vmax.f32 %v3416_v16, 0.0  ;;  %v3022_v54 = vmul.f32 %v7297_v35, %v7760_v42  ;;  %v3150_v57 = vmul.f32 %v7297_v35, %v7762_v17  ;;  %v4567_v20 = vmul.f32 %v7181_v62, %v3543_v27 }
 0x238   : > { %v4695_v53 = vmul.f32 %v4333_v60, %v3671_v24  ;;  %v3289_v3 = vadd.f32 %v7309_v6, %v3021_v61  ;;  %v3417_v45 = vadd.f32 %v7309_v6, %v3149_v63  ;;  %v4568_v28 = vmul.f32 %v7179_v59, %v3544_v25  ;;  %v7852_v26 = vpop.f32.mrb[68].mxu0  ;;  %v7854_v17 = vpop.f32.mrb[68].mxu1 }
 0x239   : > { %v4696_v39 = vmul.f32 %v4338_v13, %v3672_v11  ;;  %v3290_v31 = vadd.f32 %v7307_v29, %v3022_v54  ;;  %v3418_v42 = vadd.f32 %v7307_v29, %v3150_v57  ;;  %v6090_v41 = vpack.c.bf16 %v4567_v20, %v4566_v18  ;;  %v7856_v23 = vpop.f32.mrb[69].mxu0  ;;  %v7858_v19 = vpop.f32.mrb[69].mxu1 }
 0x23a   : > { %v6154_v62 = vpack.c.bf16 %v4695_v53, %v4694_v7  ;;  %v3545_v60 = vmax.f32 %v3289_v3, 0.0  ;;  %v3673_v32 = vmax.f32 %v3417_v45, 0.0  ;;  %v3023_v36 = vmul.f32 %v7303_v10, %v7771_v9  ;;  %v7864_v44 = vpop.f32.mrb[70].mxu0  ;;  %v7866_v15 = vpop.f32.mrb[70].mxu1  ;;  %v8813_v53 = vld [vmem:[#allocation23_spill] sm:$0xff] }
 0x23b   : > { %v3546_v58 = vmax.f32 %v3290_v31, 0.0  ;;  %v3674_v38 = vmax.f32 %v3418_v42, 0.0  ;;  %v3151_v56 = vmul.f32 %v7303_v10, %v7773_v50  ;;  %5562 = vst [vmem:[%s7363_s24 + $0xe0] sm:$0xff] %v6090_v41  ;;  %v3024_v40 = vmul.f32 %v7297_v35, %v7780_v12  ;;  %v7875_v9 = vpop.f32.mrb[71].mxu0  ;;  %v7877_v50 = vpop.f32.mrb[71].mxu1 }
 0x23c   : > { %5626 = vst [vmem:[%s7363_s24 + $0x2e0] sm:$0xff] %v6154_v62  ;;  %v4569_v1 = vmul.f32 %v7179_v59, %v3545_v60  ;;  %v4697_v47 = vmul.f32 %v4338_v13, %v3673_v32  ;;  %v3152_v48 = vmul.f32 %v7297_v35, %v7782_v8  ;;  %v3291_v33 = vadd.f32 %v7309_v6, %v3023_v36  ;;  %v4348_v24 = vpop.permute.xlu1 %4347 }
 0x23d   : > { %v4570_v18 = vmul.f32 %v7187_v5, %v3546_v58  ;;  %v4698_v7 = vmul.f32 %v4343_v34, %v3674_v38  ;;  %v3419_v59 = vadd.f32 %v7309_v6, %v3151_v56  ;;  %v3292_v12 = vadd.f32 %v7307_v29, %v3024_v40 }
 0x23e   : > { %v6091_v2 = vpack.c.bf16 %v4569_v1, %v4568_v28  ;;  %v6155_v49 = vpack.c.bf16 %v4697_v47, %v4696_v39  ;;  %v3420_v37 = vadd.f32 %v7307_v29, %v3152_v48  ;;  %v3547_v8 = vmax.f32 %v3291_v33, 0.0  ;;  %v4353_v1 = vpop.permute.xlu0 %4352 }
 0x23f   : > { %v3675_v14 = vmax.f32 %v3419_v59, 0.0  ;;  %v3025_v16 = vmul.f32 %v7303_v10, %v7788_v30  ;;  %v3153_v27 = vmul.f32 %v7303_v10, %v7790_v21  ;;  %v3548_v61 = vmax.f32 %v3292_v12, 0.0 }
 0x240   : > { %5563 = vst [vmem:[%s7363_s24 + $0xe8] sm:$0xff] %v6091_v2  ;;  %5627 = vst [vmem:[%s7363_s24 + $0x2e8] sm:$0xff] %v6155_v49  ;;  %v3676_v63 = vmax.f32 %v3420_v37, 0.0  ;;  %v3026_v25 = vmul.f32 %v7297_v35, %v7804_v52  ;;  %v3154_v11 = vmul.f32 %v7297_v35, %v7806_v0  ;;  %v4571_v54 = vmul.f32 %v7187_v5, %v3547_v8  ;;  %v7897_v20 = vpop.f32.mrb[72].mxu0  ;;  %v7899_v21 = vpop.f32.mrb[72].mxu1 }
 0x241   : > { %v4699_v57 = vmul.f32 %v4343_v34, %v3675_v14  ;;  %v3293_v13 = vadd.f32 %v7309_v6, %v3025_v16  ;;  %v3421_v30 = vadd.f32 %v7309_v6, %v3153_v27  ;;  %v4572_v3 = vmul.f32 %v8813_v53, %v3548_v61  ;;  %v7904_v0 = vpop.f32.mrb[73].mxu0  ;;  %v7906_v5 = vpop.f32.mrb[73].mxu1 }
 0x242   : > { %v4700_v45 = vmul.f32 %v4348_v24, %v3676_v63  ;;  %v3294_v28 = vadd.f32 %v7307_v29, %v3026_v25  ;;  %v3422_v52 = vadd.f32 %v7307_v29, %v3154_v11  ;;  %v6092_v34 = vpack.c.bf16 %v4571_v54, %v4570_v18  ;;  %v7908_v41 = vpop.f32.mrb[74].mxu0  ;;  %v7910_v62 = vpop.f32.mrb[74].mxu1  ;;  %v8814_v18 = vld [vmem:[#allocation25_spill] sm:$0xff] }
 0x243   : > { %v6156_v39 = vpack.c.bf16 %v4699_v57, %v4698_v7  ;;  %v3549_v31 = vmax.f32 %v3293_v13, 0.0  ;;  %v3677_v42 = vmax.f32 %v3421_v30, 0.0  ;;  %v3027_v58 = vmul.f32 %v7303_v10, %v7812_v55  ;;  %v7916_v36 = vpop.f32.mrb[75].mxu0  ;;  %v7918_v56 = vpop.f32.mrb[75].mxu1 }
 0x244   : > { %v3550_v60 = vmax.f32 %v3294_v28, 0.0  ;;  %v3678_v32 = vmax.f32 %v3422_v52, 0.0  ;;  %v3155_v38 = vmul.f32 %v7303_v10, %v7814_v4  ;;  %5564 = vst [vmem:[%s7363_s24 + $0xf0] sm:$0xff] %v6092_v34  ;;  %v3028_v48 = vmul.f32 %v7297_v35, %v7826_v46  ;;  %v4358_v8 = vpop.permute.xlu1 %4357 }
 0x245   : > { %5628 = vst [vmem:[%s7363_s24 + $0x2f0] sm:$0xff] %v6156_v39  ;;  %v4573_v47 = vmul.f32 %v8813_v53, %v3549_v31  ;;  %v4701_v40 = vmul.f32 %v4348_v24, %v3677_v42  ;;  %v3156_v55 = vmul.f32 %v7297_v35, %v7828_v43  ;;  %v3295_v33 = vadd.f32 %v7309_v6, %v3027_v58  ;;  %v8815_v53 = vld [vmem:[#allocation24_spill] sm:$0xff] }
 0x246   : > { %v4574_v4 = vmul.f32 %v8814_v18, %v3550_v60  ;;  %v4702_v7 = vmul.f32 %v4353_v1, %v3678_v32  ;;  %v3423_v59 = vadd.f32 %v7309_v6, %v3155_v38  ;;  %v3296_v12 = vadd.f32 %v7307_v29, %v3028_v48 }
 0x247   : > { %v6093_v2 = vpack.c.bf16 %v4573_v47, %v4572_v3  ;;  %v6157_v49 = vpack.c.bf16 %v4701_v40, %v4700_v45  ;;  %v3424_v37 = vadd.f32 %v7307_v29, %v3156_v55  ;;  %v3551_v14 = vmax.f32 %v3295_v33, 0.0  ;;  %v4363_v40 = vpop.permute.xlu0 %4362 }
 0x248   : > { %v3679_v46 = vmax.f32 %v3423_v59, 0.0  ;;  %v3029_v16 = vmul.f32 %v7303_v10, %v7832_v22  ;;  %v3157_v43 = vmul.f32 %v7303_v10, %v7834_v51  ;;  %v3552_v27 = vmax.f32 %v3296_v12, 0.0  ;;  %v7942_v25 = vpop.f32.mrb[76].mxu0  ;;  %v7944_v11 = vpop.f32.mrb[76].mxu1 }
 0x249   : > { %5565 = vst [vmem:[%s7363_s24 + $0xf8] sm:$0xff] %v6093_v2  ;;  %5629 = vst [vmem:[%s7363_s24 + $0x2f8] sm:$0xff] %v6157_v49  ;;  %v3680_v24 = vmax.f32 %v3424_v37, 0.0  ;;  %v3030_v61 = vmul.f32 %v7297_v35, %v7852_v26  ;;  %v3158_v63 = vmul.f32 %v7297_v35, %v7854_v17  ;;  %v4575_v54 = vmul.f32 %v8814_v18, %v3551_v14  ;;  %v7949_v13 = vpop.f32.mrb[77].mxu0  ;;  %v7951_v30 = vpop.f32.mrb[77].mxu1 }
 0x24a   : > { %v4703_v22 = vmul.f32 %v4353_v1, %v3679_v46  ;;  %v3297_v57 = vadd.f32 %v7309_v6, %v3029_v16  ;;  %v3425_v51 = vadd.f32 %v7309_v6, %v3157_v43  ;;  %v4576_v26 = vmul.f32 %v8815_v53, %v3552_v27  ;;  %v7956_v28 = vpop.f32.mrb[78].mxu0  ;;  %v7958_v52 = vpop.f32.mrb[78].mxu1 }
 0x24b   : > { %v4704_v3 = vmul.f32 %v4358_v8, %v3680_v24  ;;  %v3298_v17 = vadd.f32 %v7307_v29, %v3030_v61  ;;  %v3426_v45 = vadd.f32 %v7307_v29, %v3158_v63  ;;  %v6094_v34 = vpack.c.bf16 %v4575_v54, %v4574_v4  ;;  %v7960_v60 = vpop.f32.mrb[79].mxu0  ;;  %v7962_v32 = vpop.f32.mrb[79].mxu1 }
 0x24c   : > { %v6158_v39 = vpack.c.bf16 %v4703_v22, %v4702_v7  ;;  %v3553_v31 = vmax.f32 %v3297_v57, 0.0  ;;  %v3681_v42 = vmax.f32 %v3425_v51, 0.0  ;;  %v3031_v1 = vmul.f32 %v7303_v10, %v7856_v23  ;;  %v8816_v7 = vld [vmem:[#allocation27_spill] sm:$0xff]  ;;  %v4368_v2 = vpop.permute.xlu1 %4367 }
 0x24d   : > { %v3554_v58 = vmax.f32 %v3298_v17, 0.0  ;;  %v3682_v38 = vmax.f32 %v3426_v45, 0.0  ;;  %v3159_v47 = vmul.f32 %v7303_v10, %v7858_v19  ;;  %5566 = vst [vmem:[%s7363_s24 + $0x100] sm:$0xff] %v6094_v34  ;;  %v3032_v18 = vmul.f32 %v7297_v35, %v7864_v44 }
 0x24e   : > { %5630 = vst [vmem:[%s7363_s24 + $0x300] sm:$0xff] %v6158_v39  ;;  %v4577_v48 = vmul.f32 %v8815_v53, %v3553_v31  ;;  %v4705_v55 = vmul.f32 %v4358_v8, %v3681_v42  ;;  %v3160_v4 = vmul.f32 %v7297_v35, %v7866_v15  ;;  %v3299_v59 = vadd.f32 %v7309_v6, %v3031_v1 }
 0x24f   : > { %v4578_v33 = vmul.f32 %v8816_v7, %v3554_v58  ;;  %v4706_v23 = vmul.f32 %v4363_v40, %v3682_v38  ;;  %v3427_v19 = vadd.f32 %v7309_v6, %v3159_v47  ;;  %v3300_v37 = vadd.f32 %v7307_v29, %v3032_v18 }
 0x250   : > { %v6095_v49 = vpack.c.bf16 %v4577_v48, %v4576_v26  ;;  %v6159_v12 = vpack.c.bf16 %v4705_v55, %v4704_v3  ;;  %v3428_v8 = vadd.f32 %v7307_v29, %v3160_v4  ;;  %v3555_v44 = vmax.f32 %v3299_v59, 0.0  ;;  %v7984_v16 = vpop.f32.mrb[80].mxu0  ;;  %v7986_v43 = vpop.f32.mrb[80].mxu1  ;;  %v8817_v3 = vld [vmem:[#allocation26_spill] sm:$0xff]  ;;  %v8818_v59 = vld [vmem:[#allocation29_spill] sm:$0xff] }
 0x251   : > { %v3683_v14 = vmax.f32 %v3427_v19, 0.0  ;;  %v3033_v15 = vmul.f32 %v7303_v10, %v7875_v9  ;;  %v3161_v46 = vmul.f32 %v7303_v10, %v7877_v50  ;;  %v3556_v27 = vmax.f32 %v3300_v37, 0.0  ;;  %v7994_v54 = vpop.f32.mrb[81].mxu0  ;;  %v7996_v9 = vpop.f32.mrb[81].mxu1 }
 0x252   : > { %5567 = vst [vmem:[%s7363_s24 + $0x108] sm:$0xff] %v6095_v49  ;;  %5631 = vst [vmem:[%s7363_s24 + $0x308] sm:$0xff] %v6159_v12  ;;  %v3684_v24 = vmax.f32 %v3428_v8, 0.0  ;;  %v3034_v61 = vmul.f32 %v7297_v35, %v7897_v20  ;;  %v3162_v63 = vmul.f32 %v7297_v35, %v7899_v21  ;;  %v4579_v50 = vmul.f32 %v8816_v7, %v3555_v44  ;;  %v8001_v53 = vpop.f32.mrb[82].mxu0  ;;  %v8003_v26 = vpop.f32.mrb[82].mxu1 }
 0x253   : > { %v4707_v22 = vmul.f32 %v4363_v40, %v3683_v14  ;;  %v3301_v57 = vadd.f32 %v7309_v6, %v3033_v15  ;;  %v3429_v51 = vadd.f32 %v7309_v6, %v3161_v46  ;;  %v4580_v20 = vmul.f32 %v8817_v3, %v3556_v27  ;;  %v8008_v34 = vpop.f32.mrb[83].mxu0  ;;  %v8010_v39 = vpop.f32.mrb[83].mxu1 }
 0x254   : > { %v4708_v21 = vmul.f32 %v4368_v2, %v3684_v24  ;;  %v3302_v17 = vadd.f32 %v7307_v29, %v3034_v61  ;;  %v3430_v45 = vadd.f32 %v7307_v29, %v3162_v63  ;;  %v6096_v31 = vpack.c.bf16 %v4579_v50, %v4578_v33  ;;  %v4373_v55 = vpop.permute.xlu0 %4372 }
 0x255   : > { %v6160_v42 = vpack.c.bf16 %v4707_v22, %v4706_v23  ;;  %v3557_v58 = vmax.f32 %v3301_v57, 0.0  ;;  %v3685_v38 = vmax.f32 %v3429_v51, 0.0  ;;  %v3035_v40 = vmul.f32 %v7303_v10, %v7904_v0  ;;  %v4378_v23 = vpop.permute.xlu1 %4377 }
 0x256   : > { %v3558_v1 = vmax.f32 %v3302_v17, 0.0  ;;  %v3686_v47 = vmax.f32 %v3430_v45, 0.0  ;;  %v3163_v48 = vmul.f32 %v7303_v10, %v7906_v5  ;;  %5568 = vst [vmem:[%s7363_s24 + $0x110] sm:$0xff] %v6096_v31  ;;  %v3036_v7 = vmul.f32 %v7297_v35, %v7908_v41 }
 0x257   : > { %5632 = vst [vmem:[%s7363_s24 + $0x310] sm:$0xff] %v6160_v42  ;;  %v4581_v18 = vmul.f32 %v8817_v3, %v3557_v58  ;;  %v4709_v4 = vmul.f32 %v4368_v2, %v3685_v38  ;;  %v3164_v33 = vmul.f32 %v7297_v35, %v7910_v62  ;;  %v3303_v5 = vadd.f32 %v7309_v6, %v3035_v40 }
 0x258   : > { %v4582_v19 = vmul.f32 %v8818_v59, %v3558_v1  ;;  %v4710_v0 = vmul.f32 %v4373_v55, %v3686_v47  ;;  %v3431_v49 = vadd.f32 %v7309_v6, %v3163_v48  ;;  %v3304_v2 = vadd.f32 %v7307_v29, %v3036_v7  ;;  %v8028_v41 = vpop.f32.mrb[84].mxu0  ;;  %v8030_v44 = vpop.f32.mrb[84].mxu1 }
 0x259   : > { %v6097_v12 = vpack.c.bf16 %v4581_v18, %v4580_v20  ;;  %v6161_v37 = vpack.c.bf16 %v4709_v4, %v4708_v21  ;;  %v3432_v8 = vadd.f32 %v7307_v29, %v3164_v33  ;;  %v3559_v62 = vmax.f32 %v3303_v5, 0.0  ;;  %v8036_v27 = vpop.f32.mrb[85].mxu0  ;;  %v8038_v24 = vpop.f32.mrb[85].mxu1 }
 0x25a   : > { %v3687_v14 = vmax.f32 %v3431_v49, 0.0  ;;  %v3037_v15 = vmul.f32 %v7303_v10, %v7916_v36  ;;  %v3165_v46 = vmul.f32 %v7303_v10, %v7918_v56  ;;  %v3560_v61 = vmax.f32 %v3304_v2, 0.0  ;;  %v8046_v57 = vpop.f32.mrb[86].mxu0  ;;  %v8048_v36 = vpop.f32.mrb[86].mxu1 }
 0x25b   : > { %5569 = vst [vmem:[%s7363_s24 + $0x118] sm:$0xff] %v6097_v12  ;;  %5633 = vst [vmem:[%s7363_s24 + $0x318] sm:$0xff] %v6161_v37  ;;  %v3688_v63 = vmax.f32 %v3432_v8, 0.0  ;;  %v3038_v50 = vmul.f32 %v7297_v35, %v7942_v25  ;;  %v3166_v22 = vmul.f32 %v7297_v35, %v7944_v11  ;;  %v4583_v56 = vmul.f32 %v8818_v59, %v3559_v62  ;;  %v8053_v21 = vpop.f32.mrb[87].mxu0  ;;  %v8055_v17 = vpop.f32.mrb[87].mxu1  ;;  %v8819_v25 = vld [vmem:[#allocation28_spill] sm:$0xff] }
 0x25c   : > { %v4711_v51 = vmul.f32 %v4373_v55, %v3687_v14  ;;  %v3305_v3 = vadd.f32 %v7309_v6, %v3037_v15  ;;  %v3433_v20 = vadd.f32 %v7309_v6, %v3165_v46  ;;  %v4584_v45 = vmul.f32 %v8819_v25, %v3560_v61  ;;  %v4383_v4 = vpop.permute.xlu0 %4382 }
 0x25d   : > { %v4712_v11 = vmul.f32 %v4378_v23, %v3688_v63  ;;  %v3306_v31 = vadd.f32 %v7307_v29, %v3038_v50  ;;  %v3434_v42 = vadd.f32 %v7307_v29, %v3166_v22  ;;  %v6098_v58 = vpack.c.bf16 %v4583_v56, %v4582_v19 }
 0x25e   : > { %v6162_v38 = vpack.c.bf16 %v4711_v51, %v4710_v0  ;;  %v3561_v1 = vmax.f32 %v3305_v3, 0.0  ;;  %v3689_v47 = vmax.f32 %v3433_v20, 0.0  ;;  %v3039_v55 = vmul.f32 %v7303_v10, %v7949_v13  ;;  %v8820_v0 = vld [vmem:[#allocation31_spill] sm:$0xff] }
 0x25f   : > { %v3562_v40 = vmax.f32 %v3306_v31, 0.0  ;;  %v3690_v48 = vmax.f32 %v3434_v42, 0.0  ;;  %v3167_v18 = vmul.f32 %v7303_v10, %v7951_v30  ;;  %5570 = vst [vmem:[%s7363_s24 + $0x120] sm:$0xff] %v6098_v58  ;;  %v3040_v59 = vmul.f32 %v7297_v35, %v7956_v28  ;;  %v8821_v42 = vld [vmem:[#allocation30_spill] sm:$0xff] }
 0x260   : > { %5634 = vst [vmem:[%s7363_s24 + $0x320] sm:$0xff] %v6162_v38  ;;  %v4585_v7 = vmul.f32 %v8819_v25, %v3561_v1  ;;  %v4713_v33 = vmul.f32 %v4378_v23, %v3689_v47  ;;  %v3168_v19 = vmul.f32 %v7297_v35, %v7958_v52  ;;  %v3307_v13 = vadd.f32 %v7309_v6, %v3039_v55  ;;  %v8074_v12 = vpop.f32.mrb[88].mxu0  ;;  %v8076_v37 = vpop.f32.mrb[88].mxu1 }
 0x261   : > { %v4586_v5 = vmul.f32 %v8820_v0, %v3562_v40  ;;  %v4714_v49 = vmul.f32 %v4383_v4, %v3690_v48  ;;  %v3435_v30 = vadd.f32 %v7309_v6, %v3167_v18  ;;  %v3308_v28 = vadd.f32 %v7307_v29, %v3040_v59  ;;  %v8080_v52 = vpop.f32.mrb[89].mxu0  ;;  %v8082_v62 = vpop.f32.mrb[89].mxu1 }
 0x262   : > { %v6099_v23 = vpack.c.bf16 %v4585_v7, %v4584_v45  ;;  %v6163_v2 = vpack.c.bf16 %v4713_v33, %v4712_v11  ;;  %v3436_v8 = vadd.f32 %v7307_v29, %v3168_v19  ;;  %v3563_v14 = vmax.f32 %v3307_v13, 0.0  ;;  %v8088_v63 = vpop.f32.mrb[90].mxu0  ;;  %v8090_v50 = vpop.f32.mrb[90].mxu1 }
 0x263   : > { %v3691_v15 = vmax.f32 %v3435_v30, 0.0  ;;  %v3041_v46 = vmul.f32 %v7303_v10, %v7960_v60  ;;  %v3169_v61 = vmul.f32 %v7303_v10, %v7962_v32  ;;  %v3564_v22 = vmax.f32 %v3308_v28, 0.0  ;;  %v8098_v20 = vpop.f32.mrb[91].mxu0  ;;  %v8100_v60 = vpop.f32.mrb[91].mxu1  ;;  %v8822_v30 = vld [vmem:[#allocation33_spill] sm:$0xff] }
 0x264   : > { %5571 = vst [vmem:[%s7363_s24 + $0x128] sm:$0xff] %v6099_v23  ;;  %5635 = vst [vmem:[%s7363_s24 + $0x328] sm:$0xff] %v6163_v2  ;;  %v3692_v56 = vmax.f32 %v3436_v8, 0.0  ;;  %v3042_v51 = vmul.f32 %v7297_v35, %v7984_v16  ;;  %v3170_v3 = vmul.f32 %v7297_v35, %v7986_v43  ;;  %v4388_v25 = vpop.permute.xlu1 %4387  ;;  %v4587_v32 = vmul.f32 %v8820_v0, %v3563_v14  ;;  %v4393_v55 = vpop.permute.xlu0 %4392 }
 0x265   : > { %v4715_v45 = vmul.f32 %v4383_v4, %v3691_v15  ;;  %v3309_v11 = vadd.f32 %v7309_v6, %v3041_v46  ;;  %v3437_v31 = vadd.f32 %v7309_v6, %v3169_v61  ;;  %v4588_v58 = vmul.f32 %v8821_v42, %v3564_v22 }
 0x266   : > { %v4716_v16 = vmul.f32 %v4388_v25, %v3692_v56  ;;  %v3310_v38 = vadd.f32 %v7307_v29, %v3042_v51  ;;  %v3438_v43 = vadd.f32 %v7307_v29, %v3170_v3  ;;  %v6100_v1 = vpack.c.bf16 %v4587_v32, %v4586_v5 }
 0x267   : > { %v6164_v47 = vpack.c.bf16 %v4715_v45, %v4714_v49  ;;  %v3565_v40 = vmax.f32 %v3309_v11, 0.0  ;;  %v3693_v48 = vmax.f32 %v3437_v31, 0.0  ;;  %v3043_v7 = vmul.f32 %v7303_v10, %v7994_v54 }
 0x268   : > { %v3566_v18 = vmax.f32 %v3310_v38, 0.0  ;;  %v3694_v4 = vmax.f32 %v3438_v43, 0.0  ;;  %v3171_v33 = vmul.f32 %v7303_v10, %v7996_v9  ;;  %5572 = vst [vmem:[%s7363_s24 + $0x130] sm:$0xff] %v6100_v1  ;;  %v3044_v0 = vmul.f32 %v7297_v35, %v8001_v53  ;;  %v8119_v49 = vpop.f32.mrb[92].mxu0  ;;  %v8121_v13 = vpop.f32.mrb[92].mxu1  ;;  %v8823_v43 = vld [vmem:[#allocation32_spill] sm:$0xff] }
 0x269   : > { %5636 = vst [vmem:[%s7363_s24 + $0x330] sm:$0xff] %v6164_v47  ;;  %v4589_v59 = vmul.f32 %v8821_v42, %v3565_v40  ;;  %v4717_v19 = vmul.f32 %v4388_v25, %v3693_v48  ;;  %v3172_v5 = vmul.f32 %v7297_v35, %v8003_v26  ;;  %v3311_v9 = vadd.f32 %v7309_v6, %v3043_v7  ;;  %v8126_v28 = vpop.f32.mrb[93].mxu0  ;;  %v8128_v8 = vpop.f32.mrb[93].mxu1 }
 0x26a   : > { %v4590_v54 = vmul.f32 %v8822_v30, %v3566_v18  ;;  %v4718_v23 = vmul.f32 %v4393_v55, %v3694_v4  ;;  %v3439_v2 = vadd.f32 %v7309_v6, %v3171_v33  ;;  %v3312_v26 = vadd.f32 %v7307_v29, %v3044_v0  ;;  %v8132_v46 = vpop.f32.mrb[94].mxu0  ;;  %v8134_v61 = vpop.f32.mrb[94].mxu1 }
 0x26b   : > { %v6101_v53 = vpack.c.bf16 %v4589_v59, %v4588_v58  ;;  %v6165_v14 = vpack.c.bf16 %v4717_v19, %v4716_v16  ;;  %v3440_v15 = vadd.f32 %v7307_v29, %v3172_v5  ;;  %v3567_v22 = vmax.f32 %v3311_v9, 0.0  ;;  %v8140_v25 = vpop.f32.mrb[95].mxu0  ;;  %v8142_v32 = vpop.f32.mrb[95].mxu1 }
 0x26c   : > { %v3695_v56 = vmax.f32 %v3439_v2, 0.0  ;;  %v3045_v51 = vmul.f32 %v7303_v10, %v8008_v34  ;;  %v3173_v3 = vmul.f32 %v7303_v10, %v8010_v39  ;;  %v3568_v45 = vmax.f32 %v3312_v26, 0.0  ;;  %v4398_v58 = vpop.permute.xlu1 %4397  ;;  %v4403_v48 = vpop.permute.xlu0 %4402 }
 0x26d   : > { %5573 = vst [vmem:[%s7363_s24 + $0x138] sm:$0xff] %v6101_v53  ;;  %5637 = vst [vmem:[%s7363_s24 + $0x338] sm:$0xff] %v6165_v14  ;;  %v3696_v11 = vmax.f32 %v3440_v15, 0.0  ;;  %v3046_v31 = vmul.f32 %v7297_v35, %v8028_v41  ;;  %v3174_v42 = vmul.f32 %v7297_v35, %v8030_v44  ;;  %v4591_v34 = vmul.f32 %v8822_v30, %v3567_v22 }
 0x26e   : > { %v4719_v16 = vmul.f32 %v4393_v55, %v3695_v56  ;;  %v3313_v39 = vadd.f32 %v7309_v6, %v3045_v51  ;;  %v3441_v38 = vadd.f32 %v7309_v6, %v3173_v3  ;;  %v4592_v1 = vmul.f32 %v8823_v43, %v3568_v45 }
 0x26f   : > { %v4720_v47 = vmul.f32 %v4398_v58, %v3696_v11  ;;  %v3314_v40 = vadd.f32 %v7307_v29, %v3046_v31  ;;  %v3442_v41 = vadd.f32 %v7307_v29, %v3174_v42  ;;  %v6102_v18 = vpack.c.bf16 %v4591_v34, %v4590_v54 }
 0x270   : > { %v6166_v44 = vpack.c.bf16 %v4719_v16, %v4718_v23  ;;  %v3569_v4 = vmax.f32 %v3313_v39, 0.0  ;;  %v3697_v7 = vmax.f32 %v3441_v38, 0.0  ;;  %v3047_v59 = vmul.f32 %v7303_v10, %v8036_v27  ;;  %v8160_v0 = vpop.f32.mrb[96].mxu0  ;;  %v8162_v5 = vpop.f32.mrb[96].mxu1 }
 0x271   : > { %v3570_v33 = vmax.f32 %v3314_v40, 0.0  ;;  %v3698_v55 = vmax.f32 %v3442_v41, 0.0  ;;  %v3175_v19 = vmul.f32 %v7303_v10, %v8038_v24  ;;  %5574 = vst [vmem:[%s7363_s24 + $0x140] sm:$0xff] %v6102_v18  ;;  %v3048_v23 = vmul.f32 %v7297_v35, %v8046_v57  ;;  %v8171_v2 = vpop.f32.mrb[97].mxu0  ;;  %v8173_v27 = vpop.f32.mrb[97].mxu1  ;;  %v8824_v24 = vld [vmem:[#allocation35_spill] sm:$0xff] }
 0x272   : > { %5638 = vst [vmem:[%s7363_s24 + $0x340] sm:$0xff] %v6166_v44  ;;  %v4593_v30 = vmul.f32 %v8823_v43, %v3569_v4  ;;  %v4721_v54 = vmul.f32 %v4398_v58, %v3697_v7  ;;  %v3176_v9 = vmul.f32 %v7297_v35, %v8048_v36  ;;  %v3315_v26 = vadd.f32 %v7309_v6, %v3047_v59  ;;  %v8178_v22 = vpop.f32.mrb[98].mxu0  ;;  %v8180_v56 = vpop.f32.mrb[98].mxu1 }
 0x273   : > { %v4594_v53 = vmul.f32 %v8824_v24, %v3570_v33  ;;  %v4722_v14 = vmul.f32 %v4403_v48, %v3698_v55  ;;  %v3443_v15 = vadd.f32 %v7309_v6, %v3175_v19  ;;  %v3316_v36 = vadd.f32 %v7307_v29, %v3048_v23  ;;  %v8184_v45 = vpop.f32.mrb[99].mxu0  ;;  %v8186_v11 = vpop.f32.mrb[99].mxu1 }
 0x274   : > { %v6103_v57 = vpack.c.bf16 %v4593_v30, %v4592_v1  ;;  %v6167_v51 = vpack.c.bf16 %v4721_v54, %v4720_v47  ;;  %v3444_v3 = vadd.f32 %v7307_v29, %v3176_v9  ;;  %v3571_v31 = vmax.f32 %v3315_v26, 0.0  ;;  %v4408_v1 = vpop.permute.xlu1 %4407  ;;  %v4413_v18 = vpop.permute.xlu0 %4412 }
 0x275   : > { %v3699_v42 = vmax.f32 %v3443_v15, 0.0  ;;  %v3049_v58 = vmul.f32 %v7303_v10, %v8053_v21  ;;  %v3177_v34 = vmul.f32 %v7303_v10, %v8055_v17  ;;  %v3572_v16 = vmax.f32 %v3316_v36, 0.0  ;;  %v8825_v17 = vld [vmem:[#allocation34_spill] sm:$0xff] }
 0x276   : > { %5575 = vst [vmem:[%s7363_s24 + $0x148] sm:$0xff] %v6103_v57  ;;  %5639 = vst [vmem:[%s7363_s24 + $0x348] sm:$0xff] %v6167_v51  ;;  %v3700_v39 = vmax.f32 %v3444_v3, 0.0  ;;  %v3050_v38 = vmul.f32 %v7297_v35, %v8074_v12  ;;  %v3178_v43 = vmul.f32 %v7297_v35, %v8076_v37  ;;  %v4595_v47 = vmul.f32 %v8824_v24, %v3571_v31 }
 0x277   : > { %v4723_v40 = vmul.f32 %v4403_v48, %v3699_v42  ;;  %v3317_v41 = vadd.f32 %v7309_v6, %v3049_v58  ;;  %v3445_v21 = vadd.f32 %v7309_v6, %v3177_v34  ;;  %v4596_v44 = vmul.f32 %v8825_v17, %v3572_v16 }
 0x278   : > { %v4724_v4 = vmul.f32 %v4408_v1, %v3700_v39  ;;  %v3318_v7 = vadd.f32 %v7307_v29, %v3050_v38  ;;  %v3446_v12 = vadd.f32 %v7307_v29, %v3178_v43  ;;  %v6104_v33 = vpack.c.bf16 %v4595_v47, %v4594_v53  ;;  %v8204_v19 = vpop.f32.mrb[100].mxu0  ;;  %v8206_v48 = vpop.f32.mrb[100].mxu1 }
 0x279   : > { %v6168_v37 = vpack.c.bf16 %v4723_v40, %v4722_v14  ;;  %v3573_v55 = vmax.f32 %v3317_v41, 0.0  ;;  %v3701_v59 = vmax.f32 %v3445_v21, 0.0  ;;  %v3051_v23 = vmul.f32 %v7303_v10, %v8080_v52  ;;  %v8212_v24 = vpop.f32.mrb[101].mxu0  ;;  %v8214_v26 = vpop.f32.mrb[101].mxu1 }
 0x27a   : > { %v3574_v30 = vmax.f32 %v3318_v7, 0.0  ;;  %v3702_v54 = vmax.f32 %v3446_v12, 0.0  ;;  %v3179_v9 = vmul.f32 %v7303_v10, %v8082_v62  ;;  %5576 = vst [vmem:[%s7363_s24 + $0x150] sm:$0xff] %v6104_v33  ;;  %v3052_v15 = vmul.f32 %v7297_v35, %v8088_v63  ;;  %v8223_v51 = vpop.f32.mrb[102].mxu0  ;;  %v8225_v52 = vpop.f32.mrb[102].mxu1  ;;  %v8826_v62 = vld [vmem:[#allocation37_spill] sm:$0xff] }
 0x27b   : > { %5640 = vst [vmem:[%s7363_s24 + $0x350] sm:$0xff] %v6168_v37  ;;  %v4597_v53 = vmul.f32 %v8825_v17, %v3573_v55  ;;  %v4725_v14 = vmul.f32 %v4408_v1, %v3701_v59  ;;  %v3180_v57 = vmul.f32 %v7297_v35, %v8090_v50  ;;  %v3319_v31 = vadd.f32 %v7309_v6, %v3051_v23  ;;  %v8230_v58 = vpop.f32.mrb[103].mxu0  ;;  %v8232_v34 = vpop.f32.mrb[103].mxu1 }
 0x27c   : > { %v4598_v36 = vmul.f32 %v8826_v62, %v3574_v30  ;;  %v4726_v3 = vmul.f32 %v4413_v18, %v3702_v54  ;;  %v3447_v42 = vadd.f32 %v7309_v6, %v3179_v9  ;;  %v3320_v50 = vadd.f32 %v7307_v29, %v3052_v15 }
 0x27d   : > { %v6105_v63 = vpack.c.bf16 %v4597_v53, %v4596_v44  ;;  %v6169_v16 = vpack.c.bf16 %v4725_v14, %v4724_v4  ;;  %v3448_v39 = vadd.f32 %v7307_v29, %v3180_v57  ;;  %v3575_v38 = vmax.f32 %v3319_v31, 0.0  ;;  %v4418_v44 = vpop.permute.xlu1 %4417  ;;  %v4423_v4 = vpop.permute.xlu0 %4422 }
 0x27e   : > { %v3703_v43 = vmax.f32 %v3447_v42, 0.0  ;;  %v3053_v1 = vmul.f32 %v7303_v10, %v8098_v20  ;;  %v3181_v47 = vmul.f32 %v7303_v10, %v8100_v60  ;;  %v3576_v40 = vmax.f32 %v3320_v50, 0.0  ;;  %v8827_v60 = vld [vmem:[#allocation36_spill] sm:$0xff] }
 0x27f   : > { %5577 = vst [vmem:[%s7363_s24 + $0x158] sm:$0xff] %v6105_v63  ;;  %5641 = vst [vmem:[%s7363_s24 + $0x358] sm:$0xff] %v6169_v16  ;;  %v3704_v41 = vmax.f32 %v3448_v39, 0.0  ;;  %v3054_v21 = vmul.f32 %v7297_v35, %v8119_v49  ;;  %v3182_v17 = vmul.f32 %v7297_v35, %v8121_v13  ;;  %v4599_v7 = vmul.f32 %v8826_v62, %v3575_v38  ;;  %v8828_v39 = vld [vmem:[#allocation39_spill] sm:$0xff] }
 0x280   : > { %v4727_v12 = vmul.f32 %v4413_v18, %v3703_v43  ;;  %v3321_v20 = vadd.f32 %v7309_v6, %v3053_v1  ;;  %v3449_v33 = vadd.f32 %v7309_v6, %v3181_v47  ;;  %v4600_v37 = vmul.f32 %v8827_v60, %v3576_v40  ;;  %v8252_v30 = vpop.f32.mrb[104].mxu0  ;;  %v8254_v13 = vpop.f32.mrb[104].mxu1 }
 0x281   : > { %v4728_v55 = vmul.f32 %v4418_v44, %v3704_v41  ;;  %v3322_v59 = vadd.f32 %v7307_v29, %v3054_v21  ;;  %v3450_v49 = vadd.f32 %v7307_v29, %v3182_v17  ;;  %v6106_v54 = vpack.c.bf16 %v4599_v7, %v4598_v36  ;;  %v8256_v53 = vpop.f32.mrb[105].mxu0  ;;  %v8258_v14 = vpop.f32.mrb[105].mxu1 }
 0x282   : > { %v6170_v23 = vpack.c.bf16 %v4727_v12, %v4726_v3  ;;  %v3577_v18 = vmax.f32 %v3321_v20, 0.0  ;;  %v3705_v9 = vmax.f32 %v3449_v33, 0.0  ;;  %v3055_v62 = vmul.f32 %v7303_v10, %v8126_v28  ;;  %v8264_v42 = vpop.f32.mrb[106].mxu0  ;;  %v8266_v63 = vpop.f32.mrb[106].mxu1 }
 0x283   : > { %v3578_v15 = vmax.f32 %v3322_v59, 0.0  ;;  %v3706_v57 = vmax.f32 %v3450_v49, 0.0  ;;  %v3183_v31 = vmul.f32 %v7303_v10, %v8128_v8  ;;  %5578 = vst [vmem:[%s7363_s24 + $0x160] sm:$0xff] %v6106_v54  ;;  %v3056_v16 = vmul.f32 %v7297_v35, %v8132_v46  ;;  %v8275_v28 = vpop.f32.mrb[107].mxu0  ;;  %v8277_v8 = vpop.f32.mrb[107].mxu1 }
 0x284   : > { %5642 = vst [vmem:[%s7363_s24 + $0x360] sm:$0xff] %v6170_v23  ;;  %v4601_v36 = vmul.f32 %v8827_v60, %v3577_v18  ;;  %v4729_v3 = vmul.f32 %v4418_v44, %v3705_v9  ;;  %v3184_v50 = vmul.f32 %v7297_v35, %v8134_v61  ;;  %v3323_v1 = vadd.f32 %v7309_v6, %v3055_v62  ;;  %v4428_v12 = vpop.permute.xlu1 %4427  ;;  %v8829_v23 = vld [vmem:[#allocation38_spill] sm:$0xff] }
 0x285   : > { %v4602_v38 = vmul.f32 %v8828_v39, %v3578_v15  ;;  %v4730_v43 = vmul.f32 %v4423_v4, %v3706_v57  ;;  %v3451_v47 = vadd.f32 %v7309_v6, %v3183_v31  ;;  %v3324_v46 = vadd.f32 %v7307_v29, %v3056_v16 }
 0x286   : > { %v6107_v40 = vpack.c.bf16 %v4601_v36, %v4600_v37  ;;  %v6171_v41 = vpack.c.bf16 %v4729_v3, %v4728_v55  ;;  %v3452_v21 = vadd.f32 %v7307_v29, %v3184_v50  ;;  %v3579_v61 = vmax.f32 %v3323_v1, 0.0 }
 0x287   : > { %v3707_v17 = vmax.f32 %v3451_v47, 0.0  ;;  %v3057_v44 = vmul.f32 %v7303_v10, %v8140_v25  ;;  %v3185_v7 = vmul.f32 %v7303_v10, %v8142_v32  ;;  %v3580_v20 = vmax.f32 %v3324_v46, 0.0 }
 0x288   : > { %5579 = vst [vmem:[%s7363_s24 + $0x168] sm:$0xff] %v6107_v40  ;;  %5643 = vst [vmem:[%s7363_s24 + $0x368] sm:$0xff] %v6171_v41  ;;  %v3708_v33 = vmax.f32 %v3452_v21, 0.0  ;;  %v3058_v60 = vmul.f32 %v7297_v35, %v8160_v0  ;;  %v3186_v37 = vmul.f32 %v7297_v35, %v8162_v5  ;;  %v4603_v55 = vmul.f32 %v8828_v39, %v3579_v61  ;;  %v8297_v54 = vpop.f32.mrb[108].mxu0  ;;  %v8299_v32 = vpop.f32.mrb[108].mxu1  ;;  %v8830_v61 = vld [vmem:[#allocation41_spill] sm:$0xff] }
 0x289   : > { %v4731_v59 = vmul.f32 %v4423_v4, %v3707_v17  ;;  %v3325_v49 = vadd.f32 %v7309_v6, %v3057_v44  ;;  %v3453_v25 = vadd.f32 %v7309_v6, %v3185_v7  ;;  %v4604_v18 = vmul.f32 %v8829_v23, %v3580_v20  ;;  %v8304_v5 = vpop.f32.mrb[109].mxu0  ;;  %v8306_v4 = vpop.f32.mrb[109].mxu1 }
 0x28a   : > { %v4732_v9 = vmul.f32 %v4428_v12, %v3708_v33  ;;  %v3326_v15 = vadd.f32 %v7307_v29, %v3058_v60  ;;  %v3454_v0 = vadd.f32 %v7307_v29, %v3186_v37  ;;  %v6108_v57 = vpack.c.bf16 %v4603_v55, %v4602_v38  ;;  %v8308_v3 = vpop.f32.mrb[110].mxu0  ;;  %v8310_v16 = vpop.f32.mrb[110].mxu1 }
 0x28b   : > { %v6172_v62 = vpack.c.bf16 %v4731_v59, %v4730_v43  ;;  %v3581_v31 = vmax.f32 %v3325_v49, 0.0  ;;  %v3709_v36 = vmax.f32 %v3453_v25, 0.0  ;;  %v3059_v1 = vmul.f32 %v7303_v10, %v8171_v2  ;;  %v8316_v40 = vpop.f32.mrb[111].mxu0  ;;  %v8318_v41 = vpop.f32.mrb[111].mxu1 }
 0x28c   : > { %v3582_v50 = vmax.f32 %v3326_v15, 0.0  ;;  %v3710_v39 = vmax.f32 %v3454_v0, 0.0  ;;  %v3187_v47 = vmul.f32 %v7303_v10, %v8173_v27  ;;  %v4433_v38 = vpop.permute.xlu0 %4432  ;;  %5580 = vst [vmem:[%s7363_s24 + $0x170] sm:$0xff] %v6108_v57  ;;  %v3060_v21 = vmul.f32 %v7297_v35, %v8178_v22  ;;  %v4438_v37 = vpop.permute.xlu1 %4437 }
 0x28d   : > { %5644 = vst [vmem:[%s7363_s24 + $0x370] sm:$0xff] %v6172_v62  ;;  %v4605_v43 = vmul.f32 %v8829_v23, %v3581_v31  ;;  %v4733_v46 = vmul.f32 %v4428_v12, %v3709_v36  ;;  %v3188_v2 = vmul.f32 %v7297_v35, %v8180_v56  ;;  %v3327_v44 = vadd.f32 %v7309_v6, %v3059_v1  ;;  %v8831_v36 = vld [vmem:[#allocation40_spill] sm:$0xff] }
 0x28e   : > { %v4606_v27 = vmul.f32 %v8830_v61, %v3582_v50  ;;  %v4734_v17 = vmul.f32 %v4433_v38, %v3710_v39  ;;  %v3455_v7 = vadd.f32 %v7309_v6, %v3187_v47  ;;  %v3328_v60 = vadd.f32 %v7307_v29, %v3060_v21 }
 0x28f   : > { %v6109_v20 = vpack.c.bf16 %v4605_v43, %v4604_v18  ;;  %v6173_v33 = vpack.c.bf16 %v4733_v46, %v4732_v9  ;;  %v3456_v12 = vadd.f32 %v7307_v29, %v3188_v2  ;;  %v3583_v55 = vmax.f32 %v3327_v44, 0.0 }
 0x290   : > { %v3711_v22 = vmax.f32 %v3455_v7, 0.0  ;;  %v3061_v59 = vmul.f32 %v7303_v10, %v8184_v45  ;;  %v3189_v56 = vmul.f32 %v7303_v10, %v8186_v11  ;;  %v3584_v49 = vmax.f32 %v3328_v60, 0.0  ;;  %v8342_v9 = vpop.f32.mrb[112].mxu0  ;;  %v8344_v15 = vpop.f32.mrb[112].mxu1 }
 0x291   : > { %5581 = vst [vmem:[%s7363_s24 + $0x178] sm:$0xff] %v6109_v20  ;;  %5645 = vst [vmem:[%s7363_s24 + $0x378] sm:$0xff] %v6173_v33  ;;  %v3712_v25 = vmax.f32 %v3456_v12, 0.0  ;;  %v3062_v23 = vmul.f32 %v7297_v35, %v8204_v19  ;;  %v3190_v18 = vmul.f32 %v7297_v35, %v8206_v48  ;;  %v4607_v0 = vmul.f32 %v8830_v61, %v3583_v55  ;;  %v8349_v62 = vpop.f32.mrb[113].mxu0  ;;  %v8351_v31 = vpop.f32.mrb[113].mxu1 }
 0x292   : > { %v4735_v45 = vmul.f32 %v4433_v38, %v3711_v22  ;;  %v3329_v57 = vadd.f32 %v7309_v6, %v3061_v59  ;;  %v3457_v11 = vadd.f32 %v7309_v6, %v3189_v56  ;;  %v4608_v19 = vmul.f32 %v8831_v36, %v3584_v49  ;;  %v8356_v1 = vpop.f32.mrb[114].mxu0  ;;  %v8358_v47 = vpop.f32.mrb[114].mxu1  ;;  %v8832_v22 = vld [vmem:[#allocation43_spill] sm:$0xff] }
 0x293   : > { %v4736_v50 = vmul.f32 %v4438_v37, %v3712_v25  ;;  %v3330_v48 = vadd.f32 %v7307_v29, %v3062_v23  ;;  %v3458_v39 = vadd.f32 %v7307_v29, %v3190_v18  ;;  %v6110_v38 = vpack.c.bf16 %v4607_v0, %v4606_v27  ;;  %v8360_v2 = vpop.f32.mrb[115].mxu0  ;;  %v8362_v61 = vpop.f32.mrb[115].mxu1 }
 0x294   : > { %v6174_v43 = vpack.c.bf16 %v4735_v45, %v4734_v17  ;;  %v3585_v46 = vmax.f32 %v3329_v57, 0.0  ;;  %v3713_v21 = vmax.f32 %v3457_v11, 0.0  ;;  %v3063_v20 = vmul.f32 %v7303_v10, %v8212_v24  ;;  %v4443_v60 = vpop.permute.xlu0 %4442  ;;  %v4448_v49 = vpop.permute.xlu1 %4447 }
 0x295   : > { %v3586_v44 = vmax.f32 %v3330_v48, 0.0  ;;  %v3714_v7 = vmax.f32 %v3458_v39, 0.0  ;;  %v3191_v33 = vmul.f32 %v7303_v10, %v8214_v26  ;;  %5582 = vst [vmem:[%s7363_s24 + $0x180] sm:$0xff] %v6110_v38  ;;  %v3064_v12 = vmul.f32 %v7297_v35, %v8223_v51 }
 0x296   : > { %5646 = vst [vmem:[%s7363_s24 + $0x380] sm:$0xff] %v6174_v43  ;;  %v4609_v27 = vmul.f32 %v8831_v36, %v3585_v46  ;;  %v4737_v17 = vmul.f32 %v4438_v37, %v3713_v21  ;;  %v3192_v55 = vmul.f32 %v7297_v35, %v8225_v52  ;;  %v3331_v56 = vadd.f32 %v7309_v6, %v3063_v20 }
 0x297   : > { %v4610_v59 = vmul.f32 %v8832_v22, %v3586_v44  ;;  %v4738_v24 = vmul.f32 %v4443_v60, %v3714_v7  ;;  %v3459_v26 = vadd.f32 %v7309_v6, %v3191_v33  ;;  %v3332_v37 = vadd.f32 %v7307_v29, %v3064_v12  ;;  %v8833_v7 = vld [vmem:[#allocation42_spill] sm:$0xff] }
 0x298   : > { %v6111_v25 = vpack.c.bf16 %v4609_v27, %v4608_v19  ;;  %v6175_v23 = vpack.c.bf16 %v4737_v17, %v4736_v50  ;;  %v3460_v18 = vadd.f32 %v7307_v29, %v3192_v55  ;;  %v3587_v51 = vmax.f32 %v3331_v56, 0.0 }
 0x299   : > { %v3715_v0 = vmax.f32 %v3459_v26, 0.0  ;;  %v3065_v52 = vmul.f32 %v7303_v10, %v8230_v58  ;;  %v3193_v45 = vmul.f32 %v7303_v10, %v8232_v34  ;;  %v8384_v57 = vpop.f32.mrb[116].mxu0  ;;  %v8386_v11 = vpop.f32.mrb[116].mxu1  ;;  %v3588_v36 = vmax.f32 %v3332_v37, 0.0 }
 0x29a   : > { %5583 = vst [vmem:[%s7363_s24 + $0x188] sm:$0xff] %v6111_v25  ;;  %5647 = vst [vmem:[%s7363_s24 + $0x388] sm:$0xff] %v6175_v23  ;;  %v3716_v19 = vmax.f32 %v3460_v18, 0.0  ;;  %v3066_v50 = vmul.f32 %v7297_v35, %v8252_v30  ;;  %v3194_v48 = vmul.f32 %v7297_v35, %v8254_v13  ;;  %v8394_v39 = vpop.f32.mrb[117].mxu0  ;;  %v8396_v58 = vpop.f32.mrb[117].mxu1  ;;  %v4611_v34 = vmul.f32 %v8832_v22, %v3587_v51 }
 0x29b   : > { %v4739_v38 = vmul.f32 %v4443_v60, %v3715_v0  ;;  %v3333_v43 = vadd.f32 %v7309_v6, %v3065_v52  ;;  %v3461_v46 = vadd.f32 %v7309_v6, %v3193_v45  ;;  %v8401_v21 = vpop.f32.mrb[118].mxu0  ;;  %v8403_v44 = vpop.f32.mrb[118].mxu1  ;;  %v4612_v30 = vmul.f32 %v8833_v7, %v3588_v36  ;;  %v8834_v52 = vld [vmem:[#allocation45_spill] sm:$0xff] }
 0x29c   : > { %v4740_v13 = vmul.f32 %v4448_v49, %v3716_v19  ;;  %v3334_v20 = vadd.f32 %v7307_v29, %v3066_v50  ;;  %v3462_v33 = vadd.f32 %v7307_v29, %v3194_v48  ;;  %v8408_v27 = vpop.f32.mrb[119].mxu0  ;;  %v8410_v60 = vpop.f32.mrb[119].mxu1  ;;  %v6112_v17 = vpack.c.bf16 %v4611_v34, %v4610_v59 }
 0x29d   : > { %v6176_v12 = vpack.c.bf16 %v4739_v38, %v4738_v24  ;;  %v3589_v55 = vmax.f32 %v3333_v43, 0.0  ;;  %v3717_v22 = vmax.f32 %v3461_v46, 0.0  ;;  %v3067_v25 = vmul.f32 %v7303_v10, %v8256_v53  ;;  %v4453_v37 = vpop.permute.xlu0 %4452  ;;  %v4458_v0 = vpop.permute.xlu1 %4457 }
 0x29e   : > { %v3590_v56 = vmax.f32 %v3334_v20, 0.0  ;;  %v3718_v26 = vmax.f32 %v3462_v33, 0.0  ;;  %v3195_v23 = vmul.f32 %v7303_v10, %v8258_v14  ;;  %5584 = vst [vmem:[%s7363_s24 + $0x190] sm:$0xff] %v6112_v17  ;;  %v3068_v59 = vmul.f32 %v7297_v35, %v8264_v42 }
 0x29f   : > { %5648 = vst [vmem:[%s7363_s24 + $0x390] sm:$0xff] %v6176_v12  ;;  %v4613_v18 = vmul.f32 %v8833_v7, %v3589_v55  ;;  %v4741_v51 = vmul.f32 %v4448_v49, %v3717_v22  ;;  %v3196_v24 = vmul.f32 %v7297_v35, %v8266_v63  ;;  %v3335_v14 = vadd.f32 %v7309_v6, %v3067_v25 }
 0x2a0   : > { %v4614_v45 = vmul.f32 %v8834_v52, %v3590_v56  ;;  %v4742_v53 = vmul.f32 %v4453_v37, %v3718_v26  ;;  %v3463_v36 = vadd.f32 %v7309_v6, %v3195_v23  ;;  %v3336_v49 = vadd.f32 %v7307_v29, %v3068_v59 }
 0x2a1   : > { %v6113_v19 = vpack.c.bf16 %v4613_v18, %v4612_v30  ;;  %v6177_v50 = vpack.c.bf16 %v4741_v51, %v4740_v13  ;;  %v3464_v48 = vadd.f32 %v7307_v29, %v3196_v24  ;;  %v8428_v42 = vpop.f32.mrb[120].mxu0  ;;  %v8430_v34 = vpop.f32.mrb[120].mxu1  ;;  %v3591_v63 = vmax.f32 %v3335_v14, 0.0 }
 0x2a2   : > { %v3719_v38 = vmax.f32 %v3463_v36, 0.0  ;;  %v3069_v43 = vmul.f32 %v7303_v10, %v8275_v28  ;;  %v3197_v46 = vmul.f32 %v7303_v10, %v8277_v8  ;;  %v8436_v7 = vpop.f32.mrb[121].mxu0  ;;  %v8438_v30 = vpop.f32.mrb[121].mxu1  ;;  %v3592_v13 = vmax.f32 %v3336_v49, 0.0 }
 0x2a3   : > { %5585 = vst [vmem:[%s7363_s24 + $0x198] sm:$0xff] %v6113_v19  ;;  %5649 = vst [vmem:[%s7363_s24 + $0x398] sm:$0xff] %v6177_v50  ;;  %v3720_v20 = vmax.f32 %v3464_v48, 0.0  ;;  %v3070_v33 = vmul.f32 %v7297_v35, %v8297_v54  ;;  %v3198_v17 = vmul.f32 %v7297_v35, %v8299_v32  ;;  %v8446_v12 = vpop.f32.mrb[122].mxu0  ;;  %v8448_v28 = vpop.f32.mrb[122].mxu1  ;;  %v4615_v8 = vmul.f32 %v8834_v52, %v3591_v63  ;;  %v8835_v54 = vld [vmem:[#allocation44_spill] sm:$0xff] }
 0x2a4   : > { %v4743_v55 = vmul.f32 %v4453_v37, %v3719_v38  ;;  %v3337_v22 = vadd.f32 %v7309_v6, %v3069_v43  ;;  %v3465_v56 = vadd.f32 %v7309_v6, %v3197_v46  ;;  %v8453_v26 = vpop.f32.mrb[123].mxu0  ;;  %v8455_v25 = vpop.f32.mrb[123].mxu1  ;;  %v4616_v23 = vmul.f32 %v8835_v54, %v3592_v13  ;;  %v8836_v38 = vld [vmem:[#allocation47_spill] sm:$0xff] }
 0x2a5   : > { %v4744_v32 = vmul.f32 %v4458_v0, %v3720_v20  ;;  %v3338_v18 = vadd.f32 %v7307_v29, %v3070_v33  ;;  %v3466_v51 = vadd.f32 %v7307_v29, %v3198_v17  ;;  %v6114_v59 = vpack.c.bf16 %v4615_v8, %v4614_v45  ;;  %v4463_v49 = vpop.permute.xlu0 %4462 }
 0x2a6   : > { %v6178_v24 = vpack.c.bf16 %v4743_v55, %v4742_v53  ;;  %v3593_v37 = vmax.f32 %v3337_v22, 0.0  ;;  %v3721_v52 = vmax.f32 %v3465_v56, 0.0  ;;  %v3071_v19 = vmul.f32 %v7303_v10, %v8304_v5 }
 0x2a7   : > { %v3594_v14 = vmax.f32 %v3338_v18, 0.0  ;;  %v3722_v36 = vmax.f32 %v3466_v51, 0.0  ;;  %v3199_v50 = vmul.f32 %v7303_v10, %v8306_v4  ;;  %5586 = vst [vmem:[%s7363_s24 + $0x1a0] sm:$0xff] %v6114_v59  ;;  %v3072_v45 = vmul.f32 %v7297_v35, %v8308_v3 }
 0x2a8   : > { %5650 = vst [vmem:[%s7363_s24 + $0x3a0] sm:$0xff] %v6178_v24  ;;  %v4617_v48 = vmul.f32 %v8835_v54, %v3593_v37  ;;  %v4745_v63 = vmul.f32 %v4458_v0, %v3721_v52  ;;  %v3200_v53 = vmul.f32 %v7297_v35, %v8310_v16  ;;  %v3339_v5 = vadd.f32 %v7309_v6, %v3071_v19  ;;  %v4468_v37 = vpop.permute.xlu1 %4467 }
 0x2a9   : > { %v4618_v43 = vmul.f32 %v8836_v38, %v3594_v14  ;;  %v4746_v46 = vmul.f32 %v4463_v49, %v3722_v36  ;;  %v3467_v4 = vadd.f32 %v7309_v6, %v3199_v50  ;;  %v8474_v13 = vpop.f32.mrb[124].mxu0  ;;  %v3340_v0 = vadd.f32 %v7307_v29, %v3072_v45 }
 0x2aa   : > { %v6115_v20 = vpack.c.bf16 %v4617_v48, %v4616_v23  ;;  %v6179_v33 = vpack.c.bf16 %v4745_v63, %v4744_v32  ;;  %v3468_v3 = vadd.f32 %v7307_v29, %v3200_v53  ;;  %v8478_v17 = vpop.f32.mrb[124].mxu1  ;;  %v8480_v16 = vpop.f32.mrb[125].mxu0  ;;  %v3595_v8 = vmax.f32 %v3339_v5, 0.0 }
 0x2ab   : > { %v3723_v55 = vmax.f32 %v3467_v4, 0.0  ;;  %v3073_v22 = vmul.f32 %v7303_v10, %v8316_v40  ;;  %v3201_v56 = vmul.f32 %v7303_v10, %v8318_v41  ;;  %v8486_v54 = vpop.f32.mrb[125].mxu1  ;;  %v8488_v23 = vpop.f32.mrb[126].mxu0  ;;  %v3596_v32 = vmax.f32 %v3340_v0, 0.0 }
 0x2ac   : > { %5587 = vst [vmem:[%s7363_s24 + $0x1a8] sm:$0xff] %v6115_v20  ;;  %5651 = vst [vmem:[%s7363_s24 + $0x3a8] sm:$0xff] %v6179_v33  ;;  %v3724_v18 = vmax.f32 %v3468_v3, 0.0  ;;  %v3074_v51 = vmul.f32 %v7297_v35, %v8342_v9  ;;  %v3202_v59 = vmul.f32 %v7297_v35, %v8344_v15  ;;  %v8496_v24 = vpop.f32.mrb[126].mxu1  ;;  %v8498_v40 = vpop.f32.mrb[127].mxu0  ;;  %v4619_v41 = vmul.f32 %v8836_v38, %v3595_v8  ;;  %v8837_v9 = vld [vmem:[#allocation46_spill] sm:$0xff] }
 0x2ad   : > { %v4747_v52 = vmul.f32 %v4463_v49, %v3723_v55  ;;  %v3341_v14 = vadd.f32 %v7309_v6, %v3073_v22  ;;  %v3469_v36 = vadd.f32 %v7309_v6, %v3201_v56  ;;  %v8503_v19 = vpop.f32.mrb[127].mxu1  ;;  %v4620_v50 = vmul.f32 %v8837_v9, %v3596_v32  ;;  %v4473_v0 = vpop.permute.xlu0 %4472  ;;  %v8838_v55 = vld [vmem:[#allocation49_spill] sm:$0xff] }
 0x2ae   : > { %v4748_v48 = vmul.f32 %v4468_v37, %v3724_v18  ;;  %v3342_v15 = vadd.f32 %v7307_v29, %v3074_v51  ;;  %v3470_v63 = vadd.f32 %v7307_v29, %v3202_v59  ;;  %v6116_v45 = vpack.c.bf16 %v4619_v41, %v4618_v43 }
 0x2af   : > { %v6180_v53 = vpack.c.bf16 %v4747_v52, %v4746_v46  ;;  %v3597_v5 = vmax.f32 %v3341_v14, 0.0  ;;  %v3725_v38 = vmax.f32 %v3469_v36, 0.0  ;;  %v3075_v20 = vmul.f32 %v7303_v10, %v8349_v62 }
 0x2b0   : > { %v3598_v49 = vmax.f32 %v3342_v15, 0.0  ;;  %v3726_v4 = vmax.f32 %v3470_v63, 0.0  ;;  %v3203_v33 = vmul.f32 %v7303_v10, %v8351_v31  ;;  %5588 = vst [vmem:[%s7363_s24 + $0x1b0] sm:$0xff] %v6116_v45  ;;  %v3076_v43 = vmul.f32 %v7297_v35, %v8356_v1  ;;  %v8839_v63 = vld [vmem:[#allocation48_spill] sm:$0xff] }
 0x2b1   : > { %5652 = vst [vmem:[%s7363_s24 + $0x3b0] sm:$0xff] %v6180_v53  ;;  %v4621_v3 = vmul.f32 %v8837_v9, %v3597_v5  ;;  %v4749_v8 = vmul.f32 %v4468_v37, %v3725_v38  ;;  %v3204_v46 = vmul.f32 %v7297_v35, %v8358_v47  ;;  %v3343_v56 = vadd.f32 %v7309_v6, %v3075_v20 }
 0x2b2   : > { %v4622_v22 = vmul.f32 %v8838_v55, %v3598_v49  ;;  %v4750_v62 = vmul.f32 %v4473_v0, %v3726_v4  ;;  %v3471_v31 = vadd.f32 %v7309_v6, %v3203_v33  ;;  %v3344_v51 = vadd.f32 %v7307_v29, %v3076_v43 }
 0x2b3   : > { %v6117_v32 = vpack.c.bf16 %v4621_v3, %v4620_v50  ;;  %v6181_v18 = vpack.c.bf16 %v4749_v8, %v4748_v48  ;;  %v3472_v59 = vadd.f32 %v7307_v29, %v3204_v46  ;;  %v3599_v37 = vmax.f32 %v3343_v56, 0.0  ;;  %v4478_v50 = vpop.permute.xlu1 %4477  ;;  %v4483_v8 = vpop.permute.xlu0 %4482 }
 0x2b4   : > { %v3727_v41 = vmax.f32 %v3471_v31, 0.0  ;;  %v3077_v1 = vmul.f32 %v7303_v10, %v8360_v2  ;;  %v3205_v47 = vmul.f32 %v7303_v10, %v8362_v61  ;;  %v3600_v52 = vmax.f32 %v3344_v51, 0.0 }
 0x2b5   : > { %5589 = vst [vmem:[%s7363_s24 + $0x1b8] sm:$0xff] %v6117_v32  ;;  %5653 = vst [vmem:[%s7363_s24 + $0x3b8] sm:$0xff] %v6181_v18  ;;  %v3728_v14 = vmax.f32 %v3472_v59, 0.0  ;;  %v3078_v36 = vmul.f32 %v7297_v35, %v8384_v57  ;;  %v3206_v9 = vmul.f32 %v7297_v35, %v8386_v11  ;;  %v4623_v48 = vmul.f32 %v8838_v55, %v3599_v37 }
 0x2b6   : > { %v4751_v15 = vmul.f32 %v4473_v0, %v3727_v41  ;;  %v3345_v2 = vadd.f32 %v7309_v6, %v3077_v1  ;;  %v3473_v61 = vadd.f32 %v7309_v6, %v3205_v47  ;;  %v4624_v45 = vmul.f32 %v8839_v63, %v3600_v52 }
 0x2b7   : > { %v4752_v53 = vmul.f32 %v4478_v50, %v3728_v14  ;;  %v3346_v5 = vadd.f32 %v7307_v29, %v3078_v36  ;;  %v3474_v57 = vadd.f32 %v7307_v29, %v3206_v9  ;;  %v6118_v38 = vpack.c.bf16 %v4623_v48, %v4622_v22  ;;  %v4488_v36 = vpop.permute.xlu1 %4487  ;;  %v8841_v48 = vld [vmem:[#allocation50_spill] sm:$0xff] }
 0x2b8   : > { %v6182_v49 = vpack.c.bf16 %v4751_v15, %v4750_v62  ;;  %v3601_v11 = vmax.f32 %v3345_v2, 0.0  ;;  %v3729_v4 = vmax.f32 %v3473_v61, 0.0  ;;  %v3079_v0 = vmul.f32 %v7303_v10, %v8394_v39  ;;  %v8840_v62 = vld [vmem:[#allocation51_spill] sm:$0xff] }
 0x2b9   : > { %v3602_v20 = vmax.f32 %v3346_v5, 0.0  ;;  %v3730_v33 = vmax.f32 %v3474_v57, 0.0  ;;  %v3207_v3 = vmul.f32 %v7303_v10, %v8396_v58  ;;  %5590 = vst [vmem:[%s7363_s24 + $0x1c0] sm:$0xff] %v6118_v38  ;;  %v3080_v55 = vmul.f32 %v7297_v35, %v8401_v21 }
 0x2ba   : > { %5654 = vst [vmem:[%s7363_s24 + $0x3c0] sm:$0xff] %v6182_v49  ;;  %v4625_v43 = vmul.f32 %v8839_v63, %v3601_v11  ;;  %v4753_v46 = vmul.f32 %v4478_v50, %v3729_v4  ;;  %v3208_v22 = vmul.f32 %v7297_v35, %v8403_v44  ;;  %v3347_v31 = vadd.f32 %v7309_v6, %v3079_v0  ;;  %v4493_v11 = vpop.permute.xlu0 %4492 }
 0x2bb   : > { %v4626_v56 = vmul.f32 %v8840_v62, %v3602_v20  ;;  %v4754_v39 = vmul.f32 %v4483_v8, %v3730_v33  ;;  %v3475_v58 = vadd.f32 %v7309_v6, %v3207_v3  ;;  %v3348_v51 = vadd.f32 %v7307_v29, %v3080_v55  ;;  %v8842_v3 = vld [vmem:[#allocation53_spill] sm:$0xff] }
 0x2bc   : > { %v6119_v32 = vpack.c.bf16 %v4625_v43, %v4624_v45  ;;  %v6183_v18 = vpack.c.bf16 %v4753_v46, %v4752_v53  ;;  %v3476_v59 = vadd.f32 %v7307_v29, %v3208_v22  ;;  %v3603_v37 = vmax.f32 %v3347_v31, 0.0 }
 0x2bd   : > { %v3731_v41 = vmax.f32 %v3475_v58, 0.0  ;;  %v3081_v21 = vmul.f32 %v7303_v10, %v8408_v27  ;;  %v3209_v44 = vmul.f32 %v7303_v10, %v8410_v60  ;;  %v3604_v1 = vmax.f32 %v3348_v51, 0.0  ;;  %v4498_v51 = vpop.permute.xlu1 %4497 }
 0x2be   : > { %5591 = vst [vmem:[%s7363_s24 + $0x1c8] sm:$0xff] %v6119_v32  ;;  %5655 = vst [vmem:[%s7363_s24 + $0x3c8] sm:$0xff] %v6183_v18  ;;  %v3732_v47 = vmax.f32 %v3476_v59, 0.0  ;;  %v3082_v52 = vmul.f32 %v7297_v35, %v8428_v42  ;;  %v3210_v14 = vmul.f32 %v7297_v35, %v8430_v34  ;;  %v4627_v9 = vmul.f32 %v8840_v62, %v3603_v37 }
 0x2bf   : > { %v4755_v50 = vmul.f32 %v4483_v8, %v3731_v41  ;;  %v3349_v27 = vadd.f32 %v7309_v6, %v3081_v21  ;;  %v3477_v60 = vadd.f32 %v7309_v6, %v3209_v44  ;;  %v4628_v15 = vmul.f32 %v8841_v48, %v3604_v1  ;;  %v8843_v41 = vld [vmem:[#allocation52_spill] sm:$0xff] }
 0x2c0   : > { %v4756_v2 = vmul.f32 %v4488_v36, %v3732_v47  ;;  %v3350_v61 = vadd.f32 %v7307_v29, %v3082_v52  ;;  %v3478_v42 = vadd.f32 %v7307_v29, %v3210_v14  ;;  %v6120_v63 = vpack.c.bf16 %v4627_v9, %v4626_v56 }
 0x2c1   : > { %v6184_v45 = vpack.c.bf16 %v4755_v50, %v4754_v39  ;;  %v3605_v34 = vmax.f32 %v3349_v27, 0.0  ;;  %v3733_v53 = vmax.f32 %v3477_v60, 0.0  ;;  %v3083_v38 = vmul.f32 %v7303_v10, %v8436_v7  ;;  %v4503_v60 = vpop.permute.xlu0 %4502 }
 0x2c2   : > { %v3606_v5 = vmax.f32 %v3350_v61, 0.0  ;;  %v3734_v57 = vmax.f32 %v3478_v42, 0.0  ;;  %v3211_v49 = vmul.f32 %v7303_v10, %v8438_v30  ;;  %5592 = vst [vmem:[%s7363_s24 + $0x1d0] sm:$0xff] %v6120_v63  ;;  %v3084_v33 = vmul.f32 %v7297_v35, %v8446_v12  ;;  %v8844_v42 = vld [vmem:[#allocation55_spill] sm:$0xff] }
 0x2c3   : > { %5656 = vst [vmem:[%s7363_s24 + $0x3d0] sm:$0xff] %v6184_v45  ;;  %v4629_v4 = vmul.f32 %v8841_v48, %v3605_v34  ;;  %v4757_v20 = vmul.f32 %v4488_v36, %v3733_v53  ;;  %v3212_v0 = vmul.f32 %v7297_v35, %v8448_v28  ;;  %v3351_v43 = vadd.f32 %v7309_v6, %v3083_v38 }
 0x2c4   : > { %v4630_v8 = vmul.f32 %v8842_v3, %v3606_v5  ;;  %v4758_v7 = vmul.f32 %v4493_v11, %v3734_v57  ;;  %v3479_v30 = vadd.f32 %v7309_v6, %v3211_v49  ;;  %v3352_v22 = vadd.f32 %v7307_v29, %v3084_v33 }
 0x2c5   : > { %v6121_v46 = vpack.c.bf16 %v4629_v4, %v4628_v15  ;;  %v6185_v55 = vpack.c.bf16 %v4757_v20, %v4756_v2  ;;  %v3480_v62 = vadd.f32 %v7307_v29, %v3212_v0  ;;  %v3607_v56 = vmax.f32 %v3351_v43, 0.0  ;;  %v4508_v4 = vpop.permute.xlu1 %4507 }
 0x2c6   : > { %v3735_v39 = vmax.f32 %v3479_v30, 0.0  ;;  %v3085_v12 = vmul.f32 %v7303_v10, %v8453_v26  ;;  %v3213_v28 = vmul.f32 %v7303_v10, %v8455_v25  ;;  %v3608_v31 = vmax.f32 %v3352_v22, 0.0 }
 0x2c7   : > { %5593 = vst [vmem:[%s7363_s24 + $0x1d8] sm:$0xff] %v6121_v46  ;;  %5657 = vst [vmem:[%s7363_s24 + $0x3d8] sm:$0xff] %v6185_v55  ;;  %v3736_v58 = vmax.f32 %v3480_v62, 0.0  ;;  %v3086_v32 = vmul.f32 %v7297_v35, %v8474_v13  ;;  %v3214_v18 = vmul.f32 %v7297_v35, %v8478_v17  ;;  %v4631_v59 = vmul.f32 %v8842_v3, %v3607_v56 }
 0x2c8   : > { %v4759_v37 = vmul.f32 %v4493_v11, %v3735_v39  ;;  %v3353_v26 = vadd.f32 %v7309_v6, %v3085_v12  ;;  %v3481_v25 = vadd.f32 %v7309_v6, %v3213_v28  ;;  %v4632_v21 = vmul.f32 %v8843_v41, %v3608_v31 }
 0x2c9   : > { %v4760_v44 = vmul.f32 %v4498_v51, %v3736_v58  ;;  %v3354_v1 = vadd.f32 %v7307_v29, %v3086_v32  ;;  %v3482_v13 = vadd.f32 %v7307_v29, %v3214_v18  ;;  %v6122_v47 = vpack.c.bf16 %v4631_v59, %v4630_v8 }
 0x2ca   : > { %v6186_v52 = vpack.c.bf16 %v4759_v37, %v4758_v7  ;;  %v3609_v17 = vmax.f32 %v3353_v26, 0.0  ;;  %v3737_v14 = vmax.f32 %v3481_v25, 0.0  ;;  %v3087_v50 = vmul.f32 %v7303_v10, %v8480_v16 }
 0x2cb   : > { %v3610_v36 = vmax.f32 %v3354_v1, 0.0  ;;  %v3738_v9 = vmax.f32 %v3482_v13, 0.0  ;;  %v3215_v27 = vmul.f32 %v7303_v10, %v8486_v54  ;;  %5594 = vst [vmem:[%s7363_s24 + $0x1e0] sm:$0xff] %v6122_v47  ;;  %v3088_v2 = vmul.f32 %v7297_v35, %v8488_v23 }
 0x2cc   : > { %5658 = vst [vmem:[%s7363_s24 + $0x3e0] sm:$0xff] %v6186_v52  ;;  %v4633_v48 = vmul.f32 %v8843_v41, %v3609_v17  ;;  %v4761_v15 = vmul.f32 %v4498_v51, %v3737_v14  ;;  %v3216_v61 = vmul.f32 %v7297_v35, %v8496_v24  ;;  %v3355_v45 = vadd.f32 %v7309_v6, %v3087_v50 }
 0x2cd   : > { %v4634_v63 = vmul.f32 %v8844_v42, %v3610_v36  ;;  %v4762_v16 = vmul.f32 %v4503_v60, %v3738_v9  ;;  %v3483_v54 = vadd.f32 %v7309_v6, %v3215_v27  ;;  %v3356_v5 = vadd.f32 %v7307_v29, %v3088_v2 }
 0x2ce   : > { %v6123_v34 = vpack.c.bf16 %v4633_v48, %v4632_v21  ;;  %v6187_v53 = vpack.c.bf16 %v4761_v15, %v4760_v44  ;;  %v3484_v57 = vadd.f32 %v7307_v29, %v3216_v61  ;;  %v3611_v38 = vmax.f32 %v3355_v45, 0.0 }
 0x2cf   : > { %v3739_v49 = vmax.f32 %v3483_v54, 0.0  ;;  %v3089_v23 = vmul.f32 %v7303_v10, %v8498_v40  ;;  %v3217_v35 = vmul.f32 %v7303_v10, %v8503_v19  ;;  %v3612_v24 = vmax.f32 %v3356_v5, 0.0  ;;  %v8845_v40 = vld [vmem:[#allocation54_spill] sm:$0xff] }
 0x2d0   : > { %5595 = vst [vmem:[%s7363_s24 + $0x1e8] sm:$0xff] %v6123_v34  ;;  %5659 = vst [vmem:[%s7363_s24 + $0x3e8] sm:$0xff] %v6187_v53  ;;  %v3740_v11 = vmax.f32 %v3484_v57, 0.0  ;;  %v4635_v20 = vmul.f32 %v8844_v42, %v3611_v38 }
 0x2d1   : > { %v4763_v29 = vmul.f32 %v4503_v60, %v3739_v49  ;;  %v3357_v33 = vadd.f32 %v7309_v6, %v3089_v23  ;;  %v3485_v0 = vadd.f32 %v7309_v6, %v3217_v35  ;;  %v4636_v3 = vmul.f32 %v8845_v40, %v3612_v24 }
 0x2d2   : > { %v4764_v10 = vmul.f32 %v4508_v4, %v3740_v11  ;;  %v6124_v19 = vpack.c.bf16 %v4635_v20, %v4634_v63 }
 0x2d3   : > { %v6188_v8 = vpack.c.bf16 %v4763_v29, %v4762_v16  ;;  %v3613_v7 = vmax.f32 %v3357_v33, 0.0  ;;  %v3741_v43 = vmax.f32 %v3485_v0, 0.0 }
 0x2d4   : > { %5596 = vst [vmem:[%s7363_s24 + $0x1f0] sm:$0xff] %v6124_v19 }
 0x2d5   : > { %5660 = vst [vmem:[%s7363_s24 + $0x3f0] sm:$0xff] %v6188_v8  ;;  %v4637_v30 = vmul.f32 %v8845_v40, %v3613_v7  ;;  %v4765_v46 = vmul.f32 %v4508_v4, %v3741_v43 }
 0x2d7   : > { %v6125_v6 = vpack.c.bf16 %v4637_v30, %v4636_v3  ;;  %v6189_v55 = vpack.c.bf16 %v4765_v46, %v4764_v10 }
 0x2d9   : > { %5597 = vst [vmem:[%s7363_s24 + $0x1f8] sm:$0xff] %v6125_v6  ;;  %5661 = vst [vmem:[%s7363_s24 + $0x3f8] sm:$0xff] %v6189_v55 }
 0x2da   : > { %6560 = shalt.err (!%p6557_p13)
}
 0x2db   : > { %s6561_s1 = scalar_lea.hbm %s8638_s15, 16384  ;;  %s6565_s7 = scalar_lea.hbm %s8846_s13, 49152 }
 0x2dc   : > { %p6562_p8 = scmp.ne.s32.totalorder %s8638_s15, %s6561_s1  ;;  %p6566_p5 = scmp.lt.u32.totalorder %s8638_s15, %s8846_s13 }
 0x2dd   : > { %p6567_p9 = scmp.lt.u32.totalorder %s6565_s7, %s6561_s1  ;;  %p6569_p10 = scmp.lt.u32.totalorder %s6561_s1, %s8638_s15 }
 0x2de   : > { %p6563_p0 = pnand %p6562_p8, %p8847_p4 }
 0x2df   : > { %p6568_p2 = por %p6567_p9, %p6566_p5 }
 0x2e0   : > { %p6564_p12 = pneg %p6563_p0 }
 0x2e1   : > { %p6570_p6 = por %p6569_p10, %p6568_p2 }
 0x2e3   : > { %p6571_p7 = pnand %p6570_p6, %p6564_p12 }
 0x2e5   : > { %6574 = shalt.err (!%p6571_p7)
}
 0x2e6   : > { %s6654_s23 = smov 128   ;;  %s6655_s5 = smov 8  }
 0x2e7   : > { %6224 = dma.vmem_to_hbm [thread:$0]  (%p8847_p4), %s8640_s10, 16384, %s8638_s15, %s5663_s21, %s6654_s23, %s6654_s23, %s6655_s5  }
 0x2e8 PF: > { %s8848_s12 = sld [smem:[#allocation19_spill]]  ;;  %s8849_s28 = sld [smem:[#allocation18_spill]] }
 0x2e9   : > { %s8850_s9 = sld [smem:[#allocation20_spill]] }
 0x2ee   : > { %p6254_p11 = scmp.ge.s32.totalorder %s8848_s12, 2  ;;  %s5694_s24 = sand.u32 1, %s8849_s28  }
 0x2ef   : > { %p8851_p1 = scmp.ne.s32.totalorder %s8850_s9, 0  ;;  %s5695_s26 = scalar_lea.sflag [#allocation5], %s5694_s24 }
 0x2f1   : > { %p6244_p3 = pnand %p6254_p11, %p8851_p1 }
 0x2f3   : > { %6616 = dma.done.wait (!%p6244_p3), %s5695_s26, 16384  }
 0x2f4   : > { %6618 = vsyncadd (!%p6244_p3), %s5695_s26, 4294950912  ;;  %s23_s23 = sadd.s32 1, %s8848_s12   ;;  %s8852_s16 = sld [smem:[#allocation22_spill]] }
 0x2f5   : > { %p20_p13 = scmp.ge.s32.totalorder %s23_s23, 5   ;;  %s8853_s11 = sld [smem:[#allocation21_spill]] }
 0x2f6   : > { %s8854_s18 = smov %s6625_s19  ;;  %s8855_s19 = smov %s6629_s20 }
 0x2f7   : > { %s8857_s21 = smov %s6637_s22  ;;  %22 = sbr.rel (!%p20_p13) target bundleno = 12 (0xc), region = 119 }
 0x2fa   : > { %s8856_s20 = smov %s8852_s16 }
 0x2fb   : > { %s8858_s22 = smov %s8853_s11 }
 0x2fe   :  { %5700 = vsyncpa [#allocation4], 1 }
 0x2ff   :  { %5702 = vsyncpa [#allocation4 + $0x1], 1 }
 0x300   :  { %5703 = vsyncpa [#allocation7], 1 }
 0x301   :  { %5704 = vsyncpa [#allocation10], 1 }
 0x302   :  { %5705 = vsyncpa [#allocation5], 1 }
 0x303   :  { %5707 = vsyncpa [#allocation5 + $0x1], 1 }

</bundles_post_ra>
